<compile_context>
chip_gen: v5e
topology: v5e:2x2
jax: 0.10.0
libtpu: 0.0.40
codegen_flags: <defaults>
</compile_context>

<pallas_src>
import functools

import jax
import jax.numpy as jnp
import numpy as np
from jax import lax
from jax.experimental import pallas as pl
from jax.experimental.pallas import tpu as pltpu


def _round_up(x, m):
    return (x + m - 1) // m * m


def _double_conv_kernel(x_ref, w1_ref, b1_ref, w2_ref, b2_ref, o_ref, *,
                        TH, H, W, Wq, Cin_p, Cout_p):
    """One (batch image, output-row tile) step of the fused DoubleConv.

    x_ref : (H + 4, Wp, Cin_p)   bf16, zero-padded NHWC image (resident across
                                 the row-tile axis -> DMA'd once per image).
    w1_ref: (9, Cin_p, Cout_p)   bf16, conv1 taps (BN1 scale folded in).
    b1_ref: (1, Cout_p)          f32,  conv1 bias + BN1 shift.
    w2_ref: (9, Cout_p, Cout_p)  bf16, conv2 taps (BN2 scale folded in).
    b2_ref: (1, Cout_p)          f32,  conv2 bias + BN2 shift.
    o_ref : (TH, W, Cout_p)      f32,  lane-dense output row tile.
    """
    t = pl.program_id(1)
    row0 = t * TH
    if TH % 8 == 0:
        row0 = pl.multiple_of(row0, 8)

    # Rows needed to produce TH output rows after two stacked 3x3 convs
    # (2-row halo on each side, already zero-padded in HBM).
    xt = x_ref[pl.ds(row0, TH + 4), :, :]                     # (TH+4, Wp, Cin_p)

    # ---- conv1: per-tap accumulation on the MXU (no im2col buffer) ----
    rows1 = TH + 2
    acc1 = None
    for dy in range(3):
        for dx in range(3):
            win = xt[dy:dy + rows1, dx:dx + W, :].reshape(rows1 * W, Cin_p)
            p = jnp.dot(win, w1_ref[dy * 3 + dx],
                        preferred_element_type=jnp.float32)
            acc1 = p if acc1 is None else acc1 + p
    # conv bias + BN shift (scale already folded into w1), ReLU  (all f32)
    y1 = jnp.maximum(acc1 + b1_ref[...], 0.0).reshape(rows1, W, Cout_p)

    # ---- conv2's zero padding, built without a scratch buffer ----
    # Halo rows that fall outside the image must be ZERO (conv2 zero-pads the
    # H x W conv1 output; it must not see conv1 evaluated out of bounds).
    top_ok = (row0 >= 1).astype(jnp.float32)
    bot_ok = (row0 + TH < H).astype(jnp.float32)
    y1 = jnp.concatenate(
        [y1[0:1] * top_ok, y1[1:TH + 1], y1[TH + 1:TH + 2] * bot_ok],
        axis=0).astype(jnp.bfloat16)
    y1p = jnp.concatenate(
        [jnp.zeros((rows1, 1, Cout_p), jnp.bfloat16), y1,
         jnp.zeros((rows1, Wq - W - 1, Cout_p), jnp.bfloat16)], axis=1)

    # ---- conv2: per-tap accumulation on the MXU ----
    acc2 = None
    for dy in range(3):
        for dx in range(3):
            win = y1p[dy:dy + TH, dx:dx + W, :].reshape(TH * W, Cout_p)
            p = jnp.dot(win, w2_ref[dy * 3 + dx],
                        preferred_element_type=jnp.float32)
            acc2 = p if acc2 is None else acc2 + p
    y2 = jnp.maximum(acc2 + b2_ref[...], 0.0)
    o_ref[...] = y2.reshape(TH, W, Cout_p)


def _vmem_bytes(H, W, Wp, Wq, Cin_p, Cout_p, th):
    """Rough per-step VMEM footprint: double-buffered blocks + live values."""
    bf, f32 = 2, 4
    img = (H + 4) * Wp * Cin_p * bf * 2                       # resident image
    wts = 9 * (Cin_p + Cout_p) * Cout_p * bf * 2              # w1 + w2
    shf = 2 * Cout_p * f32 * 2
    out = th * W * Cout_p * f32 * 2                           # output tile
    work = ((th + 4) * Wp * Cin_p * bf                        # xt window
            + (th + 2) * W * Cout_p * f32                     # acc1
            + (th + 2) * Wq * Cout_p * bf                     # y1p
            + th * W * Cout_p * f32                           # acc2
            + (th + 2) * W * max(Cin_p, Cout_p) * bf * 2)     # tap windows/slack
    return img + wts + shf + out + work


def _pick_tile_h(H, est, budget):
    for th in range(H, 0, -1):
        if H % th == 0 and est(th) <= budget:
            return th
    return 1


def double_conv_pallas(x_nchw, params, *, tile_h=None, vmem_budget=48 * 2**20):
    """x_nchw: (N, Cin, H, W) float32. Returns (N, Cout, H, W) float32.

    vmem_budget defaults to ~48 MiB (v7x-safe); pass ~96 MiB on v5e/v6e to let
    the auto-picker choose larger row tiles.
    """
    (w1, b1, g1, be1, m1, v1, w2, b2, g2, be2, m2, v2) = params
    eps = 1e-5

    N, Cin, H, W = x_nchw.shape
    Cout = w1.shape[0]
    # Lane-dense channels.
    # TODO(synk): shallow first layers (Cin=3/4) pay a 32-42x padding inflation
    # with channels-on-lanes; a specialized first-conv kernel with W on the
    # lane axis would recover that (this kernel targets Cin >= 128 layers).
    Cin_p = _round_up(Cin, 128)
    Cout_p = _round_up(Cout, 128)
    Wp = _round_up(W + 2, 8)       # sublane-aligned padded input width
    Wq = _round_up(W + 2, 8)       # sublane-aligned padded conv1-output width

    est = functools.partial(_vmem_bytes, H, W, Wp, Wq, Cin_p, Cout_p)
    if tile_h is None:
        tile_h = _pick_tile_h(H, est, vmem_budget)
    assert H % tile_h == 0, "H must be divisible by tile_h"
    n_ht = H // tile_h
    vmem_limit = int(min(100 * 2**20, max(32 * 2**20, est(tile_h) * 5 // 4)))

    # Fold conv bias + BatchNorm (eval mode) into per-channel scale/shift; the
    # scale goes into the weight columns, only the shift reaches the kernel.
    def fold(b, g, be, m, v):
        s = g / jnp.sqrt(v + eps)
        return s, (b - m) * s + be

    s1, sh1 = fold(b1, g1, be1, m1, v1)
    s2, sh2 = fold(b2, g2, be2, m2, v2)

    # PyTorch conv weights (Cout, Cin, 3, 3) -> (9, Cin_p, Cout_p) bf16 taps,
    # tap index dy*3+dx (matches the kernel's loop order). Padded channels get
    # zero columns so they stay exactly zero through shift+ReLU.
    def repack(w, scale, cin_p, cout_p):
        cout, cin = w.shape[0], w.shape[1]
        wk = jnp.transpose(w, (2, 3, 1, 0)).reshape(9, cin, cout)
        wk = wk * scale[None, None, :]
        wk = jnp.pad(wk, ((0, 0), (0, cin_p - cin), (0, cout_p - cout)))
        return wk.astype(jnp.bfloat16)

    w1m = repack(w1, s1, Cin_p, Cout_p)
    w2m = repack(w2, s2, Cout_p, Cout_p)

    def pad_shift(sh):
        return jnp.pad(sh, (0, Cout_p - sh.shape[0])).reshape(1, Cout_p)

    b1v = pad_shift(sh1)
    b2v = pad_shift(sh2)

    # NCHW -> NHWC, cast to bf16, zero-pad rows by 2 (two stacked 3x3 convs),
    # cols to Wp, channels to a multiple of 128 -- one fused pad.
    # TODO(synk): keep activations in this padded NHWC/bf16 layout across
    # consecutive DoubleConv blocks (convert only at model boundaries), and for
    # very large H*W replace the resident whole-image input block with manual
    # overlapping-halo DMA (pl.ANY + make_async_copy) or a W-tile grid axis.
    x_nhwc = jnp.transpose(x_nchw, (0, 2, 3, 1)).astype(jnp.bfloat16)
    x_pad = jnp.pad(x_nhwc, ((0, 0), (2, 2), (1, Wp - W - 1), (0, Cin_p - Cin)))

    kernel = functools.partial(_double_conv_kernel, TH=tile_h, H=H, W=W, Wq=Wq,
                               Cin_p=Cin_p, Cout_p=Cout_p)

    out_nhwc = pl.pallas_call(
        kernel,
        out_shape=jax.ShapeDtypeStruct((N, H, W, Cout_p), jnp.float32),
        grid_spec=pltpu.PrefetchScalarGridSpec(
            num_scalar_prefetch=0,
            grid=(N, n_ht),
            in_specs=[
                # padded image: constant block index along the row-tile axis
                # -> fetched once per image; the kernel slices its row window.
                pl.BlockSpec((None, H + 4, Wp, Cin_p), lambda n, t: (n, 0, 0, 0)),
                # constant-index weight / shift blocks.
                # TODO(synk): single-buffer these (pipeline_mode=pl.Buffered(1))
                # when Cout is large enough for the second buffer to matter.
                pl.BlockSpec((9, Cin_p, Cout_p), lambda n, t: (0, 0, 0)),
                pl.BlockSpec((1, Cout_p), lambda n, t: (0, 0)),
                pl.BlockSpec((9, Cout_p, Cout_p), lambda n, t: (0, 0, 0)),
                pl.BlockSpec((1, Cout_p), lambda n, t: (0, 0)),
            ],
            out_specs=pl.BlockSpec((None, tile_h, W, Cout_p),
                                   lambda n, t: (n, t, 0, 0)),
        ),
        compiler_params=pltpu.CompilerParams(
            # row tiles are fully independent -> both axes parallel (uses both
            # TensorCores on v7x; harmless on single-TC v5e/v6e).
            dimension_semantics=("parallel", "parallel"),
            vmem_limit_bytes=vmem_limit),
    )(x_pad, w1m, b1v, w2m, b2v)

    # drop channel padding, back to NCHW (model-boundary conversion only).
    return jnp.transpose(out_nhwc[..., :Cout], (0, 3, 1, 2))


def double_conv_reference(x_nchw, params):
    """Pure-JAX f32 reference mirroring PyTorch semantics (eval-mode BN)."""
    (w1, b1, g1, be1, m1, v1, w2, b2, g2, be2, m2, v2) = params
    eps = 1e-5

    def block(x, w, b, g, be, m, v):
        y = lax.conv_general_dilated(
            x, w, window_strides=(1, 1), padding=((1, 1), (1, 1)),
            dimension_numbers=("NCHW", "OIHW", "NCHW"))
        y = y + b[None, :, None, None]
        y = (y - m[None, :, None, None]) / jnp.sqrt(v[None, :, None, None] + eps)
        y = y * g[None, :, None, None] + be[None, :, None, None]
        return jnp.maximum(y, 0.0)

    y = block(x_nchw, w1, b1, g1, be1, m1, v1)
    y = block(y, w2, b2, g2, be2, m2, v2)
    return y


def make_params(key, in_channels, out_channels):
    ks = jax.random.split(key, 12)
    w1 = jax.random.normal(ks[0], (out_channels, in_channels, 3, 3), jnp.float32) * 0.1
    b1 = jax.random.normal(ks[1], (out_channels,), jnp.float32) * 0.1
    g1 = jax.random.uniform(ks[2], (out_channels,), jnp.float32, 0.5, 1.5)
    be1 = jax.random.normal(ks[3], (out_channels,), jnp.float32) * 0.1
    m1 = jax.random.normal(ks[4], (out_channels,), jnp.float32) * 0.1
    v1 = jax.random.uniform(ks[5], (out_channels,), jnp.float32, 0.5, 1.5)
    w2 = jax.random.normal(ks[6], (out_channels, out_channels, 3, 3), jnp.float32) * 0.1
    b2 = jax.random.normal(ks[7], (out_channels,), jnp.float32) * 0.1
    g2 = jax.random.uniform(ks[8], (out_channels,), jnp.float32, 0.5, 1.5)
    be2 = jax.random.normal(ks[9], (out_channels,), jnp.float32) * 0.1
    m2 = jax.random.normal(ks[10], (out_channels,), jnp.float32) * 0.1
    v2 = jax.random.uniform(ks[11], (out_channels,), jnp.float32, 0.5, 1.5)
    return (w1, b1, g1, be1, m1, v1, w2, b2, g2, be2, m2, v2)


if __name__ == "__main__":
    key = jax.random.PRNGKey(0)
    k_x, k_p = jax.random.split(key)

    N, Cin, Cout, H, W = 2, 4, 8, 16, 16
    x = jax.random.normal(k_x, (N, Cin, H, W), jnp.float32)   # NCHW like PyTorch
    params = make_params(k_p, Cin, Cout)

    ref = jax.block_until_ready(double_conv_reference(x, params))

    # bf16 MXU operands with f32 accumulation -> looser tolerance than f32.
    TOL = dict(rtol=5e-2, atol=5e-2)

    # whole image per grid step (auto-picked tile for small H)
    out = jax.block_until_ready(double_conv_pallas(x, params))
    np.testing.assert_allclose(np.asarray(out), np.asarray(ref), **TOL)

    # row-tiled path with the 2-row halo (exercises boundary masking)
    out_t = jax.block_until_ready(double_conv_pallas(x, params, tile_h=8))
    np.testing.assert_allclose(np.asarray(out_t), np.asarray(ref), **TOL)

    print("KERNEL_OK")
</pallas_src>

<mosaic_0001>
module attributes {stable_mosaic.version = 11 : i64} {
  func.func @_double_conv_kernel(%arg0: i32, %arg1: i32, %arg2: memref<1x20x24x128xbf16, #tpu.memory_space<vmem>>, %arg3: memref<9x128x128xbf16, #tpu.memory_space<vmem>>, %arg4: memref<1x128xf32, #tpu.memory_space<vmem>>, %arg5: memref<9x128x128xbf16, #tpu.memory_space<vmem>>, %arg6: memref<1x128xf32, #tpu.memory_space<vmem>>, %arg7: memref<1x16x16x128xf32, #tpu.memory_space<vmem>>) attributes {dimension_semantics = [#tpu.dimension_semantics<parallel>, #tpu.dimension_semantics<parallel>], iteration_bounds = array<i64: 2, 1>, scalar_prefetch = 0 : i64, scratch_operands = 0 : i64, tpu.core_type = #tpu.core_type<tc>, window_params = [{transform_indices = @transform_0, window_bounds = array<i64: 1, 20, 24, 128>}, {pipeline_mode = #tpu.pipeline_mode<synchronous>, transform_indices = @transform_1, window_bounds = array<i64: 9, 128, 128>}, {pipeline_mode = #tpu.pipeline_mode<synchronous>, transform_indices = @transform_2, window_bounds = array<i64: 1, 128>}, {pipeline_mode = #tpu.pipeline_mode<synchronous>, transform_indices = @transform_3, window_bounds = array<i64: 9, 128, 128>}, {pipeline_mode = #tpu.pipeline_mode<synchronous>, transform_indices = @transform_4, window_bounds = array<i64: 1, 128>}, {transform_indices = @transform_5, window_bounds = array<i64: 1, 16, 16, 128>}]} {
    %c16_i32 = arith.constant 16 : i32
    %0 = arith.muli %arg1, %c16_i32 : i32
    %1 = tpu.assume_multiple %0, 8 : i32
    %c0 = arith.constant 0 : index
    %2 = arith.index_cast %1 : i32 to index
    %c0_0 = arith.constant 0 : index
    %c0_1 = arith.constant 0 : index
    %3 = vector.load %arg2[%c0, %2, %c0_0, %c0_1] : memref<1x20x24x128xbf16, #tpu.memory_space<vmem>>, vector<1x20x24x128xbf16>
    %4 = vector.shape_cast %3 : vector<1x20x24x128xbf16> to vector<20x24x128xbf16>
    %5 = vector.extract_strided_slice %4 {offsets = [0, 0, 0], sizes = [18, 16, 128], strides = [1, 1, 1]} : vector<20x24x128xbf16> to vector<18x16x128xbf16>
    %6 = vector.shape_cast %5 : vector<18x16x128xbf16> to vector<288x128xbf16>
    %c0_2 = arith.constant 0 : index
    %c0_3 = arith.constant 0 : index
    %c0_4 = arith.constant 0 : index
    %7 = vector.load %arg3[%c0_2, %c0_3, %c0_4] : memref<9x128x128xbf16, #tpu.memory_space<vmem>>, vector<1x128x128xbf16>
    %8 = vector.shape_cast %7 : vector<1x128x128xbf16> to vector<128x128xbf16>
    %cst = arith.constant dense<0.000000e+00> : vector<288x128xf32>
    %9 = tpu.matmul %6, %8, %cst {dimension_numbers = #tpu.dot_dimension_numbers<[1], [0], [0], [1], [0, 0, 1, 1], [], []>} : vector<288x128xbf16>, vector<128x128xbf16>, vector<288x128xf32> -> vector<288x128xf32>
    %10 = vector.extract_strided_slice %4 {offsets = [0, 1, 0], sizes = [18, 16, 128], strides = [1, 1, 1]} : vector<20x24x128xbf16> to vector<18x16x128xbf16>
    %11 = vector.shape_cast %10 : vector<18x16x128xbf16> to vector<288x128xbf16>
    %c1 = arith.constant 1 : index
    %c0_5 = arith.constant 0 : index
    %c0_6 = arith.constant 0 : index
    %12 = vector.load %arg3[%c1, %c0_5, %c0_6] : memref<9x128x128xbf16, #tpu.memory_space<vmem>>, vector<1x128x128xbf16>
    %13 = vector.shape_cast %12 : vector<1x128x128xbf16> to vector<128x128xbf16>
    %cst_7 = arith.constant dense<0.000000e+00> : vector<288x128xf32>
    %14 = tpu.matmul %11, %13, %cst_7 {dimension_numbers = #tpu.dot_dimension_numbers<[1], [0], [0], [1], [0, 0, 1, 1], [], []>} : vector<288x128xbf16>, vector<128x128xbf16>, vector<288x128xf32> -> vector<288x128xf32>
    %15 = arith.addf %9, %14 : vector<288x128xf32>
    %16 = vector.extract_strided_slice %4 {offsets = [0, 2, 0], sizes = [18, 16, 128], strides = [1, 1, 1]} : vector<20x24x128xbf16> to vector<18x16x128xbf16>
    %17 = vector.shape_cast %16 : vector<18x16x128xbf16> to vector<288x128xbf16>
    %c2 = arith.constant 2 : index
    %c0_8 = arith.constant 0 : index
    %c0_9 = arith.constant 0 : index
    %18 = vector.load %arg3[%c2, %c0_8, %c0_9] : memref<9x128x128xbf16, #tpu.memory_space<vmem>>, vector<1x128x128xbf16>
    %19 = vector.shape_cast %18 : vector<1x128x128xbf16> to vector<128x128xbf16>
    %cst_10 = arith.constant dense<0.000000e+00> : vector<288x128xf32>
    %20 = tpu.matmul %17, %19, %cst_10 {dimension_numbers = #tpu.dot_dimension_numbers<[1], [0], [0], [1], [0, 0, 1, 1], [], []>} : vector<288x128xbf16>, vector<128x128xbf16>, vector<288x128xf32> -> vector<288x128xf32>
    %21 = arith.addf %15, %20 : vector<288x128xf32>
    %22 = vector.extract_strided_slice %4 {offsets = [1, 0, 0], sizes = [18, 16, 128], strides = [1, 1, 1]} : vector<20x24x128xbf16> to vector<18x16x128xbf16>
    %23 = vector.shape_cast %22 : vector<18x16x128xbf16> to vector<288x128xbf16>
    %c3 = arith.constant 3 : index
    %c0_11 = arith.constant 0 : index
    %c0_12 = arith.constant 0 : index
    %24 = vector.load %arg3[%c3, %c0_11, %c0_12] : memref<9x128x128xbf16, #tpu.memory_space<vmem>>, vector<1x128x128xbf16>
    %25 = vector.shape_cast %24 : vector<1x128x128xbf16> to vector<128x128xbf16>
    %cst_13 = arith.constant dense<0.000000e+00> : vector<288x128xf32>
    %26 = tpu.matmul %23, %25, %cst_13 {dimension_numbers = #tpu.dot_dimension_numbers<[1], [0], [0], [1], [0, 0, 1, 1], [], []>} : vector<288x128xbf16>, vector<128x128xbf16>, vector<288x128xf32> -> vector<288x128xf32>
    %27 = arith.addf %21, %26 : vector<288x128xf32>
    %28 = vector.extract_strided_slice %4 {offsets = [1, 1, 0], sizes = [18, 16, 128], strides = [1, 1, 1]} : vector<20x24x128xbf16> to vector<18x16x128xbf16>
    %29 = vector.shape_cast %28 : vector<18x16x128xbf16> to vector<288x128xbf16>
    %c4 = arith.constant 4 : index
    %c0_14 = arith.constant 0 : index
    %c0_15 = arith.constant 0 : index
    %30 = vector.load %arg3[%c4, %c0_14, %c0_15] : memref<9x128x128xbf16, #tpu.memory_space<vmem>>, vector<1x128x128xbf16>
    %31 = vector.shape_cast %30 : vector<1x128x128xbf16> to vector<128x128xbf16>
    %cst_16 = arith.constant dense<0.000000e+00> : vector<288x128xf32>
    %32 = tpu.matmul %29, %31, %cst_16 {dimension_numbers = #tpu.dot_dimension_numbers<[1], [0], [0], [1], [0, 0, 1, 1], [], []>} : vector<288x128xbf16>, vector<128x128xbf16>, vector<288x128xf32> -> vector<288x128xf32>
    %33 = arith.addf %27, %32 : vector<288x128xf32>
    %34 = vector.extract_strided_slice %4 {offsets = [1, 2, 0], sizes = [18, 16, 128], strides = [1, 1, 1]} : vector<20x24x128xbf16> to vector<18x16x128xbf16>
    %35 = vector.shape_cast %34 : vector<18x16x128xbf16> to vector<288x128xbf16>
    %c5 = arith.constant 5 : index
    %c0_17 = arith.constant 0 : index
    %c0_18 = arith.constant 0 : index
    %36 = vector.load %arg3[%c5, %c0_17, %c0_18] : memref<9x128x128xbf16, #tpu.memory_space<vmem>>, vector<1x128x128xbf16>
    %37 = vector.shape_cast %36 : vector<1x128x128xbf16> to vector<128x128xbf16>
    %cst_19 = arith.constant dense<0.000000e+00> : vector<288x128xf32>
    %38 = tpu.matmul %35, %37, %cst_19 {dimension_numbers = #tpu.dot_dimension_numbers<[1], [0], [0], [1], [0, 0, 1, 1], [], []>} : vector<288x128xbf16>, vector<128x128xbf16>, vector<288x128xf32> -> vector<288x128xf32>
    %39 = arith.addf %33, %38 : vector<288x128xf32>
    %40 = vector.extract_strided_slice %4 {offsets = [2, 0, 0], sizes = [18, 16, 128], strides = [1, 1, 1]} : vector<20x24x128xbf16> to vector<18x16x128xbf16>
    %41 = vector.shape_cast %40 : vector<18x16x128xbf16> to vector<288x128xbf16>
    %c6 = arith.constant 6 : index
    %c0_20 = arith.constant 0 : index
    %c0_21 = arith.constant 0 : index
    %42 = vector.load %arg3[%c6, %c0_20, %c0_21] : memref<9x128x128xbf16, #tpu.memory_space<vmem>>, vector<1x128x128xbf16>
    %43 = vector.shape_cast %42 : vector<1x128x128xbf16> to vector<128x128xbf16>
    %cst_22 = arith.constant dense<0.000000e+00> : vector<288x128xf32>
    %44 = tpu.matmul %41, %43, %cst_22 {dimension_numbers = #tpu.dot_dimension_numbers<[1], [0], [0], [1], [0, 0, 1, 1], [], []>} : vector<288x128xbf16>, vector<128x128xbf16>, vector<288x128xf32> -> vector<288x128xf32>
    %45 = arith.addf %39, %44 : vector<288x128xf32>
    %46 = vector.extract_strided_slice %4 {offsets = [2, 1, 0], sizes = [18, 16, 128], strides = [1, 1, 1]} : vector<20x24x128xbf16> to vector<18x16x128xbf16>
    %47 = vector.shape_cast %46 : vector<18x16x128xbf16> to vector<288x128xbf16>
    %c7 = arith.constant 7 : index
    %c0_23 = arith.constant 0 : index
    %c0_24 = arith.constant 0 : index
    %48 = vector.load %arg3[%c7, %c0_23, %c0_24] : memref<9x128x128xbf16, #tpu.memory_space<vmem>>, vector<1x128x128xbf16>
    %49 = vector.shape_cast %48 : vector<1x128x128xbf16> to vector<128x128xbf16>
    %cst_25 = arith.constant dense<0.000000e+00> : vector<288x128xf32>
    %50 = tpu.matmul %47, %49, %cst_25 {dimension_numbers = #tpu.dot_dimension_numbers<[1], [0], [0], [1], [0, 0, 1, 1], [], []>} : vector<288x128xbf16>, vector<128x128xbf16>, vector<288x128xf32> -> vector<288x128xf32>
    %51 = arith.addf %45, %50 : vector<288x128xf32>
    %52 = vector.extract_strided_slice %4 {offsets = [2, 2, 0], sizes = [18, 16, 128], strides = [1, 1, 1]} : vector<20x24x128xbf16> to vector<18x16x128xbf16>
    %53 = vector.shape_cast %52 : vector<18x16x128xbf16> to vector<288x128xbf16>
    %c8 = arith.constant 8 : index
    %c0_26 = arith.constant 0 : index
    %c0_27 = arith.constant 0 : index
    %54 = vector.load %arg3[%c8, %c0_26, %c0_27] : memref<9x128x128xbf16, #tpu.memory_space<vmem>>, vector<1x128x128xbf16>
    %55 = vector.shape_cast %54 : vector<1x128x128xbf16> to vector<128x128xbf16>
    %cst_28 = arith.constant dense<0.000000e+00> : vector<288x128xf32>
    %56 = tpu.matmul %53, %55, %cst_28 {dimension_numbers = #tpu.dot_dimension_numbers<[1], [0], [0], [1], [0, 0, 1, 1], [], []>} : vector<288x128xbf16>, vector<128x128xbf16>, vector<288x128xf32> -> vector<288x128xf32>
    %57 = arith.addf %51, %56 : vector<288x128xf32>
    %c0_29 = arith.constant 0 : index
    %c0_30 = arith.constant 0 : index
    %58 = vector.load %arg4[%c0_29, %c0_30] : memref<1x128xf32, #tpu.memory_space<vmem>>, vector<1x128xf32>
    %59 = vector.broadcast %58 : vector<1x128xf32> to vector<288x128xf32>
    %60 = arith.addf %57, %59 : vector<288x128xf32>
    %cst_31 = arith.constant 0.000000e+00 : f32
    %61 = vector.broadcast %cst_31 : f32 to vector<288x128xf32>
    %62 = arith.maximumf %60, %61 : vector<288x128xf32>
    %63 = vector.shape_cast %62 : vector<288x128xf32> to vector<18x16x128xf32>
    %c1_i32 = arith.constant 1 : i32
    %64 = arith.cmpi sge, %1, %c1_i32 : i32
    %65 = arith.extui %64 : i1 to i32
    %66 = arith.sitofp %65 : i32 to f32
    %c16_i32_32 = arith.constant 16 : i32
    %67 = arith.addi %1, %c16_i32_32 : i32
    %c16_i32_33 = arith.constant 16 : i32
    %68 = arith.cmpi slt, %67, %c16_i32_33 : i32
    %69 = arith.extui %68 : i1 to i32
    %70 = arith.sitofp %69 : i32 to f32
    %71 = vector.extract_strided_slice %63 {offsets = [0, 0, 0], sizes = [1, 16, 128], strides = [1, 1, 1]} : vector<18x16x128xf32> to vector<1x16x128xf32>
    %72 = vector.broadcast %66 : f32 to vector<1x16x128xf32>
    %73 = arith.mulf %71, %72 : vector<1x16x128xf32>
    %74 = vector.extract_strided_slice %63 {offsets = [1, 0, 0], sizes = [16, 16, 128], strides = [1, 1, 1]} : vector<18x16x128xf32> to vector<16x16x128xf32>
    %75 = vector.extract_strided_slice %63 {offsets = [17, 0, 0], sizes = [1, 16, 128], strides = [1, 1, 1]} : vector<18x16x128xf32> to vector<1x16x128xf32>
    %76 = vector.broadcast %70 : f32 to vector<1x16x128xf32>
    %77 = arith.mulf %75, %76 : vector<1x16x128xf32>
    %78 = tpu.concatenate %73, %74, %77 in 0 : vector<1x16x128xf32>, vector<16x16x128xf32>, vector<1x16x128xf32> -> vector<18x16x128xf32>
    %79 = arith.truncf %78 : vector<18x16x128xf32> to vector<18x16x128xbf16>
    %cst_34 = arith.constant 0.000000e+00 : bf16
    %80 = vector.broadcast %cst_34 : bf16 to vector<18x1x128xbf16>
    %cst_35 = arith.constant 0.000000e+00 : bf16
    %81 = vector.broadcast %cst_35 : bf16 to vector<18x7x128xbf16>
    %82 = tpu.concatenate %80, %79, %81 in 1 : vector<18x1x128xbf16>, vector<18x16x128xbf16>, vector<18x7x128xbf16> -> vector<18x24x128xbf16>
    %83 = vector.extract_strided_slice %82 {offsets = [0, 0, 0], sizes = [16, 16, 128], strides = [1, 1, 1]} : vector<18x24x128xbf16> to vector<16x16x128xbf16>
    %84 = vector.shape_cast %83 : vector<16x16x128xbf16> to vector<256x128xbf16>
    %c0_36 = arith.constant 0 : index
    %c0_37 = arith.constant 0 : index
    %c0_38 = arith.constant 0 : index
    %85 = vector.load %arg5[%c0_36, %c0_37, %c0_38] : memref<9x128x128xbf16, #tpu.memory_space<vmem>>, vector<1x128x128xbf16>
    %86 = vector.shape_cast %85 : vector<1x128x128xbf16> to vector<128x128xbf16>
    %cst_39 = arith.constant dense<0.000000e+00> : vector<256x128xf32>
    %87 = tpu.matmul %84, %86, %cst_39 {dimension_numbers = #tpu.dot_dimension_numbers<[1], [0], [0], [1], [0, 0, 1, 1], [], []>} : vector<256x128xbf16>, vector<128x128xbf16>, vector<256x128xf32> -> vector<256x128xf32>
    %88 = vector.extract_strided_slice %82 {offsets = [0, 1, 0], sizes = [16, 16, 128], strides = [1, 1, 1]} : vector<18x24x128xbf16> to vector<16x16x128xbf16>
    %89 = vector.shape_cast %88 : vector<16x16x128xbf16> to vector<256x128xbf16>
    %c1_40 = arith.constant 1 : index
    %c0_41 = arith.constant 0 : index
    %c0_42 = arith.constant 0 : index
    %90 = vector.load %arg5[%c1_40, %c0_41, %c0_42] : memref<9x128x128xbf16, #tpu.memory_space<vmem>>, vector<1x128x128xbf16>
    %91 = vector.shape_cast %90 : vector<1x128x128xbf16> to vector<128x128xbf16>
    %cst_43 = arith.constant dense<0.000000e+00> : vector<256x128xf32>
    %92 = tpu.matmul %89, %91, %cst_43 {dimension_numbers = #tpu.dot_dimension_numbers<[1], [0], [0], [1], [0, 0, 1, 1], [], []>} : vector<256x128xbf16>, vector<128x128xbf16>, vector<256x128xf32> -> vector<256x128xf32>
    %93 = arith.addf %87, %92 : vector<256x128xf32>
    %94 = vector.extract_strided_slice %82 {offsets = [0, 2, 0], sizes = [16, 16, 128], strides = [1, 1, 1]} : vector<18x24x128xbf16> to vector<16x16x128xbf16>
    %95 = vector.shape_cast %94 : vector<16x16x128xbf16> to vector<256x128xbf16>
    %c2_44 = arith.constant 2 : index
    %c0_45 = arith.constant 0 : index
    %c0_46 = arith.constant 0 : index
    %96 = vector.load %arg5[%c2_44, %c0_45, %c0_46] : memref<9x128x128xbf16, #tpu.memory_space<vmem>>, vector<1x128x128xbf16>
    %97 = vector.shape_cast %96 : vector<1x128x128xbf16> to vector<128x128xbf16>
    %cst_47 = arith.constant dense<0.000000e+00> : vector<256x128xf32>
    %98 = tpu.matmul %95, %97, %cst_47 {dimension_numbers = #tpu.dot_dimension_numbers<[1], [0], [0], [1], [0, 0, 1, 1], [], []>} : vector<256x128xbf16>, vector<128x128xbf16>, vector<256x128xf32> -> vector<256x128xf32>
    %99 = arith.addf %93, %98 : vector<256x128xf32>
    %100 = vector.extract_strided_slice %82 {offsets = [1, 0, 0], sizes = [16, 16, 128], strides = [1, 1, 1]} : vector<18x24x128xbf16> to vector<16x16x128xbf16>
    %101 = vector.shape_cast %100 : vector<16x16x128xbf16> to vector<256x128xbf16>
    %c3_48 = arith.constant 3 : index
    %c0_49 = arith.constant 0 : index
    %c0_50 = arith.constant 0 : index
    %102 = vector.load %arg5[%c3_48, %c0_49, %c0_50] : memref<9x128x128xbf16, #tpu.memory_space<vmem>>, vector<1x128x128xbf16>
    %103 = vector.shape_cast %102 : vector<1x128x128xbf16> to vector<128x128xbf16>
    %cst_51 = arith.constant dense<0.000000e+00> : vector<256x128xf32>
    %104 = tpu.matmul %101, %103, %cst_51 {dimension_numbers = #tpu.dot_dimension_numbers<[1], [0], [0], [1], [0, 0, 1, 1], [], []>} : vector<256x128xbf16>, vector<128x128xbf16>, vector<256x128xf32> -> vector<256x128xf32>
    %105 = arith.addf %99, %104 : vector<256x128xf32>
    %106 = vector.extract_strided_slice %82 {offsets = [1, 1, 0], sizes = [16, 16, 128], strides = [1, 1, 1]} : vector<18x24x128xbf16> to vector<16x16x128xbf16>
    %107 = vector.shape_cast %106 : vector<16x16x128xbf16> to vector<256x128xbf16>
    %c4_52 = arith.constant 4 : index
    %c0_53 = arith.constant 0 : index
    %c0_54 = arith.constant 0 : index
    %108 = vector.load %arg5[%c4_52, %c0_53, %c0_54] : memref<9x128x128xbf16, #tpu.memory_space<vmem>>, vector<1x128x128xbf16>
    %109 = vector.shape_cast %108 : vector<1x128x128xbf16> to vector<128x128xbf16>
    %cst_55 = arith.constant dense<0.000000e+00> : vector<256x128xf32>
    %110 = tpu.matmul %107, %109, %cst_55 {dimension_numbers = #tpu.dot_dimension_numbers<[1], [0], [0], [1], [0, 0, 1, 1], [], []>} : vector<256x128xbf16>, vector<128x128xbf16>, vector<256x128xf32> -> vector<256x128xf32>
    %111 = arith.addf %105, %110 : vector<256x128xf32>
    %112 = vector.extract_strided_slice %82 {offsets = [1, 2, 0], sizes = [16, 16, 128], strides = [1, 1, 1]} : vector<18x24x128xbf16> to vector<16x16x128xbf16>
    %113 = vector.shape_cast %112 : vector<16x16x128xbf16> to vector<256x128xbf16>
    %c5_56 = arith.constant 5 : index
    %c0_57 = arith.constant 0 : index
    %c0_58 = arith.constant 0 : index
    %114 = vector.load %arg5[%c5_56, %c0_57, %c0_58] : memref<9x128x128xbf16, #tpu.memory_space<vmem>>, vector<1x128x128xbf16>
    %115 = vector.shape_cast %114 : vector<1x128x128xbf16> to vector<128x128xbf16>
    %cst_59 = arith.constant dense<0.000000e+00> : vector<256x128xf32>
    %116 = tpu.matmul %113, %115, %cst_59 {dimension_numbers = #tpu.dot_dimension_numbers<[1], [0], [0], [1], [0, 0, 1, 1], [], []>} : vector<256x128xbf16>, vector<128x128xbf16>, vector<256x128xf32> -> vector<256x128xf32>
    %117 = arith.addf %111, %116 : vector<256x128xf32>
    %118 = vector.extract_strided_slice %82 {offsets = [2, 0, 0], sizes = [16, 16, 128], strides = [1, 1, 1]} : vector<18x24x128xbf16> to vector<16x16x128xbf16>
    %119 = vector.shape_cast %118 : vector<16x16x128xbf16> to vector<256x128xbf16>
    %c6_60 = arith.constant 6 : index
    %c0_61 = arith.constant 0 : index
    %c0_62 = arith.constant 0 : index
    %120 = vector.load %arg5[%c6_60, %c0_61, %c0_62] : memref<9x128x128xbf16, #tpu.memory_space<vmem>>, vector<1x128x128xbf16>
    %121 = vector.shape_cast %120 : vector<1x128x128xbf16> to vector<128x128xbf16>
    %cst_63 = arith.constant dense<0.000000e+00> : vector<256x128xf32>
    %122 = tpu.matmul %119, %121, %cst_63 {dimension_numbers = #tpu.dot_dimension_numbers<[1], [0], [0], [1], [0, 0, 1, 1], [], []>} : vector<256x128xbf16>, vector<128x128xbf16>, vector<256x128xf32> -> vector<256x128xf32>
    %123 = arith.addf %117, %122 : vector<256x128xf32>
    %124 = vector.extract_strided_slice %82 {offsets = [2, 1, 0], sizes = [16, 16, 128], strides = [1, 1, 1]} : vector<18x24x128xbf16> to vector<16x16x128xbf16>
    %125 = vector.shape_cast %124 : vector<16x16x128xbf16> to vector<256x128xbf16>
    %c7_64 = arith.constant 7 : index
    %c0_65 = arith.constant 0 : index
    %c0_66 = arith.constant 0 : index
    %126 = vector.load %arg5[%c7_64, %c0_65, %c0_66] : memref<9x128x128xbf16, #tpu.memory_space<vmem>>, vector<1x128x128xbf16>
    %127 = vector.shape_cast %126 : vector<1x128x128xbf16> to vector<128x128xbf16>
    %cst_67 = arith.constant dense<0.000000e+00> : vector<256x128xf32>
    %128 = tpu.matmul %125, %127, %cst_67 {dimension_numbers = #tpu.dot_dimension_numbers<[1], [0], [0], [1], [0, 0, 1, 1], [], []>} : vector<256x128xbf16>, vector<128x128xbf16>, vector<256x128xf32> -> vector<256x128xf32>
    %129 = arith.addf %123, %128 : vector<256x128xf32>
    %130 = vector.extract_strided_slice %82 {offsets = [2, 2, 0], sizes = [16, 16, 128], strides = [1, 1, 1]} : vector<18x24x128xbf16> to vector<16x16x128xbf16>
    %131 = vector.shape_cast %130 : vector<16x16x128xbf16> to vector<256x128xbf16>
    %c8_68 = arith.constant 8 : index
    %c0_69 = arith.constant 0 : index
    %c0_70 = arith.constant 0 : index
    %132 = vector.load %arg5[%c8_68, %c0_69, %c0_70] : memref<9x128x128xbf16, #tpu.memory_space<vmem>>, vector<1x128x128xbf16>
    %133 = vector.shape_cast %132 : vector<1x128x128xbf16> to vector<128x128xbf16>
    %cst_71 = arith.constant dense<0.000000e+00> : vector<256x128xf32>
    %134 = tpu.matmul %131, %133, %cst_71 {dimension_numbers = #tpu.dot_dimension_numbers<[1], [0], [0], [1], [0, 0, 1, 1], [], []>} : vector<256x128xbf16>, vector<128x128xbf16>, vector<256x128xf32> -> vector<256x128xf32>
    %135 = arith.addf %129, %134 : vector<256x128xf32>
    %c0_72 = arith.constant 0 : index
    %c0_73 = arith.constant 0 : index
    %136 = vector.load %arg6[%c0_72, %c0_73] : memref<1x128xf32, #tpu.memory_space<vmem>>, vector<1x128xf32>
    %137 = vector.broadcast %136 : vector<1x128xf32> to vector<256x128xf32>
    %138 = arith.addf %135, %137 : vector<256x128xf32>
    %cst_74 = arith.constant 0.000000e+00 : f32
    %139 = vector.broadcast %cst_74 : f32 to vector<256x128xf32>
    %140 = arith.maximumf %138, %139 : vector<256x128xf32>
    %141 = vector.shape_cast %140 : vector<256x128xf32> to vector<16x16x128xf32>
    %c0_75 = arith.constant 0 : index
    %c0_76 = arith.constant 0 : index
    %c0_77 = arith.constant 0 : index
    %c0_78 = arith.constant 0 : index
    %142 = vector.load %arg7[%c0_75, %c0_76, %c0_77, %c0_78] : memref<1x16x16x128xf32, #tpu.memory_space<vmem>>, vector<1x16x16x128xf32>
    %143 = vector.shape_cast %142 : vector<1x16x16x128xf32> to vector<16x16x128xf32>
    %144 = vector.shape_cast %141 : vector<16x16x128xf32> to vector<1x16x16x128xf32>
    tpu.vector_store %arg7[%c0_75, %c0_76, %c0_77, %c0_78], %144 {strides = array<i32>} : memref<1x16x16x128xf32, #tpu.memory_space<vmem>>, vector<1x16x16x128xf32>,
    return
  }
  func.func @transform_0(%arg0: i32, %arg1: i32) -> (i32, i32, i32, i32) {
    %c0_i32 = arith.constant 0 : i32
    %c0_i32_0 = arith.constant 0 : i32
    %c0_i32_1 = arith.constant 0 : i32
    %c0_i32_2 = arith.constant 0 : i32
    return %arg0, %c0_i32, %c0_i32_0, %c0_i32_1 : i32, i32, i32, i32
  }
  func.func @transform_1(%arg0: i32, %arg1: i32) -> (i32, i32, i32) {
    %c0_i32 = arith.constant 0 : i32
    %c0_i32_0 = arith.constant 0 : i32
    %c0_i32_1 = arith.constant 0 : i32
    %c0_i32_2 = arith.constant 0 : i32
    return %c0_i32, %c0_i32_0, %c0_i32_1 : i32, i32, i32
  }
  func.func @transform_2(%arg0: i32, %arg1: i32) -> (i32, i32) {
    %c0_i32 = arith.constant 0 : i32
    %c0_i32_0 = arith.constant 0 : i32
    %c0_i32_1 = arith.constant 0 : i32
    return %c0_i32, %c0_i32_0 : i32, i32
  }
  func.func @transform_3(%arg0: i32, %arg1: i32) -> (i32, i32, i32) {
    %c0_i32 = arith.constant 0 : i32
    %c0_i32_0 = arith.constant 0 : i32
    %c0_i32_1 = arith.constant 0 : i32
    %c0_i32_2 = arith.constant 0 : i32
    return %c0_i32, %c0_i32_0, %c0_i32_1 : i32, i32, i32
  }
  func.func @transform_4(%arg0: i32, %arg1: i32) -> (i32, i32) {
    %c0_i32 = arith.constant 0 : i32
    %c0_i32_0 = arith.constant 0 : i32
    %c0_i32_1 = arith.constant 0 : i32
    return %c0_i32, %c0_i32_0 : i32, i32
  }
  func.func @transform_5(%arg0: i32, %arg1: i32) -> (i32, i32, i32, i32) {
    %c0_i32 = arith.constant 0 : i32
    %c0_i32_0 = arith.constant 0 : i32
    %c0_i32_1 = arith.constant 0 : i32
    return %arg0, %arg1, %c0_i32, %c0_i32_0 : i32, i32, i32, i32
  }
}

</mosaic_0001>

<bundles_post_ra>
// kernel: tpu_custom_call.1
= control target key start
LH: loop header
LB: loop body
LE: loop exit
PB: predicated region body
PF: predicated region fallthrough
CT: control target
= control target key end

     0   :  { %s8930_s0 = inlined_call_operand.hbm [shape: bf16[2,20,24,128], index: 0, kind: input, shape index: {}]   ;;  %s8931_s1 = inlined_call_operand.hbm [shape: bf16[9,128,128], index: 1, kind: input, shape index: {}]   ;;  %s8932_s2 = inlined_call_operand.vmem [shape: f32[1,128], index: 2, kind: input, shape index: {}]   ;;  %s8933_s3 = inlined_call_operand.hbm [shape: bf16[9,128,128], index: 3, kind: input, shape index: {}]   ;;  %s8934_s4 = inlined_call_operand.vmem [shape: f32[1,128], index: 4, kind: input, shape index: {}]   ;;  %s8935_s5 = inlined_call_operand.hbm [shape: f32[2,16,16,128], index: 5, kind: output, shape index: {}]  }
   0x1   :  { %9025 = sst [smem:[#allocation78_spill]] %s8931_s1 }
   0x2   :  { %9026 = sst [smem:[#allocation79_spill]] %s8933_s3 }
   0x3   :  { %10 = vsyncpa [#allocation3], 0 }
   0x4   :  { %12 = vsyncpa [#allocation3 + $0x1], 0 }
   0x5   :  { %13 = vsyncpa [#allocation6], 0 }
   0x6   :  { %14 = vsyncpa [#allocation4], 0 }
   0x7   :  { %16 = vsyncpa [#allocation4 + $0x1], 0  ;;  %s6821_s18 = smov 0   ;;  %s6823_s19 = smov 0  }
   0x8   :  { %s6825_s20 = smov 0   ;;  %s6827_s21 = smov 0  }
   0x9   :  { %s6829_s22 = smov 0   ;;  %s6831_s23 = smov 0  }
   0xa LB: > { %s5604_s24 = sadd.s32 4294967295, %s6783_s23   ;;  %s5605_s25 = sadd.s32 4294967294, %s6783_s23   ;;  %s6783_s23 = sphi %s6831_s23, %s22_s23   ;;  %s6779_s22 = sphi %s6829_s22, %s9346_s22   ;;  %s6775_s21 = sphi %s6827_s21, %s9345_s21   ;;  %s6771_s20 = sphi %s6825_s20, %s9344_s20   ;;  %s6767_s19 = sphi %s6823_s19, %s9343_s19   ;;  %s6763_s18 = sphi %s6821_s18, %s9342_s18  }
   0xb   : > { %p54_p0 = scmp.ne.s32.totalorder %s6767_s19, %s6763_s18  ;;  %p6855_p1 = scmp.eq.s32.totalorder %s5604_s24, 0 }
   0xc   : > { %p6859_p2 = scmp.eq.s32.totalorder %s5604_s24, 1  ;;  %p170_p3 = scmp.eq.s32.totalorder %s5605_s25, 1 }
   0xd   : > { %p6865_p4 = por %p6855_p1, %p54_p0  ;;  %p5606_p5 = scmp.ge.s32.totalorder %s6783_s23, 1 }
   0xe   : > { %p6870_p6 = por %p170_p3, %p54_p0  ;;  %p177_p7 = scmp.lt.s32.totalorder %s6783_s23, 3 }
   0xf   : > { %s9031_s1 = sld [smem:[#allocation78_spill]]  ;;  %s6785_s9 = smov [#allocation5]  }
  0x10   : > { %p6878_p8 = pnand %p5606_p5, %p177_p7  ;;  %s190_s10 = sshll.u32 %s6785_s9, 4  ;;  %s191_s10 = int_to_ptr.vmem [resolvable:$true] %s190_s10 }
  0x11   : > { %p5609_p11 = scmp.ge.s32.totalorder %s6783_s23, 2  ;;  %s9033_s3 = sld [smem:[#allocation79_spill]] }
  0x12   : > { %p6492_p9 = pneg %p6878_p8  ;;  %s8936_s14 = smov 64  }
  0x13   : > { %s8937_s15 = smov 4   ;;  %s6788_s16 = smov [#allocation7]  }
  0x14   : > { %p6493_p10 = pnand %p6492_p9, %p6855_p1  ;;  %s207_s17 = sshll.u32 %s6788_s16, 4  ;;  %s208_s17 = int_to_ptr.vmem [resolvable:$true] %s207_s17 }
  0x15   : > { %s188_s7 = sshll.u32 %s9031_s1, 4  ;;  %s34_s24 = sadd.s32 1, %s6779_s22  ;;  %s189_s7 = int_to_ptr.hbm [resolvable:$true] %s188_s7 }
  0x16   : > { %6495 = dma.hbm_to_vmem [thread:$0]  (!%p6493_p10), %s189_s7, 9216, %s191_s10, [#allocation6], %s8936_s14, %s8936_s14, %s8937_s15  }
  0x17   : > { %s205_s13 = sshll.u32 %s9033_s3, 4  ;;  %s41_s25 = sadd.s32 1, %s6771_s20  ;;  %s206_s13 = int_to_ptr.hbm [resolvable:$true] %s205_s13 }
  0x18   : > { %6498 = dma.hbm_to_vmem [thread:$0]  (!%p6493_p10), %s206_s13, 9216, %s208_s17, [#allocation6], %s8936_s14, %s8936_s14, %s8937_s15  }
  0x19   : > { %p36_p12 = scmp.ge.s32.totalorder %s34_s24, 2  ;;  %p48_p13 = scmp.ne.s32.totalorder %s6771_s20, %s6767_s19 }
  0x1a   : > { %p49_p0 = scmp.eq.s32.totalorder %s6783_s23, 0  ;;  %p6509_p3 = scmp.lt.s32.totalorder %s6783_s23, 2 }
  0x1b   : > { %s9348_s24 = smov (%p36_p12, %s34_s24), 0  ;;  %p6906_p7 = por %p6859_p2, %p48_p13 }
  0x1c   : > { %p50_p5 = por %p49_p0, %p48_p13  ;;  %s38_s6 = ssub.s32 %s6779_s22, %s9348_s24 }
  0x1d   : > { %s224_s7 = sand.u32 1, %s6771_s20   ;;  %p39_p9 = scmp.eq.s32.totalorder %s38_s6, 0 }
  0x1e   : > { %s6477_s9 = smul.u32 240, %s224_s7  ;;  %p6500_p10 = pnand %p6509_p3, %p50_p5 }
  0x1f   : > { %s6914_s10 = scalar_select %p39_p9, %s6771_s20, %s41_s25  }
  0x20   : > { %s6478_s11 = smul.u32 240, %s6779_s22  ;;  %s228_s12 = scalar_lea.vmem [#allocation2], %s6477_s9 }
  0x21   : > { %s236_s13 = sshll.u32 %s228_s12, 4  ;;  %s225_s15 = scalar_lea.sflag [#allocation3], %s224_s7  ;;  %s237_s13 = int_to_ptr.vmem [resolvable:$true] %s236_s13 }
  0x22   : > { %s233_s14 = scalar_lea.hbm %s8930_s0, %s6478_s11  ;;  %s9035_s1 = smov 4  }
  0x23   : > { %s234_s27 = sshll.u32 %s233_s14, 4  ;;  %s9036_s3 = smov 64   ;;  %s235_s27 = int_to_ptr.hbm [resolvable:$true] %s234_s27 }
  0x24   : > { %6502 = dma.hbm_to_vmem [thread:$0]  (!%p6500_p10), %s235_s27, 3840, %s237_s13, %s225_s15, %s9036_s3, %s9036_s3, %s9035_s1  }
  0x25   : > { %248 = sbr.rel (%p6878_p8) target bundleno = 1829 (0x725), region = 40 }
  0x2a   : > { %s6926_s25 = sand.u32 1, %s6767_s19  }
  0x2b   : > { %s6479_s6 = smul.u32 240, %s6926_s25  ;;  %s251_s9 = scalar_lea.sflag [#allocation3], %s6926_s25 }
  0x2d   : > { %s6930_s11 = scalar_lea.vmem [#allocation2], %s6479_s6 }
  0x2e   : > { %6750 = dma.done.wait (%p6865_p4), %s251_s9, 3840  }
  0x2f   : > { %6752 = vsyncadd (%p6865_p4), %s251_s9, 4294963456 }
  0x30   : > { %6754 = dma.done.wait (%p6855_p1), [#allocation6], 18432  }
  0x31   : > { %6756 = vsyncadd (%p6855_p1), [#allocation6], 4294948864  ;;  %v6331_v0 = vld [vmem:[#allocation5 + $0x78] sm:$0xff]  ;;  %v6330_v2 = vld [vmem:[#allocation5 + $0x70] sm:$0xff]  ;;  %vm374_vm0 = vsmask.f32 3328 }
  0x32   : > { %v6323_v1 = vld [vmem:[#allocation5 + $0x38] sm:$0xff]  ;;  %946 = vmatpush.bf16.msra.mxu0 %v6331_v0  ;;  %v6322_v3 = vld [vmem:[#allocation5 + $0x30] sm:$0xff]  ;;  %v6329_v6 = vld [vmem:[#allocation5 + $0x68] sm:$0xff]  ;;  %vm375_vm1 = vsmask.f32 7440  ;;  %v9037_v31 = vmov 0 }
  0x33   : > { %1201 = vmatpush.bf16.msra.mxu1 %v6323_v1  ;;  %6461 = vmatpush.bf16.msra.mxu3 %v6323_v1  ;;  %v298_v4 = vld [vmem:[%s6930_s11] sm:$0xf]  ;;  %v299_v5 = vld [vmem:[%s6930_s11 + $0x4] sm:$0xf]  ;;  %v6321_v7 = vld [vmem:[#allocation5 + $0x28] sm:$0xff]  ;;  %vm1318_vm3 = vcmask 1042432  }
  0x34   : > { %v378_v8 = vshrl.u32 %v298_v4, 16  ;;  %v381_v9 = vshll.u32 %v298_v4, 16  ;;  %v387_v10 = vshll.u32 %v299_v5, 16  ;;  %v391_v11 = vshrl.u32 %v299_v5, 16  ;;  %v6942_v12 = vld [vmem:[#allocation5 + $0xb8] sm:$0xff]  ;;  %v6328_v13 = vld [vmem:[#allocation5 + $0x60] sm:$0xff]  ;;  %vm6947_vm2 = vmor %vm374_vm0, %vm375_vm1 }
  0x35   : > { %v6320_v14 = vld [vmem:[#allocation5 + $0x20] sm:$0xff]  ;;  %6469 = vmatpush.bf16.msra.mxu2 %v6942_v12  ;;  %v300_v19 = vld [vmem:[%s6930_s11 + $0x8] sm:$0xf]  ;;  %v6326_v25 = vld [vmem:[#allocation5 + $0x50] sm:$0xff]  ;;  %v9038_v31 = vsel %vm6947_vm2, 4294967295, %v9037_v31  ;;  %vm1319_vm4 = vcmask 1046532  }
  0x36   : > { %947 = vmatpush.bf16.msra.mxu0 %v6330_v2  ;;  %v380_v15 = vrot.slane %v378_v8, 4  ;;  %v383_v16 = vrot.slane %v381_v9, 5  ;;  %v389_v17 = vrot.slane %v387_v10, 5  ;;  %v393_v18 = vrot.slane %v391_v11, 4  ;;  %v6327_v20 = vld [vmem:[#allocation5 + $0x58] sm:$0xff]  ;;  %v6318_v26 = vld [vmem:[#allocation5 + $0x10] sm:$0xff]  ;;  %vm7035_vm5 = vmor %vm1318_vm3, %vm1319_vm4 }
  0x37   : > { %1202 = vmatpush.bf16.msra.mxu1 %v6322_v3  ;;  %6462 = vmatpush.bf16.msra.mxu3 %v6322_v3  ;;  %v6319_v21 = vld [vmem:[#allocation5 + $0x18] sm:$0xff]  ;;  %v397_v24 = vshll.u32 %v300_v19, 16  ;;  %9039 = vst [vmem:[#allocation12_spill] sm:$0xff] %v9038_v31  ;;  %v302_v32 = vld [vmem:[%s6930_s11 + $0x10] sm:$0xf]  ;;  %v6325_v35 = vld [vmem:[#allocation5 + $0x48] sm:$0xff] }
  0x38   : > { %v384_v22 = vor.u32 %v383_v16, %v380_v15  ;;  %v394_v23 = vor.u32 %v393_v18, %v389_v17  ;;  %v301_v30 = vld [vmem:[%s6930_s11 + $0xc] sm:$0xf]  ;;  %v411_v39 = vshll.u32 %v302_v32, 16  ;;  %v415_v40 = vshrl.u32 %v302_v32, 16  ;;  %v6324_v43 = vld [vmem:[#allocation5 + $0x40] sm:$0xff]  ;;  %v6338_v61 = vld [vmem:[#allocation5 + $0xb0] sm:$0xff] }
  0x39   : > { %v399_v29 = vrot.slane %v397_v24, 5  ;;  %v402_v33 = vshrl.u32 %v301_v30, 16  ;;  %v405_v34 = vshll.u32 %v301_v30, 16  ;;  %v6317_v36 = vld [vmem:[#allocation5 + $0x8] sm:$0xff]  ;;  %v6316_v44 = vld [vmem:[#allocation5] sm:$0xff]  ;;  %6470 = vmatpush.bf16.msra.mxu2 %v6338_v61  ;;  %vm3388_vm6 = vcmask 1040384  }
  0x3a   : > { %948 = vmatpush.bf16.msra.mxu0 %v6329_v6  ;;  %v385_v27 = vrot.slane %v384_v22, 4  ;;  %v395_v28 = vrot.slane %v394_v23, 4  ;;  %v413_v47 = vrot.slane %v411_v39, 5  ;;  %v417_v48 = vrot.slane %v415_v40, 4  ;;  %v303_v49 = vld [vmem:[%s6930_s11 + $0x14] sm:$0xf] }
  0x3b   : > { %1203 = vmatpush.bf16.msra.mxu1 %v6321_v7  ;;  %6463 = vmatpush.bf16.msra.mxu3 %v6321_v7  ;;  %v404_v45 = vrot.slane %v402_v33, 4  ;;  %v407_v46 = vrot.slane %v405_v34, 5  ;;  %v6296_v51 = vld [vmem:[%s6930_s11] sm:$0xff]  ;;  %v421_v55 = vshll.u32 %v303_v49, 16  ;;  %v304_v56 = vld [vmem:[%s6930_s11 + $0x18] sm:$0xf] }
  0x3c   : > { %v390_v37 = vsel %vm6947_vm2, %v385_v27, %v389_v17  ;;  %v400_v38 = vsel %vm6947_vm2, %v395_v28, %v399_v29  ;;  %v6307_v52 = vld [vmem:[%s6930_s11 + $0x84] sm:$0xff]  ;;  %v418_v54 = vor.u32 %v417_v48, %v413_v47  ;;  %v305_v57 = vld [vmem:[%s6930_s11 + $0x1c] sm:$0xf]  ;;  %v426_v62 = vshrl.u32 %v304_v56, 16  ;;  %v306_v10 = vld [vmem:[%s6930_s11 + $0x20] sm:$0xf] }
  0x3d   : > { %v826_v41 = vunpack.c.l.b16 %v390_v37  ;;  %v827_v42 = vunpack.c.l.b16 %v400_v38  ;;  %v408_v53 = vor.u32 %v407_v46, %v404_v45  ;;  %v423_v60 = vrot.slane %v421_v55, 5  ;;  %v6970_v15 = vld [vmem:[%s6930_s11 + $0xc] sm:$0xff]  ;;  %v6985_v37 = vld [vmem:[%s6930_s11 + $0x18] sm:$0xff]  ;;  %s5614_s15 = sshll.u32 %s6926_s25, 8  ;;  %s6460_s12 = sshll.u32 %s6775_s21, 8 }
  0x3e   : > { %949 = vmatpush.bf16.msra.mxu0 %v6328_v13  ;;  %v419_v59 = vrot.slane %v418_v54, 4  ;;  %v429_v63 = vshll.u32 %v304_v56, 16  ;;  %v435_v0 = vshll.u32 %v305_v57, 16  ;;  %v439_v1 = vshrl.u32 %v305_v57, 16  ;;  %v6308_v16 = vld [vmem:[%s6930_s11 + $0x90] sm:$0xff]  ;;  %v6337_v45 = vld [vmem:[#allocation5 + $0xa8] sm:$0xff]  ;;  %s5495_s17 = scalar_lea.hbm %s8935_s5, %s6460_s12 }
  0x3f   : > { %1204 = vmatpush.bf16.msra.mxu1 %v6320_v14  ;;  %6464 = vmatpush.bf16.msra.mxu3 %v6320_v14  ;;  %v862_v50 = vpack.c.b16 %v827_v42, %v826_v41  ;;  %v409_v58 = vrot.slane %v408_v53, 4  ;;  %v428_v4 = vrot.slane %v426_v62, 4  ;;  %v445_v13 = vshll.u32 %v306_v10, 16  ;;  %v6309_v41 = vld [vmem:[%s6930_s11 + $0x9c] sm:$0xff]  ;;  %v310_v46 = vld [vmem:[%s6930_s11 + $0x30] sm:$0xf] }
  0x40   : > { %v424_v3 = vsel %vm6947_vm2, %v419_v59, %v423_v60  ;;  %v431_v5 = vrot.slane %v429_v63, 5  ;;  %v437_v6 = vrot.slane %v435_v0, 5  ;;  %v441_v7 = vrot.slane %v439_v1, 4  ;;  %6471 = vmatpush.bf16.msra.mxu2 %v6337_v45  ;;  %v312_v60 = vld [vmem:[%s6930_s11 + $0x38] sm:$0xf]  ;;  %v7000_v62 = vld [vmem:[%s6930_s11 + $0x24] sm:$0xff] }
  0x41   : > { %v414_v2 = vsel %vm6947_vm2, %v409_v58, %v413_v47  ;;  %v829_v9 = vunpack.c.l.b16 %v424_v3  ;;  %v447_v19 = vrot.slane %v445_v13, 5  ;;  %v311_v47 = vld [vmem:[%s6930_s11 + $0x34] sm:$0xf]  ;;  %v6310_v63 = vld [vmem:[%s6930_s11 + $0xa8] sm:$0xff]  ;;  %v313_v3 = vld [vmem:[%s6930_s11 + $0x3c] sm:$0xf] }
  0x42   : > { %950 = vmatpush.bf16.msra.mxu0 %v6327_v20  ;;  %v828_v8 = vunpack.c.l.b16 %v414_v2  ;;  %v432_v11 = vor.u32 %v431_v5, %v428_v4  ;;  %v307_v20 = vld [vmem:[%s6930_s11 + $0x24] sm:$0xf]  ;;  %v487_v53 = vshrl.u32 %v311_v47, 16  ;;  %v493_v2 = vshll.u32 %v312_v60, 16  ;;  %v314_v4 = vld [vmem:[%s6930_s11 + $0x40] sm:$0xf] }
  0x43   : > { %1205 = vmatpush.bf16.msra.mxu1 %v6319_v21  ;;  %6465 = vmatpush.bf16.msra.mxu3 %v6319_v21  ;;  %v308_v21 = vld [vmem:[%s6930_s11 + $0x28] sm:$0xf]  ;;  %v450_v24 = vshrl.u32 %v307_v20, 16  ;;  %v498_v10 = vshrl.u32 %v313_v3, 16  ;;  %v507_v13 = vshll.u32 %v314_v4, 16  ;;  %vm3975_vm9 = vcmask 1046528  }
  0x44   : > { %v6967_v14 = vpack.c.b16 %v829_v9, %v828_v8  ;;  %v433_v17 = vrot.slane %v432_v11, 4  ;;  %v463_v27 = vshrl.u32 %v308_v21, 16  ;;  %v489_v59 = vrot.slane %v487_v53, 4  ;;  %v6347_v5 = vld [vmem:[#allocation5 + $0xf8] sm:$0xff]  ;;  %v6336_v9 = vld [vmem:[#allocation5 + $0xa0] sm:$0xff]  ;;  %s8764_s7 = scalar_lea.vmem [#allocation8], %s5614_s15 }
  0x45   : > { %v452_v30 = vrot.slane %v450_v24, 4  ;;  %v495_v8 = vrot.slane %v493_v2, 5  ;;  %v501_v11 = vshll.u32 %v313_v3, 16  ;;  %6472 = vmatpush.bf16.msra.mxu2 %v6336_v9  ;;  %v9040_v53 = vmov 0  ;;  %s5496_s27 = sshll.u32 %s8764_s7, 4  ;;  %s5498_s6 = sshll.u32 %s5495_s17, 4  ;;  %s5497_s27 = int_to_ptr.vmem [resolvable:$true] %s5496_s27  ;;  %s5499_s6 = int_to_ptr.hbm [resolvable:$true] %s5498_s6 }
  0x46   : > { %951 = vmatpush.bf16.msra.mxu0 %v6326_v25  ;;  %v438_v22 = vsel %vm6947_vm2, %v433_v17, %v437_v6  ;;  %v453_v25 = vshll.u32 %v307_v20, 16  ;;  %v465_v34 = vrot.slane %v463_v27, 4  ;;  %v6335_v17 = vld [vmem:[#allocation5 + $0x98] sm:$0xff]  ;;  %v500_v20 = vrot.slane %v498_v10, 4  ;;  %v315_v27 = vld [vmem:[%s6930_s11 + $0x44] sm:$0xf] }
  0x47   : > { %1206 = vmatpush.bf16.msra.mxu1 %v6318_v26  ;;  %6466 = vmatpush.bf16.msra.mxu3 %v6318_v26  ;;  %v459_v26 = vshll.u32 %v308_v21, 16  ;;  %v830_v28 = vunpack.c.l.b16 %v438_v22  ;;  %v503_v21 = vrot.slane %v501_v11, 5  ;;  %v6345_v22 = vld [vmem:[#allocation5 + $0xe8] sm:$0xff]  ;;  %v9041_v53 = vsel %vm7035_vm5, 4294967295, %v9040_v53  ;;  %v318_v11 = vld [vmem:[%s6930_s11 + $0x50] sm:$0xf] }
  0x48   : > { %v455_v32 = vrot.slane %v453_v25, 5  ;;  %9042 = vst [vmem:[#allocation13_spill] sm:$0xff] %v9041_v53  ;;  %vm3389_vm7 = vsmask.f32 256  ;;  %vm3443_vm10 = vsmask.f32 7424 }
  0x49   : > { %v461_v33 = vrot.slane %v459_v26, 5  ;;  %6473 = vmatpush.bf16.msra.mxu2 %v6335_v17  ;;  %vm8054_vm8 = vmand %vm3388_vm6, %vm3389_vm7  ;;  %s5481_s21 = scalar_lea.sflag [#allocation4], %s6926_s25  ;;  %s6711_s9 = sshra.s32 %s5499_s6, 4  ;;  %s6712_s9 = int_to_ptr.hbm [resolvable:$true] %s6711_s9 }
  0x4a   : > { %952 = vmatpush.bf16.msra.mxu0 %v6325_v35  ;;  %v309_v35 = vld [vmem:[%s6930_s11 + $0x2c] sm:$0xf]  ;;  %v456_v38 = vor.u32 %v455_v32, %v452_v30  ;;  %v517_v32 = vshll.u32 %v315_v27, 16  ;;  %v7061_v27 = vld [vmem:[%s6930_s11 + $0x68] sm:$0xf]  ;;  %s6717_s26 = scalar_lea.hbm %s8935_s5, 512  ;;  %p6718_p8 = scmp.lt.s32.totalorder %s6712_s9, %s8935_s5 }
  0x4b   : > { %1207 = vmatpush.bf16.msra.mxu1 %v6317_v36  ;;  %6467 = vmatpush.bf16.msra.mxu3 %v6317_v36  ;;  %v466_v39 = vor.u32 %v465_v34, %v461_v33  ;;  %v469_v40 = vshll.u32 %v309_v35, 16  ;;  %v7015_v34 = vld [vmem:[%s6930_s11 + $0x30] sm:$0xff] }
  0x4c   : > { %v457_v42 = vrot.slane %v456_v38, 4  ;;  %v6311_v35 = vld [vmem:[%s6930_s11 + $0xb4] sm:$0xff] }
  0x4e   : > { %953 = vmatpush.bf16.msra.mxu0 %v6324_v43  ;;  %v467_v43 = vrot.slane %v466_v39, 4  ;;  %v462_v48 = vsel %vm6947_vm2, %v457_v42, %v461_v33  ;;  %v6334_v42 = vld [vmem:[#allocation5 + $0x90] sm:$0xff] }
  0x4f   : > { %1208 = vmatpush.bf16.msra.mxu1 %v6316_v44  ;;  %6468 = vmatpush.bf16.msra.mxu3 %v6316_v44  ;;  %v471_v44 = vrot.slane %v469_v40, 5  ;;  %v832_v54 = vunpack.c.l.b16 %v462_v48  ;;  %v519_v40 = vrot.slane %v517_v32, 5  ;;  %v7025_v48 = vld [vmem:[%s6930_s11 + $0x54] sm:$0xf] }
  0x50   : > { %6474 = vmatpush.bf16.msra.mxu2 %v6334_v42  ;;  %v546_v32 = vshrl.u32 %v7025_v48, 16 }
  0x51   : > { %954 = vmatmul.bf16.vlgmr.msra.gmra.mxu0 %v862_v50  ;;  %v472_v49 = vsel %vm6947_vm2, %v467_v43, %v471_v44  ;;  %v474_v50 = vshrl.u32 %v310_v46, 16  ;;  %v6343_v43 = vld [vmem:[#allocation5 + $0xd8] sm:$0xff] }
  0x52   : > { %1584 = vmatpush.bf16.msrb.mxu0 %v6942_v12  ;;  %1209 = vmatmul.bf16.vlgmr.msra.gmra.mxu1 %v6296_v51  ;;  %v442_v12 = vor.u32 %v441_v7, %v437_v6  ;;  %v477_v51 = vshll.u32 %v310_v46, 16  ;;  %v833_v55 = vunpack.c.l.b16 %v472_v49  ;;  %v317_v44 = vld [vmem:[%s6930_s11 + $0x4c] sm:$0xf]  ;;  %v7028_v49 = vld [vmem:[%s6930_s11 + $0x58] sm:$0xf] }
  0x53   : > { %1264 = vmatmul.bf16.vlgmr.msra.gmra.mxu3 %v6307_v52  ;;  %v483_v52 = vshll.u32 %v311_v47, 16  ;;  %v476_v56 = vrot.slane %v474_v50, 4  ;;  %v6342_v47 = vld [vmem:[#allocation5 + $0xd0] sm:$0xff] }
  0x54   : > { %v443_v18 = vrot.slane %v442_v12, 4  ;;  %v479_v57 = vrot.slane %v477_v51, 5  ;;  %1790 = vmatpush.bf16.msrb.mxu3 %v6347_v5  ;;  %v6346_v12 = vld [vmem:[#allocation5 + $0xf0] sm:$0xff] }
  0x55   : > { %v485_v58 = vrot.slane %v483_v52, 5  ;;  %v7033_v52 = vld [vmem:[%s6930_s11 + $0x5c] sm:$0xf] }
  0x56   : > { %1585 = vmatpush.bf16.msrb.mxu0 %v6338_v61  ;;  %v448_v23 = vsel %vm6947_vm2, %v443_v18, %v447_v19  ;;  %v6997_v61 = vpack.c.b16 %v833_v55, %v832_v54  ;;  %v480_v0 = vor.u32 %v479_v57, %v476_v56  ;;  %v5758_v54 = vrot.slane %v7025_v48, 9 }
  0x57   : > { %v831_v29 = vunpack.c.l.b16 %v448_v23  ;;  %v490_v1 = vor.u32 %v489_v59, %v485_v58  ;;  %v509_v23 = vrot.slane %v507_v13, 5  ;;  %v1372_v55 = vrot.slane %v7028_v49, 5  ;;  %v6340_v13 = vld [vmem:[#allocation5 + $0xc0] sm:$0xff] }
  0x58   : > { %v481_v6 = vrot.slane %v480_v0, 4  ;;  %1791 = vmatpush.bf16.msrb.mxu3 %v6346_v12  ;;  %v531_v57 = vshll.u32 %v317_v44, 16  ;;  %v1375_v59 = vrot.slane %v7033_v52, 5  ;;  %v6332_v0 = vld [vmem:[#allocation5 + $0x80] sm:$0xff] }
  0x59   : > { %v6982_v36 = vpack.c.b16 %v831_v29, %v830_v28  ;;  %v491_v7 = vrot.slane %v490_v1, 4  ;;  %v504_v28 = vor.u32 %v503_v21, %v500_v20  ;;  %v6344_v29 = vld [vmem:[#allocation5 + $0xe0] sm:$0xff]  ;;  %v1373_v60 = vsel %vm7035_vm5, %v5758_v54, %v1372_v55  ;;  %v6341_v1 = vld [vmem:[#allocation5 + $0xc8] sm:$0xff] }
  0x5a   : > { %1586 = vmatpush.bf16.msrb.mxu0 %v6337_v45  ;;  %v486_v18 = vsel %vm6947_vm2, %v481_v6, %v485_v58  ;;  %v6333_v45 = vld [vmem:[#allocation5 + $0x88] sm:$0xff]  ;;  %v535_v58 = vshrl.u32 %v317_v44, 16  ;;  %v1478_v2 = vunpack.c.l.b16 %v1373_v60  ;;  %v541_v20 = vshll.u32 %v318_v11, 16  ;;  %v6312_v21 = vld [vmem:[%s6930_s11 + $0xc0] sm:$0xff]  ;;  %v7095_v11 = vld [vmem:[%s6930_s11 + $0x74] sm:$0xf] }
  0x5b   : > { %v496_v19 = vsel %vm6947_vm2, %v491_v7, %v495_v8  ;;  %v834_v25 = vunpack.c.l.b16 %v486_v18  ;;  %v505_v38 = vrot.slane %v504_v28, 4  ;;  %6475 = vmatpush.bf16.msra.mxu2 %v6333_v45  ;;  %v533_v8 = vrot.slane %v531_v57, 5 }
  0x5c   : > { %v835_v26 = vunpack.c.l.b16 %v496_v19  ;;  %1792 = vmatpush.bf16.msrb.mxu3 %v6345_v22  ;;  %v565_v60 = vshll.u32 %v7033_v52, 16 }
  0x5d   : > { %v510_v46 = vsel %vm6947_vm2, %v505_v38, %v509_v23  ;;  %v555_v38 = vshll.u32 %v7028_v49, 16 }
  0x5e   : > { %1587 = vmatpush.bf16.msrb.mxu0 %v6336_v9  ;;  %v7012_v33 = vpack.c.b16 %v835_v26, %v834_v25  ;;  %v836_v3 = vunpack.c.l.b16 %v510_v46  ;;  %v537_v9 = vrot.slane %v535_v58, 4  ;;  %v322_v25 = vld [vmem:[%s6930_s11 + $0x60] sm:$0xf]  ;;  %v323_v26 = vld [vmem:[%s6930_s11 + $0x64] sm:$0xf]  ;;  %v548_v46 = vrot.slane %v546_v32, 4 }
  0x5f   : > { %6476 = vmatpush.bf16.msra.mxu2 %v6332_v0  ;;  %v5759_v28 = vrot.slane %v322_v25, 9  ;;  %v7081_v58 = vld [vmem:[%s6930_s11 + $0x48] sm:$0xff] }
  0x60   : > { %1793 = vmatpush.bf16.msrb.mxu3 %v6344_v29  ;;  %v538_v19 = vor.u32 %v537_v9, %v533_v8  ;;  %v1379_v29 = vrot.slane %v323_v26, 5 }
  0x61   : > { %959 = vmatmul.bf16.gmra.mxu0 %v6967_v14 }
  0x62   : > { %1214 = vmatmul.bf16.gmra.mxu1 %v6970_v15  ;;  %1588 = vmatpush.bf16.msrb.mxu0 %v6335_v17  ;;  %v7052_v17 = vld [vmem:[%s6930_s11 + $0x3c] sm:$0xff] }
  0x63   : > { %1269 = vmatmul.bf16.gmra.mxu3 %v6308_v16  ;;  %v511_v16 = vshrl.u32 %v314_v4, 16 }
  0x64   : > { %1794 = vmatpush.bf16.msrb.mxu3 %v6343_v43 }
  0x65   : > { %v513_v24 = vrot.slane %v511_v16, 4 }
  0x66   : > { %1589 = vmatpush.bf16.msrb.mxu0 %v6334_v42 }
  0x67   : > { %v514_v30 = vor.u32 %v513_v24, %v509_v23  ;;  %v539_v23 = vrot.slane %v538_v19, 4  ;;  %v543_v24 = vrot.slane %v541_v20, 5  ;;  %v1389_v19 = vrot.slane %v7095_v11, 5 }
  0x68   : > { %1795 = vmatpush.bf16.msrb.mxu3 %v6342_v47 }
  0x69   : > { %v515_v39 = vrot.slane %v514_v30, 4  ;;  %v1382_v30 = vrot.slane %v7061_v27, 5  ;;  %v544_v43 = vsel %vm6947_vm2, %v539_v23, %v543_v24 }
  0x6a   : > { %1590 = vmatpush.bf16.msrb.mxu0 %v6333_v45 }
  0x6b   : > { %v520_v50 = vsel %vm6947_vm2, %v515_v39, %v519_v40  ;;  %v559_v39 = vshrl.u32 %v7028_v49, 16  ;;  %v1380_v40 = vsel %vm7035_vm5, %v5759_v28, %v1379_v29 }
  0x6c   : > { %v837_v4 = vunpack.c.l.b16 %v520_v50  ;;  %1796 = vmatpush.bf16.msrb.mxu3 %v6341_v1  ;;  %v1480_v44 = vunpack.c.l.b16 %v1380_v40  ;;  %v839_v50 = vunpack.c.l.b16 %v544_v43 }
  0x6d   : > { %v561_v54 = vrot.slane %v559_v39, 4  ;;  %v7107_v39 = vld [vmem:[%s6930_s11 + $0x54] sm:$0xff] }
  0x6e   : > { %1591 = vmatpush.bf16.msrb.mxu0 %v6332_v0  ;;  %v7049_v16 = vpack.c.b16 %v837_v4, %v836_v3  ;;  %v570_v4 = vshrl.u32 %v322_v25, 16 }
  0x70   : > { %1797 = vmatpush.bf16.msrb.mxu3 %v6340_v13 }
  0x71   : > { %964 = vmatmul.bf16.gmra.mxu0 %v6982_v36 }
  0x72   : > { %1219 = vmatmul.bf16.gmra.mxu1 %v6985_v37 }
  0x73   : > { %1274 = vmatmul.bf16.gmra.mxu3 %v6309_v41  ;;  %v316_v41 = vld [vmem:[%s6930_s11 + $0x48] sm:$0xf] }
  0x74   : > { %v522_v51 = vshrl.u32 %v316_v41, 16  ;;  %v525_v56 = vshll.u32 %v316_v41, 16  ;;  %v1381_v41 = vrot.slane %v1379_v29, 4 }
  0x76   : > { %v524_v5 = vrot.slane %v522_v51, 4  ;;  %v527_v7 = vrot.slane %v525_v56, 5  ;;  %v1383_v45 = vsel %vm7035_vm5, %v1381_v41, %v1382_v30  ;;  %v557_v51 = vrot.slane %v555_v38, 5 }
  0x77   : > { %v589_v41 = vshll.u32 %v7061_v27, 16 }
  0x78   : > { %v528_v18 = vor.u32 %v527_v7, %v524_v5  ;;  %v573_v5 = vshll.u32 %v322_v25, 16  ;;  %v579_v7 = vshll.u32 %v323_v26, 16 }
  0x7a   : > { %v529_v22 = vrot.slane %v528_v18, 4  ;;  %v575_v23 = vrot.slane %v573_v5, 5  ;;  %v581_v24 = vrot.slane %v579_v7, 5 }
  0x7c   : > { %v534_v42 = vsel %vm6947_vm2, %v529_v22, %v533_v8  ;;  %v583_v8 = vshrl.u32 %v323_v26, 16  ;;  %v572_v22 = vrot.slane %v570_v4, 4 }
  0x7d   : > { %v838_v49 = vunpack.c.l.b16 %v534_v42 }
  0x7e   : > { %v585_v25 = vrot.slane %v583_v8, 4  ;;  %v576_v32 = vor.u32 %v575_v23, %v572_v22 }
  0x7f   : > { %v7078_v57 = vpack.c.b16 %v839_v50, %v838_v49 }
  0x80   : > { %v586_v40 = vor.u32 %v585_v25, %v581_v24  ;;  %v577_v42 = vrot.slane %v576_v32, 4 }
  0x81   : > { %969 = vmatmul.bf16.gmra.mxu0 %v6997_v61  ;;  %9045 = vst [vmem:[#allocation16_spill] sm:$0xff] %v7078_v57 }
  0x82   : > { %1224 = vmatmul.bf16.gmra.mxu1 %v7000_v62  ;;  %v587_v43 = vrot.slane %v586_v40, 4 }
  0x83   : > { %1279 = vmatmul.bf16.gmra.mxu3 %v6310_v63  ;;  %v1374_v63 = vrot.slane %v1372_v55, 4 }
  0x85   : > { %v1376_v6 = vsel %vm7035_vm5, %v1374_v63, %v1375_v59  ;;  %v562_v59 = vor.u32 %v561_v54, %v557_v51  ;;  %v6313_v63 = vld [vmem:[%s6930_s11 + $0xcc] sm:$0xff]  ;;  %v328_v54 = vld [vmem:[%s6930_s11 + $0x78] sm:$0xf] }
  0x86   : > { %v1479_v10 = vunpack.c.l.b16 %v1376_v6  ;;  %v326_v6 = vld [vmem:[%s6930_s11 + $0x70] sm:$0xf] }
  0x87   : > { %v563_v1 = vrot.slane %v562_v59, 4  ;;  %v1386_v9 = vrot.slane %v326_v6, 5  ;;  %v603_v49 = vshll.u32 %v326_v6, 16  ;;  %v607_v50 = vshrl.u32 %v326_v6, 16 }
  0x88   : > { %v7047_v12 = vpack.c.b16 %v1479_v10, %v1478_v2  ;;  %v567_v2 = vrot.slane %v565_v60, 5  ;;  %v325_v10 = vld [vmem:[%s6930_s11 + $0x6c] sm:$0xf]  ;;  %v5761_v59 = vrot.slane %v328_v54, 9 }
  0x89   : > { %v5760_v13 = vrot.slane %v325_v10, 9  ;;  %v1388_v18 = vrot.slane %v1386_v9, 4  ;;  %v609_v4 = vrot.slane %v607_v50, 4 }
  0x8a   : > { %9043 = vst [vmem:[#allocation14_spill] sm:$0xff] %v7047_v12  ;;  %1627 = vmatmul.bf16.vlgmr.msra.gmra.mxu2 %v7047_v12  ;;  %v568_v52 = vsel %vm6947_vm2, %v563_v1, %v567_v2 }
  0x8b   : > { %v1387_v28 = vsel %vm7035_vm5, %v5760_v13, %v1386_v9  ;;  %v1390_v26 = vsel %vm7035_vm5, %v1388_v18, %v1389_v19  ;;  %v7133_v13 = vld [vmem:[%s6930_s11 + $0x60] sm:$0xff]  ;;  %v613_v19 = vshll.u32 %v7095_v11, 16 }
  0x8c   : > { %v1482_v29 = vunpack.c.l.b16 %v1387_v28  ;;  %v1483_v30 = vunpack.c.l.b16 %v1390_v26  ;;  %v618_v28 = vshrl.u32 %v328_v54, 16  ;;  %v621_v26 = vshll.u32 %v328_v54, 16 }
  0x8d   : > { %v615_v25 = vrot.slane %v613_v19, 5 }
  0x8e   : > { %v623_v54 = vrot.slane %v621_v26, 5 }
  0x91   : > { %974 = vmatmul.bf16.gmra.mxu0 %v7012_v33 }
  0x92   : > { %1229 = vmatmul.bf16.gmra.mxu1 %v7015_v34 }
  0x93   : > { %1284 = vmatmul.bf16.gmra.mxu3 %v6311_v35  ;;  %v549_v35 = vshll.u32 %v7025_v48, 16  ;;  %v1481_v48 = vunpack.c.l.b16 %v1383_v45  ;;  %v582_v45 = vsel %vm6947_vm2, %v577_v42, %v581_v24 }
  0x95   : > { %v551_v47 = vrot.slane %v549_v35, 5  ;;  %v7076_v55 = vpack.c.b16 %v1481_v48, %v1480_v44  ;;  %v7102_v35 = vpack.c.b16 %v1483_v30, %v1482_v29  ;;  %v591_v44 = vrot.slane %v589_v41, 5  ;;  %v329_v48 = vld [vmem:[%s6930_s11 + $0x7c] sm:$0xf]  ;;  %v332_v29 = vld [vmem:[%s6930_s11 + $0x88] sm:$0xf] }
  0x96   : > { %v627_v40 = vshll.u32 %v329_v48, 16  ;;  %v631_v41 = vshrl.u32 %v329_v48, 16  ;;  %v1400_v42 = vrot.slane %v332_v29, 5  ;;  %v651_v26 = vshll.u32 %v332_v29, 16 }
  0x97   : > { %9044 = vst [vmem:[#allocation15_spill] sm:$0xff] %v7076_v55  ;;  %v552_v56 = vor.u32 %v551_v47, %v548_v46  ;;  %v594_v46 = vshrl.u32 %v325_v10, 16  ;;  %v597_v47 = vshll.u32 %v325_v10, 16  ;;  %v592_v27 = vsel %vm6947_vm2, %v587_v43, %v591_v44 }
  0x98   : > { %9046 = vst [vmem:[#allocation17_spill] sm:$0xff] %v7102_v35 }
  0x99   : > { %v553_v0 = vrot.slane %v552_v56, 4  ;;  %v7121_v56 = vld [vmem:[%s6930_s11 + $0x80] sm:$0xf]  ;;  %v596_v1 = vrot.slane %v594_v46, 4  ;;  %v599_v2 = vrot.slane %v597_v47, 5  ;;  %v1402_v47 = vrot.slane %v1400_v42, 4 }
  0x9a   : > { %1632 = vmatmul.bf16.gmra.mxu2 %v7076_v55 }
  0x9b   : > { %v558_v3 = vsel %vm6947_vm2, %v553_v0, %v557_v51  ;;  %v1393_v51 = vrot.slane %v329_v48, 5  ;;  %v843_v0 = vunpack.c.l.b16 %v592_v27  ;;  %v600_v8 = vor.u32 %v599_v2, %v596_v1 }
  0x9c   : > { %v840_v20 = vunpack.c.l.b16 %v558_v3  ;;  %v605_v3 = vrot.slane %v603_v49, 5 }
  0x9d   : > { %v1395_v60 = vrot.slane %v1393_v51, 4  ;;  %v1394_v5 = vsel %vm7035_vm5, %v5761_v59, %v1393_v51  ;;  %v601_v23 = vrot.slane %v600_v8, 4  ;;  %v620_v51 = vrot.slane %v618_v28, 4 }
  0x9e   : > { %v610_v18 = vor.u32 %v609_v4, %v605_v3  ;;  %v629_v59 = vrot.slane %v627_v40, 5 }
  0x9f   : > { %v606_v11 = vsel %vm6947_vm2, %v601_v23, %v605_v3  ;;  %v624_v1 = vor.u32 %v623_v54, %v620_v51 }
  0xa0   : > { %v611_v24 = vrot.slane %v610_v18, 4  ;;  %v844_v49 = vunpack.c.l.b16 %v606_v11 }
  0xa1   : > { %979 = vmatmul.bf16.gmra.mxu0 %v7049_v16  ;;  %v625_v19 = vrot.slane %v624_v1, 4 }
  0xa2   : > { %1234 = vmatmul.bf16.gmra.mxu1 %v7052_v17  ;;  %v616_v32 = vsel %vm6947_vm2, %v611_v24, %v615_v25  ;;  %v335_v25 = vld [vmem:[%s6930_s11 + $0x94] sm:$0xf] }
  0xa3   : > { %1289 = vmatmul.bf16.gmra.mxu3 %v6312_v21  ;;  %v841_v21 = vunpack.c.l.b16 %v568_v52  ;;  %v1484_v52 = vunpack.c.l.b16 %v1394_v5  ;;  %v845_v50 = vunpack.c.l.b16 %v616_v32  ;;  %v7169_v5 = vld [vmem:[%s6930_s11 + $0x6c] sm:$0xff]  ;;  %v655_v32 = vshrl.u32 %v332_v29, 16 }
  0xa4   : > { %v1407_v40 = vrot.slane %v335_v25, 5 }
  0xa5   : > { %v7104_v38 = vpack.c.b16 %v841_v21, %v840_v20  ;;  %v7166_v4 = vpack.c.b16 %v845_v50, %v844_v49 }
  0xa7   : > { %9047 = vst [vmem:[#allocation18_spill] sm:$0xff] %v7104_v38 }
  0xa8   : > { %9051 = vst [vmem:[#allocation22_spill] sm:$0xff] %v7166_v4 }
  0xaa   : > { %1637 = vmatmul.bf16.gmra.mxu2 %v7102_v35 }
  0xb1   : > { %984 = vmatmul.bf16.gmra.mxu0 %v7078_v57 }
  0xb2   : > { %1239 = vmatmul.bf16.gmra.mxu1 %v7081_v58 }
  0xb3   : > { %1294 = vmatmul.bf16.gmra.mxu3 %v6313_v63  ;;  %v842_v63 = vunpack.c.l.b16 %v582_v45  ;;  %v331_v45 = vld [vmem:[%s6930_s11 + $0x84] sm:$0xf] }
  0xb4   : > { %v5762_v46 = vrot.slane %v331_v45, 9  ;;  %v642_v23 = vshrl.u32 %v331_v45, 16  ;;  %v645_v24 = vshll.u32 %v331_v45, 16 }
  0xb5   : > { %v7130_v10 = vpack.c.b16 %v843_v0, %v842_v63 }
  0xb6   : > { %v1401_v48 = vsel %vm7035_vm5, %v5762_v46, %v1400_v42  ;;  %v334_v46 = vld [vmem:[%s6930_s11 + $0x90] sm:$0xf]  ;;  %v644_v51 = vrot.slane %v642_v23, 4  ;;  %v647_v54 = vrot.slane %v645_v24, 5 }
  0xb7   : > { %9049 = vst [vmem:[#allocation20_spill] sm:$0xff] %v7130_v10  ;;  %v1486_v63 = vunpack.c.l.b16 %v1401_v48 }
  0xc1   : > { %989 = vmatmul.bf16.gmra.mxu0 %v7104_v38 }
  0xc2   : > { %1244 = vmatmul.bf16.gmra.mxu1 %v7107_v39 }
  0xc3   : > { %1798 = vmatmul.bf16.vlgmr.msrb.gmra.mxu3 %v6970_v15  ;;  %v1396_v15 = vrot.slane %v7121_v56, 5 }
  0xc5   : > { %v1397_v6 = vsel %vm7035_vm5, %v1395_v60, %v1396_v15  ;;  %v633_v60 = vrot.slane %v631_v41, 4 }
  0xc6   : > { %v1485_v7 = vunpack.c.l.b16 %v1397_v6 }
  0xc7   : > { %v634_v6 = vor.u32 %v633_v60, %v629_v59  ;;  %v657_v60 = vrot.slane %v655_v32, 4  ;;  %v669_v32 = vshll.u32 %v334_v46, 16 }
  0xc8   : > { %v7128_v9 = vpack.c.b16 %v1485_v7, %v1484_v52  ;;  %v637_v52 = vshll.u32 %v7121_v56, 16  ;;  %v630_v56 = vsel %vm6947_vm2, %v625_v19, %v629_v59  ;;  %v653_v59 = vrot.slane %v651_v26, 5 }
  0xc9   : > { %v846_v49 = vunpack.c.l.b16 %v630_v56  ;;  %v666_v26 = vshrl.u32 %v334_v46, 16 }
  0xca   : > { %9048 = vst [vmem:[#allocation19_spill] sm:$0xff] %v7128_v9  ;;  %1642 = vmatmul.bf16.gmra.mxu2 %v7128_v9 }
  0xce   : > { %v955_v20 = vpop.f32.mrf.mxu0 }
  0xcf   : > { %v1210_v21 = vpop.f32.mrf.mxu1 }
  0xd0   : > { %v7137_v22 = vadd.f32 %v1210_v21, %v955_v20  ;;  %v635_v20 = vrot.slane %v634_v6, 4  ;;  %v639_v21 = vrot.slane %v637_v52, 5 }
  0xd1   : > { %994 = vmatmul.bf16.gmra.mxu0 %v7130_v10 }
  0xd2   : > { %1249 = vmatmul.bf16.gmra.mxu1 %v7133_v13  ;;  %v640_v28 = vsel %vm6947_vm2, %v635_v20, %v639_v21 }
  0xd3   : > { %1803 = vmatmul.bf16.gmra.mxu3 %v6985_v37  ;;  %v7155_v37 = vld [vmem:[%s6930_s11 + $0x8c] sm:$0xf]  ;;  %v847_v50 = vunpack.c.l.b16 %v640_v28 }
  0xd4   : > { %v1403_v27 = vrot.slane %v7155_v37, 5  ;;  %v661_v19 = vshll.u32 %v7155_v37, 16 }
  0xd5   : > { %v7202_v52 = vpack.c.b16 %v847_v50, %v846_v49  ;;  %v679_v49 = vshrl.u32 %v335_v25, 16 }
  0xd6   : > { %v7145_v30 = vpop.f32.mrf.mxu3  ;;  %v7149_v43 = vpop.f32.mrf.mxu0  ;;  %v1404_v15 = vsel %vm7035_vm5, %v1402_v47, %v1403_v27  ;;  %v5763_v47 = vrot.slane %v334_v46, 9  ;;  %v1409_v27 = vrot.slane %v1407_v40, 4  ;;  %v663_v28 = vrot.slane %v661_v19, 5 }
  0xd7   : > { %v7151_v44 = vpop.f32.mrf.mxu1  ;;  %v1487_v0 = vunpack.c.l.b16 %v1404_v15  ;;  %9053 = vst [vmem:[#allocation24_spill] sm:$0xff] %v7202_v52  ;;  %v681_v19 = vrot.slane %v679_v49, 4 }
  0xd8   : > { %v1408_v29 = vsel %vm7035_vm5, %v5763_v47, %v1407_v40  ;;  %v338_v40 = vld [vmem:[%s6930_s11 + $0xa0] sm:$0xf] }
  0xd9   : > { %v7162_v2 = vpack.c.b16 %v1487_v0, %v1486_v63  ;;  %v1488_v15 = vunpack.c.l.b16 %v1408_v29  ;;  %v648_v0 = vor.u32 %v647_v54, %v644_v51  ;;  %v1414_v50 = vrot.slane %v338_v40, 5 }
  0xdb   : > { %9050 = vst [vmem:[#allocation21_spill] sm:$0xff] %v7162_v2  ;;  %1647 = vmatmul.bf16.gmra.mxu2 %v7162_v2  ;;  %v649_v23 = vrot.slane %v648_v0, 4  ;;  %v671_v0 = vrot.slane %v669_v32, 5 }
  0xdd   : > { %v654_v37 = vsel %vm6947_vm2, %v649_v23, %v653_v59 }
  0xde   : > { %v7164_v3 = vpop.f32.mrf.mxu3  ;;  %v960_v7 = vpop.f32.mrf.mxu0 }
  0xdf   : > { %v1215_v8 = vpop.f32.mrf.mxu1 }
  0xe0   : > { %v7173_v18 = vadd.f32 %v1215_v8, %v960_v7  ;;  %v7205_v7 = vld [vmem:[%s6930_s11 + $0x78] sm:$0xff]  ;;  %v658_v8 = vor.u32 %v657_v60, %v653_v59  ;;  %v1416_v59 = vrot.slane %v1414_v50, 4 }
  0xe1   : > { %999 = vmatmul.bf16.gmra.mxu0 %v7166_v4  ;;  %v337_v60 = vld [vmem:[%s6930_s11 + $0x9c] sm:$0xf] }
  0xe2   : > { %1254 = vmatmul.bf16.gmra.mxu1 %v7169_v5  ;;  %v659_v24 = vrot.slane %v658_v8, 4  ;;  %v5764_v29 = vrot.slane %v337_v60, 9 }
  0xe3   : > { %1808 = vmatmul.bf16.gmra.mxu3 %v7000_v62  ;;  %v7191_v62 = vld [vmem:[%s6930_s11 + $0x98] sm:$0xf] }
  0xe4   : > { %v1410_v45 = vrot.slane %v7191_v62, 5  ;;  %v685_v32 = vshll.u32 %v7191_v62, 16  ;;  %v693_v62 = vshll.u32 %v337_v60, 16 }
  0xe6   : > { %v7181_v11 = vpop.f32.mrf.mxu3  ;;  %v7185_v41 = vpop.f32.mrf.mxu0  ;;  %v1411_v48 = vsel %vm7035_vm5, %v1409_v27, %v1410_v45  ;;  %v664_v27 = vsel %vm6947_vm2, %v659_v24, %v663_v28  ;;  %v675_v45 = vshll.u32 %v335_v25, 16  ;;  %v1415_v25 = vsel %vm7035_vm5, %v5764_v29, %v1414_v50 }
  0xe7   : > { %v7187_v42 = vpop.f32.mrf.mxu1  ;;  %v1489_v63 = vunpack.c.l.b16 %v1411_v48  ;;  %v848_v48 = vunpack.c.l.b16 %v654_v37 }
  0xe8   : > { %v677_v8 = vrot.slane %v675_v45, 5 }
  0xe9   : > { %v7198_v1 = vpack.c.b16 %v1489_v63, %v1488_v15  ;;  %v849_v15 = vunpack.c.l.b16 %v664_v27  ;;  %v668_v63 = vrot.slane %v666_v26, 4 }
  0xea   : > { %v682_v26 = vor.u32 %v681_v19, %v677_v8  ;;  %v699_v19 = vshll.u32 %v338_v40, 16 }
  0xeb   : > { %9052 = vst [vmem:[#allocation23_spill] sm:$0xff] %v7198_v1  ;;  %1652 = vmatmul.bf16.gmra.mxu2 %v7198_v1  ;;  %v672_v24 = vor.u32 %v671_v0, %v668_v63  ;;  %v7238_v37 = vpack.c.b16 %v849_v15, %v848_v48  ;;  %v690_v48 = vshrl.u32 %v337_v60, 16  ;;  %v341_v15 = vld [vmem:[%s6930_s11 + $0xac] sm:$0xf] }
  0xec   : > { %v683_v29 = vrot.slane %v682_v26, 4 }
  0xed   : > { %9056 = vst [vmem:[#allocation27_spill] sm:$0xff] %v7238_v37  ;;  %v673_v50 = vrot.slane %v672_v24, 4  ;;  %v340_v24 = vld [vmem:[%s6930_s11 + $0xa8] sm:$0xf] }
  0xee   : > { %v7200_v6 = vpop.f32.mrf.mxu3  ;;  %v965_v20 = vpop.f32.mrf.mxu0  ;;  %v5765_v26 = vrot.slane %v340_v24, 9 }
  0xef   : > { %v1220_v21 = vpop.f32.mrf.mxu1 }
  0xf0   : > { %v7209_v56 = vadd.f32 %v1220_v21, %v965_v20  ;;  %v1490_v21 = vunpack.c.l.b16 %v1415_v25  ;;  %v703_v25 = vshrl.u32 %v338_v40, 16 }
  0xf1   : > { %1004 = vmatmul.bf16.gmra.mxu0 %v7202_v52 }
  0xf2   : > { %1259 = vmatmul.bf16.gmra.mxu1 %v7205_v7 }
  0xf3   : > { %1813 = vmatmul.bf16.gmra.mxu3 %v7015_v34  ;;  %v7227_v34 = vld [vmem:[%s6930_s11 + $0xa4] sm:$0xf] }
  0xf4   : > { %v1417_v46 = vrot.slane %v7227_v34, 5 }
  0xf6   : > { %v7217_v47 = vpop.f32.mrf.mxu3  ;;  %v7221_v51 = vpop.f32.mrf.mxu0  ;;  %v1418_v20 = vsel %vm7035_vm5, %v1416_v59, %v1417_v46  ;;  %v687_v59 = vrot.slane %v685_v32, 5  ;;  %v678_v46 = vsel %vm6947_vm2, %v673_v50, %v677_v8  ;;  %v695_v50 = vrot.slane %v693_v62, 5 }
  0xf7   : > { %v7223_v54 = vpop.f32.mrf.mxu1  ;;  %v1491_v23 = vunpack.c.l.b16 %v1418_v20  ;;  %v1421_v20 = vrot.slane %v341_v15, 5  ;;  %v850_v32 = vunpack.c.l.b16 %v678_v46  ;;  %v709_v62 = vshll.u32 %v7227_v34, 16 }
  0xf8   : > { %v688_v0 = vsel %vm6947_vm2, %v683_v29, %v687_v59  ;;  %v705_v29 = vrot.slane %v703_v25, 4  ;;  %v717_v34 = vshll.u32 %v340_v24, 16 }
  0xf9   : > { %v7234_v28 = vpack.c.b16 %v1491_v23, %v1490_v21  ;;  %v1423_v8 = vrot.slane %v1421_v20, 4  ;;  %v1422_v40 = vsel %vm7035_vm5, %v5765_v26, %v1421_v20 }
  0xfb   : > { %9054 = vst [vmem:[#allocation25_spill] sm:$0xff] %v7234_v28  ;;  %1657 = vmatmul.bf16.gmra.mxu2 %v7234_v28  ;;  %v701_v28 = vrot.slane %v699_v19, 5 }
  0xfe   : > { %v7236_v1 = vpop.f32.mrf.mxu3  ;;  %v970_v27 = vpop.f32.mrf.mxu0 }
  0xff   : > { %9055 = vst [vmem:[#allocation26_spill] sm:$0xff] %v7236_v1  ;;  %v1225_v45 = vpop.f32.mrf.mxu1 }
 0x100   : > { %v7242_v49 = vadd.f32 %v1225_v45, %v970_v27  ;;  %v851_v27 = vunpack.c.l.b16 %v688_v0  ;;  %v692_v45 = vrot.slane %v690_v48, 4  ;;  %v706_v48 = vor.u32 %v705_v29, %v701_v28 }
 0x101   : > { %1009 = vmatmul.bf16.gmra.mxu0 %v7238_v37  ;;  %v1492_v37 = vunpack.c.l.b16 %v1422_v40 }
 0x102   : > { %9057 = vst [vmem:[#allocation28_spill] sm:$0xff] %v7242_v49  ;;  %v696_v52 = vor.u32 %v695_v50, %v692_v45  ;;  %v7270_v46 = vpack.c.b16 %v851_v27, %v850_v32  ;;  %v727_v45 = vshrl.u32 %v341_v15, 16  ;;  %v6362_v49 = vld [vmem:[#allocation5 + $0x170] sm:$0xff] }
 0x103   : > { %1818 = vmatmul.bf16.gmra.mxu3 %v7052_v17  ;;  %v7259_v17 = vld [vmem:[%s6930_s11 + $0xb0] sm:$0xf] }
 0x104   : > { %v1424_v60 = vrot.slane %v7259_v17, 5  ;;  %9062 = vst [vmem:[#allocation33_spill] sm:$0xff] %v7270_v46  ;;  %v697_v20 = vrot.slane %v696_v52, 4  ;;  %v723_v52 = vshll.u32 %v341_v15, 16 }
 0x106   : > { %v7249_v63 = vpop.f32.mrf.mxu3  ;;  %v7253_v21 = vpop.f32.mrf.mxu0  ;;  %v1425_v59 = vsel %vm7035_vm5, %v1423_v8, %v1424_v60  ;;  %v702_v26 = vsel %vm6947_vm2, %v697_v20, %v701_v28  ;;  %v714_v8 = vshrl.u32 %v340_v24, 16  ;;  %v344_v60 = vld [vmem:[%s6930_s11 + $0xb8] sm:$0xf]  ;;  %v719_v20 = vrot.slane %v717_v34, 5 }
 0x107   : > { %9058 = vst [vmem:[#allocation29_spill] sm:$0xff] %v7253_v21  ;;  %v7255_v23 = vpop.f32.mrf.mxu1  ;;  %v1493_v2 = vunpack.c.l.b16 %v1425_v59  ;;  %v1428_v50 = vrot.slane %v344_v60, 5  ;;  %v343_v59 = vld [vmem:[%s6930_s11 + $0xb4] sm:$0xf] }
 0x108   : > { %9059 = vst [vmem:[#allocation30_spill] sm:$0xff] %v7255_v23 }
 0x109   : > { %v7266_v9 = vpack.c.b16 %v1493_v2, %v1492_v37  ;;  %v707_v2 = vrot.slane %v706_v48, 4  ;;  %v711_v37 = vrot.slane %v709_v62, 5  ;;  %v5766_v48 = vrot.slane %v343_v59, 9 }
 0x10a   : > { %v1430_v28 = vrot.slane %v1428_v50, 4  ;;  %v852_v62 = vunpack.c.l.b16 %v702_v26 }
 0x10b   : > { %9060 = vst [vmem:[#allocation31_spill] sm:$0xff] %v7266_v9  ;;  %1662 = vmatmul.bf16.gmra.mxu2 %v7266_v9  ;;  %v712_v27 = vsel %vm6947_vm2, %v707_v2, %v711_v37  ;;  %v725_v9 = vrot.slane %v723_v52, 5  ;;  %v729_v2 = vrot.slane %v727_v45, 4  ;;  %v1429_v15 = vsel %vm7035_vm5, %v5766_v48, %v1428_v50 }
 0x10c   : > { %v738_v48 = vshrl.u32 %v343_v59, 16 }
 0x10d   : > { %v730_v26 = vor.u32 %v729_v2, %v725_v9  ;;  %v7309_v50 = vpop.f32.mrf.mxu2 }
 0x10e   : > { %v7268_v4 = vpop.f32.mrf.mxu3  ;;  %v975_v0 = vpop.f32.mrf.mxu0 }
 0x10f   : > { %9061 = vst [vmem:[#allocation32_spill] sm:$0xff] %v7268_v4  ;;  %v1230_v19 = vpop.f32.mrf.mxu1 }
 0x110   : > { %v7274_v25 = vadd.f32 %v1230_v19, %v975_v0  ;;  %v853_v0 = vunpack.c.l.b16 %v712_v27  ;;  %v716_v19 = vrot.slane %v714_v8, 4  ;;  %v733_v8 = vshll.u32 %v7259_v17, 16 }
 0x111   : > { %1014 = vmatmul.bf16.gmra.mxu0 %v7270_v46  ;;  %v1494_v46 = vunpack.c.l.b16 %v1429_v15 }
 0x112   : > { %9063 = vst [vmem:[#allocation34_spill] sm:$0xff] %v7274_v25  ;;  %v720_v10 = vor.u32 %v719_v20, %v716_v19  ;;  %v751_v19 = vshrl.u32 %v344_v60, 16 }
 0x113   : > { %1823 = vmatmul.bf16.gmra.mxu3 %v7081_v58  ;;  %v7291_v58 = vld [vmem:[%s6930_s11 + $0xbc] sm:$0xf] }
 0x114   : > { %v1431_v24 = vrot.slane %v7291_v58, 5  ;;  %v721_v45 = vrot.slane %v720_v10, 4 }
 0x116   : > { %v7281_v32 = vpop.f32.mrf.mxu3  ;;  %v7285_v29 = vpop.f32.mrf.mxu0  ;;  %v1432_v37 = vsel %vm7035_vm5, %v1430_v28, %v1431_v24  ;;  %v726_v17 = vsel %vm6947_vm2, %v721_v45, %v725_v9  ;;  %v741_v28 = vshll.u32 %v343_v59, 16  ;;  %v347_v24 = vld [vmem:[%s6930_s11 + $0xc4] sm:$0xf] }
 0x117   : > { %9064 = vst [vmem:[#allocation35_spill] sm:$0xff] %v7285_v29  ;;  %v7287_v40 = vpop.f32.mrf.mxu1  ;;  %v1495_v35 = vunpack.c.l.b16 %v1432_v37  ;;  %v7302_v29 = vpack.c.b16 %v853_v0, %v852_v62  ;;  %v747_v0 = vshll.u32 %v344_v60, 16  ;;  %v1435_v20 = vrot.slane %v347_v24, 5  ;;  %v346_v37 = vld [vmem:[%s6930_s11 + $0xc0] sm:$0xf] }
 0x118   : > { %9065 = vst [vmem:[#allocation36_spill] sm:$0xff] %v7287_v40  ;;  %v743_v45 = vrot.slane %v741_v28, 5  ;;  %v757_v28 = vshll.u32 %v7291_v58, 16 }
 0x119   : > { %v7298_v55 = vpack.c.b16 %v1495_v35, %v1494_v46  ;;  %9068 = vst [vmem:[#allocation39_spill] sm:$0xff] %v7302_v29  ;;  %v731_v35 = vrot.slane %v730_v26, 4  ;;  %v735_v46 = vrot.slane %v733_v8, 5  ;;  %v5767_v26 = vrot.slane %v346_v37, 9 }
 0x11a   : > { %v1437_v9 = vrot.slane %v1435_v20, 4  ;;  %v854_v8 = vunpack.c.l.b16 %v726_v17 }
 0x11b   : > { %9066 = vst [vmem:[#allocation37_spill] sm:$0xff] %v7298_v55  ;;  %1667 = vmatmul.bf16.gmra.mxu2 %v7298_v55  ;;  %v736_v10 = vsel %vm6947_vm2, %v731_v35, %v735_v46  ;;  %v749_v55 = vrot.slane %v747_v0, 5  ;;  %v753_v35 = vrot.slane %v751_v19, 4  ;;  %v7328_v46 = vpop.f32.mrf.mxu2  ;;  %v1436_v60 = vsel %vm7035_vm5, %v5767_v26, %v1435_v20 }
 0x11c   : > { %v762_v26 = vshrl.u32 %v346_v37, 16 }
 0x11e   : > { %v7300_v40 = vpop.f32.mrf.mxu3  ;;  %v980_v34 = vpop.f32.mrf.mxu0 }
 0x11f   : > { %9067 = vst [vmem:[#allocation38_spill] sm:$0xff] %v7300_v40  ;;  %v1235_v27 = vpop.f32.mrf.mxu1 }
 0x120   : > { %v7306_v52 = vadd.f32 %v1235_v27, %v980_v34  ;;  %v855_v34 = vunpack.c.l.b16 %v736_v10  ;;  %v740_v27 = vrot.slane %v738_v48, 4  ;;  %v754_v48 = vor.u32 %v753_v35, %v749_v55 }
 0x121   : > { %1019 = vmatmul.bf16.gmra.mxu0 %v7302_v29 }
 0x122   : > { %9069 = vst [vmem:[#allocation40_spill] sm:$0xff] %v7306_v52  ;;  %v744_v52 = vor.u32 %v743_v45, %v740_v27  ;;  %v7338_v17 = vpack.c.b16 %v855_v34, %v854_v8  ;;  %v771_v34 = vshll.u32 %v347_v24, 16  ;;  %v775_v27 = vshrl.u32 %v347_v24, 16 }
 0x123   : > { %1828 = vmatmul.bf16.gmra.mxu3 %v7107_v39  ;;  %v7325_v39 = vld [vmem:[%s6930_s11 + $0xc8] sm:$0xf] }
 0x124   : > { %v1438_v59 = vrot.slane %v7325_v39, 5  ;;  %9074 = vst [vmem:[#allocation45_spill] sm:$0xff] %v7338_v17  ;;  %v745_v20 = vrot.slane %v744_v52, 4 }
 0x126   : > { %v7315_v62 = vpop.f32.mrf.mxu3  ;;  %v7319_v2 = vpop.f32.mrf.mxu0  ;;  %v1439_v29 = vsel %vm7035_vm5, %v1437_v9, %v1438_v59  ;;  %v750_v58 = vsel %vm6947_vm2, %v745_v20, %v749_v55  ;;  %v765_v9 = vshll.u32 %v346_v37, 16  ;;  %v350_v59 = vld [vmem:[%s6930_s11 + $0xd0] sm:$0xf]  ;;  %v764_v20 = vrot.slane %v762_v26, 4 }
 0x127   : > { %9070 = vst [vmem:[#allocation41_spill] sm:$0xff] %v7319_v2  ;;  %v7321_v15 = vpop.f32.mrf.mxu1  ;;  %v1497_v2 = vunpack.c.l.b16 %v1439_v29  ;;  %v755_v29 = vrot.slane %v754_v48, 4  ;;  %v1442_v45 = vrot.slane %v350_v59, 5  ;;  %v349_v48 = vld [vmem:[%s6930_s11 + $0xcc] sm:$0xf] }
 0x128   : > { %9071 = vst [vmem:[#allocation42_spill] sm:$0xff] %v7321_v15  ;;  %v1496_v15 = vunpack.c.l.b16 %v1436_v60 }
 0x129   : > { %v1444_v55 = vrot.slane %v1442_v45, 4 }
 0x12a   : > { %v7334_v40 = vpack.c.b16 %v1497_v2, %v1496_v15  ;;  %v759_v2 = vrot.slane %v757_v28, 5  ;;  %v7345_v15 = vpop.f32.mrf.mxu2  ;;  %v5768_v28 = vrot.slane %v349_v48, 9 }
 0x12c   : > { %9072 = vst [vmem:[#allocation43_spill] sm:$0xff] %v7334_v40  ;;  %1672 = vmatmul.bf16.gmra.mxu2 %v7334_v40  ;;  %v760_v52 = vsel %vm6947_vm2, %v755_v29, %v759_v2  ;;  %v767_v40 = vrot.slane %v765_v9, 5  ;;  %v777_v29 = vrot.slane %v775_v27, 4  ;;  %v1443_v24 = vsel %vm7035_vm5, %v5768_v28, %v1442_v45 }
 0x12e   : > { %v7336_v38 = vpop.f32.mrf.mxu3  ;;  %v985_v10 = vpop.f32.mrf.mxu0  ;;  %v768_v26 = vor.u32 %v767_v40, %v764_v20  ;;  %v789_v20 = vshll.u32 %v349_v48, 16 }
 0x12f   : > { %9073 = vst [vmem:[#allocation44_spill] sm:$0xff] %v7336_v38  ;;  %v1240_v0 = vpop.f32.mrf.mxu1 }
 0x130   : > { %v7342_v19 = vadd.f32 %v1240_v0, %v985_v10  ;;  %v856_v10 = vunpack.c.l.b16 %v750_v58  ;;  %v857_v0 = vunpack.c.l.b16 %v760_v52  ;;  %v781_v52 = vshll.u32 %v7325_v39, 16 }
 0x131   : > { %1024 = vmatmul.bf16.gmra.mxu0 %v7338_v17  ;;  %v773_v17 = vrot.slane %v771_v34, 5 }
 0x132   : > { %9075 = vst [vmem:[#allocation46_spill] sm:$0xff] %v7342_v19  ;;  %v7364_v2 = vpop.f32.mrf.mxu2  ;;  %v7374_v58 = vpack.c.b16 %v857_v0, %v856_v10  ;;  %v786_v0 = vshrl.u32 %v349_v48, 16 }
 0x133   : > { %1833 = vmatmul.bf16.gmra.mxu3 %v7133_v13  ;;  %v7361_v13 = vld [vmem:[%s6930_s11 + $0xd4] sm:$0xf]  ;;  %v778_v9 = vor.u32 %v777_v29, %v773_v17  ;;  %v795_v29 = vshll.u32 %v350_v59, 16 }
 0x134   : > { %v1445_v37 = vrot.slane %v7361_v13, 5  ;;  %9080 = vst [vmem:[#allocation51_spill] sm:$0xff] %v7374_v58 }
 0x136   : > { %v7351_v8 = vpop.f32.mrf.mxu3  ;;  %v7355_v35 = vpop.f32.mrf.mxu0 }
 0x137   : > { %9076 = vst [vmem:[#allocation47_spill] sm:$0xff] %v7355_v35  ;;  %v7357_v60 = vpop.f32.mrf.mxu1  ;;  %v1498_v35 = vunpack.c.l.b16 %v1443_v24  ;;  %v799_v24 = vshrl.u32 %v350_v59, 16  ;;  %v805_v59 = vshll.u32 %v7361_v13, 16 }
 0x138   : > { %9077 = vst [vmem:[#allocation48_spill] sm:$0xff] %v7357_v60  ;;  %v1446_v60 = vsel %vm7035_vm5, %v1444_v55, %v1445_v37 }
 0x139   : > { %v1499_v19 = vunpack.c.l.b16 %v1446_v60  ;;  %v783_v60 = vrot.slane %v781_v52, 5 }
 0x13a   : > { %v1638_v55 = vpop.f32.mrf.mxu2 }
 0x13b   : > { %v7370_v38 = vpack.c.b16 %v1499_v19, %v1498_v35  ;;  %v769_v19 = vrot.slane %v768_v26, 4  ;;  %v779_v35 = vrot.slane %v778_v9, 4  ;;  %v6569_v26 = vld [vmem:[%s6930_s11 + $0x4] sm:$0xf] }
 0x13c   : > { %v1323_v9 = vrot.slane %v6569_v26, 5 }
 0x13d   : > { %9078 = vst [vmem:[#allocation49_spill] sm:$0xff] %v7370_v38  ;;  %1677 = vmatmul.bf16.gmra.mxu2 %v7370_v38  ;;  %v774_v39 = vsel %vm6947_vm2, %v769_v19, %v773_v17  ;;  %v784_v37 = vsel %vm6947_vm2, %v779_v35, %v783_v60  ;;  %v788_v17 = vrot.slane %v786_v0, 4  ;;  %v791_v19 = vrot.slane %v789_v20, 5  ;;  %v6571_v38 = vld [vmem:[%s6930_s11] sm:$0xf] }
 0x13e   : > { %v7372_v25 = vpop.f32.mrf.mxu3  ;;  %v990_v34 = vpop.f32.mrf.mxu0  ;;  %v797_v35 = vrot.slane %v795_v29, 5  ;;  %v801_v60 = vrot.slane %v799_v24, 4 }
 0x13f   : > { %9079 = vst [vmem:[#allocation50_spill] sm:$0xff] %v7372_v25  ;;  %v1245_v27 = vpop.f32.mrf.mxu1  ;;  %v792_v20 = vor.u32 %v791_v19, %v788_v17 }
 0x140   : > { %v1246_v45 = vadd.f32 %v1245_v27, %v990_v34  ;;  %v858_v34 = vunpack.c.l.b16 %v774_v39  ;;  %v859_v27 = vunpack.c.l.b16 %v784_v37  ;;  %v802_v29 = vor.u32 %v801_v60, %v797_v35 }
 0x141   : > { %1029 = vmatmul.bf16.gmra.mxu0 %v7374_v58  ;;  %v5751_v58 = vrot.slane %v6571_v38, 9 }
 0x142   : > { %v7379_v28 = vadd.f32 %v7309_v50, %v1246_v45  ;;  %v7395_v45 = vpop.f32.mrf.mxu2  ;;  %v7400_v48 = vpack.c.b16 %v859_v27, %v858_v34  ;;  %v807_v34 = vrot.slane %v805_v59, 5 }
 0x143   : > { %1838 = vmatmul.bf16.gmra.mxu3 %v7169_v5  ;;  %v6570_v5 = vld [vmem:[%s6930_s11 + $0x8] sm:$0xf]  ;;  %v1324_v26 = vsel %vm7035_vm5, %v5751_v58, %v1323_v9  ;;  %v793_v58 = vrot.slane %v792_v20, 4 }
 0x144   : > { %v1326_v52 = vrot.slane %v6570_v5, 5  ;;  %9083 = vst [vmem:[#allocation54_spill] sm:$0xff] %v7400_v48  ;;  %v1464_v24 = vunpack.c.l.b16 %v1324_v26 }
 0x146   : > { %v7383_v40 = vpop.f32.mrf.mxu3  ;;  %v7389_v50 = vpop.f32.mrf.mxu0 }
 0x147   : > { %9081 = vst [vmem:[#allocation52_spill] sm:$0xff] %v7383_v40  ;;  %v7391_v10 = vpop.f32.mrf.mxu1  ;;  %v1325_v40 = vrot.slane %v1323_v9, 4  ;;  %v803_v9 = vrot.slane %v802_v29, 4  ;;  %v6354_v29 = vld [vmem:[#allocation5 + $0x130] sm:$0xff] }
 0x149   : > { %v1327_v39 = vsel %vm7035_vm5, %v1325_v40, %v1326_v52  ;;  %v6355_v40 = vld [vmem:[#allocation5 + $0x138] sm:$0xff]  ;;  %v808_v19 = vsel %vm6947_vm2, %v803_v9, %v807_v34 }
 0x14a   : > { %v1465_v5 = vunpack.c.l.b16 %v1327_v39  ;;  %2018 = vmatpush.bf16.msra.mxu0 %v6355_v40 }
 0x14c   : > { %v1500_v4 = vpack.c.b16 %v1465_v5, %v1464_v24 }
 0x14d   : > { %v1643_v13 = vpop.f32.mrf.mxu2 }
 0x14e   : > { %v7398_v25 = vpop.f32.mrf.mxu3  ;;  %v995_v37 = vpop.f32.mrf.mxu0  ;;  %2019 = vmatpush.bf16.msra.mxu0 %v6354_v29  ;;  %v6575_v29 = vld [vmem:[%s6930_s11 + $0xc] sm:$0xf] }
 0x14f   : > { %9082 = vst [vmem:[#allocation53_spill] sm:$0xff] %v7398_v25  ;;  %v1250_v0 = vpop.f32.mrf.mxu1  ;;  %v5752_v31 = vrot.slane %v6575_v29, 9 }
 0x150   : > { %v1251_v38 = vadd.f32 %v1250_v0, %v995_v37 }
 0x151   : > { %1034 = vmatmul.bf16.gmra.mxu0 %v7400_v48  ;;  %v6576_v48 = vld [vmem:[%s6930_s11 + $0x14] sm:$0xf] }
 0x152   : > { %v7408_v25 = vadd.f32 %v7345_v15, %v1251_v38  ;;  %v798_v15 = vsel %vm6947_vm2, %v793_v58, %v797_v35  ;;  %v7432_v35 = vld [vmem:[%s6930_s11 + $0x84] sm:$0xff] }
 0x153   : > { %1843 = vmatmul.bf16.gmra.mxu3 %v7205_v7  ;;  %v860_v60 = vunpack.c.l.b16 %v798_v15  ;;  %v861_v7 = vunpack.c.l.b16 %v808_v19  ;;  %9087 = vst [vmem:[#allocation58_spill] sm:$0xff] %v7432_v35  ;;  %v6573_v19 = vld [vmem:[%s6930_s11 + $0x10] sm:$0xf] }
 0x155   : > { %v7422_v26 = vpop.f32.mrf.mxu2  ;;  %v7426_v39 = vpack.c.b16 %v861_v7, %v860_v60  ;;  %v1330_v60 = vrot.slane %v6573_v19, 5 }
 0x156   : > { %v7412_v52 = vpop.f32.mrf.mxu3  ;;  %v7414_v27 = vpop.f32.mrf.mxu0 }
 0x157   : > { %9084 = vst [vmem:[#allocation55_spill] sm:$0xff] %v7412_v52  ;;  %v7416_v17 = vpop.f32.mrf.mxu1 }
 0x158   : > { %9086 = vst [vmem:[#allocation57_spill] sm:$0xff] %v7426_v39 }
 0x15e   : > { %v7424_v59 = vpop.f32.mrf.mxu3  ;;  %v1000_v37 = vpop.f32.mrf.mxu0 }
 0x15f   : > { %9085 = vst [vmem:[#allocation56_spill] sm:$0xff] %v7424_v59  ;;  %v1255_v0 = vpop.f32.mrf.mxu1  ;;  %v1648_v38 = vpop.f32.mrf.mxu2  ;;  %v6577_v59 = vld [vmem:[%s6930_s11 + $0x1c] sm:$0xf] }
 0x160   : > { %v1256_v20 = vadd.f32 %v1255_v0, %v1000_v37  ;;  %v1337_v52 = vrot.slane %v6577_v59, 5 }
 0x161   : > { %1039 = vmatmul.bf16.gmra.mxu0 %v7426_v39  ;;  %v1332_v39 = vrot.slane %v1330_v60, 4 }
 0x162   : > { %v7428_v24 = vadd.f32 %v1638_v55, %v1256_v20  ;;  %v6353_v55 = vld [vmem:[#allocation5 + $0x128] sm:$0xff]  ;;  %v7449_v20 = vld [vmem:[%s6930_s11 + $0x90] sm:$0xff] }
 0x163   : > { %1848 = vmatmul.bf16.gmra.mxu3 %v7432_v35  ;;  %2020 = vmatpush.bf16.msra.mxu0 %v6353_v55  ;;  %9090 = vst [vmem:[#allocation61_spill] sm:$0xff] %v7449_v20  ;;  %v6581_v35 = vld [vmem:[%s6930_s11 + $0x28] sm:$0xf] }
 0x164   : > { %v1344_v12 = vrot.slane %v6581_v35, 5  ;;  %v6350_v35 = vld [vmem:[#allocation5 + $0x110] sm:$0xff] }
 0x166   : > { %v7435_v5 = vpop.f32.mrf.mxu3  ;;  %v7437_v58 = vpop.f32.mrf.mxu0 }
 0x167   : > { %9088 = vst [vmem:[#allocation59_spill] sm:$0xff] %v7435_v5  ;;  %v7439_v9 = vpop.f32.mrf.mxu1  ;;  %v7444_v37 = vpop.f32.mrf.mxu2 }
 0x16e   : > { %v7441_v34 = vpop.f32.mrf.mxu3  ;;  %v1005_v40 = vpop.f32.mrf.mxu0 }
 0x16f   : > { %9089 = vst [vmem:[#allocation60_spill] sm:$0xff] %v7441_v34  ;;  %v1260_v15 = vpop.f32.mrf.mxu1  ;;  %v1333_v34 = vrot.slane %v6576_v48, 5 }
 0x170   : > { %v1261_v7 = vadd.f32 %v1260_v15, %v1005_v40  ;;  %v6352_v15 = vld [vmem:[#allocation5 + $0x120] sm:$0xff] }
 0x171   : > { %1592 = vmatmul.bf16.vlgmr.msrb.gmra.mxu0 %v1500_v4  ;;  %v1334_v4 = vsel %vm7035_vm5, %v1332_v39, %v1333_v34  ;;  %v7472_v39 = vld [vmem:[%s6930_s11 + $0x9c] sm:$0xff]  ;;  %v6579_v34 = vld [vmem:[%s6930_s11 + $0x18] sm:$0xf] }
 0x172   : > { %v7446_v0 = vadd.f32 %v1643_v13, %v1261_v7  ;;  %v1331_v13 = vsel %vm7035_vm5, %v5752_v31, %v1330_v60  ;;  %v1467_v40 = vunpack.c.l.b16 %v1334_v4  ;;  %v1653_v7 = vpop.f32.mrf.mxu2  ;;  %2021 = vmatpush.bf16.msra.mxu0 %v6352_v15  ;;  %9093 = vst [vmem:[#allocation64_spill] sm:$0xff] %v7472_v39  ;;  %v5753_v60 = vrot.slane %v6579_v34, 9  ;;  %v6580_v4 = vld [vmem:[%s6930_s11 + $0x20] sm:$0xf]  ;;  %v6351_v34 = vld [vmem:[#allocation5 + $0x118] sm:$0xff] }
 0x173   : > { %1853 = vmatmul.bf16.gmra.mxu3 %v7449_v20  ;;  %v1466_v55 = vunpack.c.l.b16 %v1331_v13  ;;  %v1339_v13 = vrot.slane %v1337_v52, 4 }
 0x175   : > { %v7464_v48 = vpack.c.b16 %v1467_v40, %v1466_v55  ;;  %v1340_v55 = vrot.slane %v6580_v4, 5 }
 0x176   : > { %v7454_v5 = vpop.f32.mrf.mxu3  ;;  %v7456_v19 = vpop.f32.mrf.mxu0  ;;  %2022 = vmatpush.bf16.msra.mxu0 %v6351_v34 }
 0x177   : > { %9091 = vst [vmem:[#allocation62_spill] sm:$0xff] %v7454_v5 }
 0x17a   : > { %v7477_v40 = vpop.f32.mrf.mxu2  ;;  %2023 = vmatpush.bf16.msra.mxu0 %v6350_v35  ;;  %v6587_v35 = vld [vmem:[%s6930_s11 + $0x30] sm:$0xf] }
 0x17e   : > { %v7462_v29 = vpop.f32.mrf.mxu3  ;;  %v1010_v5 = vpop.f32.mrf.mxu0 }
 0x17f   : > { %9092 = vst [vmem:[#allocation63_spill] sm:$0xff] %v7462_v29  ;;  %v1266_v20 = vadd.f32 %v7145_v30, %v1010_v5  ;;  %v1338_v30 = vsel %vm7035_vm5, %v5753_v60, %v1337_v52  ;;  %v1341_v5 = vsel %vm7035_vm5, %v1339_v13, %v1340_v55  ;;  %v7497_v60 = vld [vmem:[%s6930_s11 + $0xa8] sm:$0xff]  ;;  %v6583_v13 = vld [vmem:[%s6930_s11 + $0x24] sm:$0xf] }
 0x180   : > { %9096 = vst [vmem:[#allocation67_spill] sm:$0xff] %v7497_v60  ;;  %v5754_v55 = vrot.slane %v6583_v13, 9 }
 0x181   : > { %v7468_v31 = vadd.f32 %v1648_v38, %v1266_v20  ;;  %1597 = vmatmul.bf16.gmra.mxu0 %v7464_v48  ;;  %v1468_v38 = vunpack.c.l.b16 %v1338_v30  ;;  %v1469_v20 = vunpack.c.l.b16 %v1341_v5  ;;  %v1346_v30 = vrot.slane %v1344_v12, 4  ;;  %v6584_v5 = vld [vmem:[%s6930_s11 + $0x2c] sm:$0xf] }
 0x183   : > { %1858 = vmatmul.bf16.gmra.mxu3 %v7472_v39  ;;  %v7489_v29 = vpack.c.b16 %v1469_v20, %v1468_v38  ;;  %v1658_v39 = vpop.f32.mrf.mxu2  ;;  %v1347_v38 = vrot.slane %v6584_v5, 5 }
 0x186   : > { %v7479_v15 = vpop.f32.mrf.mxu3  ;;  %v7481_v59 = vpop.f32.mrf.mxu0 }
 0x187   : > { %9094 = vst [vmem:[#allocation65_spill] sm:$0xff] %v7479_v15 }
 0x18e   : > { %v7487_v4 = vpop.f32.mrf.mxu3  ;;  %v1015_v15 = vpop.f32.mrf.mxu0 }
 0x18f   : > { %9095 = vst [vmem:[#allocation66_spill] sm:$0xff] %v7487_v4  ;;  %v1271_v23 = vadd.f32 %v7181_v11, %v1015_v15  ;;  %v1345_v11 = vsel %vm7035_vm5, %v5754_v55, %v1344_v12  ;;  %v6371_v55 = vld [vmem:[#allocation5 + $0x1b8] sm:$0xff] }
 0x190   : > { %v1470_v15 = vunpack.c.l.b16 %v1345_v11  ;;  %2436 = vmatpush.bf16.msrb.mxu2 %v6371_v55  ;;  %v7522_v11 = vld [vmem:[%s6930_s11 + $0xb4] sm:$0xff] }
 0x191   : > { %v7493_v52 = vadd.f32 %v1653_v7, %v1271_v23  ;;  %1602 = vmatmul.bf16.gmra.mxu0 %v7489_v29  ;;  %v1348_v23 = vsel %vm7035_vm5, %v1346_v30, %v1347_v38  ;;  %v7510_v7 = vpop.f32.mrf.mxu2  ;;  %v6379_v38 = vld [vmem:[#allocation5 + $0x1f8] sm:$0xff]  ;;  %9100 = vst [vmem:[#allocation71_spill] sm:$0xff] %v7522_v11 }
 0x192   : > { %9098 = vst [vmem:[#allocation69_spill] sm:$0xff] %v7510_v7  ;;  %v1471_v13 = vunpack.c.l.b16 %v1348_v23  ;;  %2664 = vmatpush.bf16.msra.mxu3 %v6379_v38 }
 0x193   : > { %1863 = vmatmul.bf16.gmra.mxu3 %v7497_v60  ;;  %v6585_v60 = vld [vmem:[%s6930_s11 + $0x34] sm:$0xf] }
 0x194   : > { %v7514_v5 = vpack.c.b16 %v1471_v13, %v1470_v15  ;;  %v1351_v21 = vrot.slane %v6585_v60, 5  ;;  %v5755_v15 = vrot.slane %v6587_v35, 9  ;;  %v6363_v60 = vld [vmem:[#allocation5 + $0x178] sm:$0xff]  ;;  %v6349_v35 = vld [vmem:[#allocation5 + $0x108] sm:$0xff] }
 0x195   : > { %2230 = vmatpush.bf16.msrb.mxu1 %v6363_v60  ;;  %2024 = vmatpush.bf16.msra.mxu0 %v6349_v35  ;;  %v6377_v60 = vld [vmem:[#allocation5 + $0x1e8] sm:$0xff]  ;;  %v6367_v35 = vld [vmem:[#allocation5 + $0x198] sm:$0xff] }
 0x196   : > { %v7502_v20 = vpop.f32.mrf.mxu3  ;;  %v7504_v34 = vpop.f32.mrf.mxu0  ;;  %v1353_v13 = vrot.slane %v1351_v21, 4  ;;  %v1352_v55 = vsel %vm7035_vm5, %v5755_v15, %v1351_v21  ;;  %v6376_v15 = vld [vmem:[#allocation5 + $0x1e0] sm:$0xff] }
 0x197   : > { %9097 = vst [vmem:[#allocation68_spill] sm:$0xff] %v7502_v20  ;;  %v1472_v38 = vunpack.c.l.b16 %v1352_v55  ;;  %v6360_v55 = vld [vmem:[#allocation5 + $0x160] sm:$0xff] }
 0x199   : > { %v1663_v23 = vpop.f32.mrf.mxu2  ;;  %2231 = vmatpush.bf16.msrb.mxu1 %v6362_v49 }
 0x19e   : > { %v7512_v4 = vpop.f32.mrf.mxu3  ;;  %v1020_v20 = vpop.f32.mrf.mxu0 }
 0x19f   : > { %9099 = vst [vmem:[#allocation70_spill] sm:$0xff] %v7512_v4  ;;  %v1276_v12 = vadd.f32 %v7217_v47, %v1020_v20  ;;  %v6588_v4 = vld [vmem:[%s6930_s11 + $0x38] sm:$0xf]  ;;  %v6370_v47 = vld [vmem:[#allocation5 + $0x1b0] sm:$0xff] }
 0x1a0   : > { %v1354_v57 = vrot.slane %v6588_v4, 5  ;;  %2437 = vmatpush.bf16.msrb.mxu2 %v6370_v47  ;;  %v6369_v4 = vld [vmem:[#allocation5 + $0x1a8] sm:$0xff] }
 0x1a1   : > { %v7518_v30 = vadd.f32 %v1658_v39, %v1276_v12  ;;  %1607 = vmatmul.bf16.gmra.mxu0 %v7514_v5  ;;  %v6378_v39 = vld [vmem:[#allocation5 + $0x1f0] sm:$0xff]  ;;  %v6361_v47 = vld [vmem:[#allocation5 + $0x168] sm:$0xff]  ;;  %v7535_v1 = vpop.f32.mrf.mxu2 }
 0x1a2   : > { %2665 = vmatpush.bf16.msra.mxu3 %v6378_v39  ;;  %9102 = vst [vmem:[#allocation73_spill] sm:$0xff] %v7535_v1  ;;  %2232 = vmatpush.bf16.msrb.mxu1 %v6361_v47 }
 0x1a3   : > { %1868 = vmatmul.bf16.gmra.mxu3 %v7522_v11  ;;  %v1355_v11 = vsel %vm7035_vm5, %v1353_v13, %v1354_v57 }
 0x1a4   : > { %v1473_v7 = vunpack.c.l.b16 %v1355_v11  ;;  %2438 = vmatpush.bf16.msrb.mxu2 %v6369_v4  ;;  %v6589_v11 = vld [vmem:[%s6930_s11 + $0x40] sm:$0xf] }
 0x1a5   : > { %v1358_v49 = vrot.slane %v6589_v11, 5 }
 0x1a6   : > { %v7527_v20 = vpop.f32.mrf.mxu3  ;;  %v7529_v12 = vpop.f32.mrf.mxu0  ;;  %2666 = vmatpush.bf16.msra.mxu3 %v6377_v60  ;;  %v7539_v57 = vpack.c.b16 %v1473_v7, %v1472_v38  ;;  %2233 = vmatpush.bf16.msrb.mxu1 %v6360_v55  ;;  %v6375_v7 = vld [vmem:[#allocation5 + $0x1d8] sm:$0xff]  ;;  %v7547_v38 = vld [vmem:[%s6930_s11 + $0xc0] sm:$0xff] }
 0x1a7   : > { %9101 = vst [vmem:[#allocation72_spill] sm:$0xff] %v7527_v20  ;;  %v6368_v20 = vld [vmem:[#allocation5 + $0x1a0] sm:$0xff]  ;;  %v1360_v47 = vrot.slane %v1358_v49, 4 }
 0x1a8   : > { %2439 = vmatpush.bf16.msrb.mxu2 %v6368_v20  ;;  %9104 = vst [vmem:[#allocation75_spill] sm:$0xff] %v7547_v38  ;;  %v6591_v20 = vld [vmem:[%s6930_s11 + $0x3c] sm:$0xf] }
 0x1a9   : > { %v5756_v60 = vrot.slane %v6591_v20, 9 }
 0x1aa   : > { %2667 = vmatpush.bf16.msra.mxu3 %v6376_v15  ;;  %v6359_v15 = vld [vmem:[#allocation5 + $0x158] sm:$0xff] }
 0x1ab   : > { %2234 = vmatpush.bf16.msrb.mxu1 %v6359_v15  ;;  %v1359_v20 = vsel %vm7035_vm5, %v5756_v60, %v1358_v49 }
 0x1ac   : > { %2440 = vmatpush.bf16.msrb.mxu2 %v6367_v35  ;;  %v6358_v35 = vld [vmem:[#allocation5 + $0x150] sm:$0xff]  ;;  %v1474_v15 = vunpack.c.l.b16 %v1359_v20 }
 0x1ae   : > { %v7537_v21 = vpop.f32.mrf.mxu3  ;;  %v1025_v13 = vpop.f32.mrf.mxu0  ;;  %2668 = vmatpush.bf16.msra.mxu3 %v6375_v7  ;;  %v6365_v7 = vld [vmem:[#allocation5 + $0x188] sm:$0xff] }
 0x1af   : > { %9103 = vst [vmem:[#allocation74_spill] sm:$0xff] %v7537_v21  ;;  %v1281_v39 = vadd.f32 %v7249_v63, %v1025_v13  ;;  %v6592_v21 = vld [vmem:[%s6930_s11 + $0x44] sm:$0xf]  ;;  %2235 = vmatpush.bf16.msrb.mxu1 %v6358_v35 }
 0x1b0   : > { %v1361_v11 = vrot.slane %v6592_v21, 5  ;;  %v6348_v63 = vld [vmem:[#allocation5 + $0x100] sm:$0xff]  ;;  %v6366_v13 = vld [vmem:[#allocation5 + $0x190] sm:$0xff] }
 0x1b1   : > { %v7543_v4 = vadd.f32 %v1663_v23, %v1281_v39  ;;  %1612 = vmatmul.bf16.gmra.mxu0 %v7539_v57  ;;  %v6374_v39 = vld [vmem:[#allocation5 + $0x1d0] sm:$0xff]  ;;  %2441 = vmatpush.bf16.msrb.mxu2 %v6366_v13  ;;  %v6593_v13 = vld [vmem:[%s6930_s11 + $0x4c] sm:$0xf] }
 0x1b2   : > { %2025 = vmatpush.bf16.msra.mxu0 %v6348_v63  ;;  %v1362_v21 = vsel %vm7035_vm5, %v1360_v47, %v1361_v11  ;;  %2669 = vmatpush.bf16.msra.mxu3 %v6374_v39  ;;  %v1248_v63 = vadd.f32 %v7391_v10, %v7389_v50  ;;  %v6372_v11 = vld [vmem:[#allocation5 + $0x1c0] sm:$0xff]  ;;  %v1365_v39 = vrot.slane %v6593_v13, 5  ;;  %v1253_v13 = vadd.f32 %v7416_v17, %v7414_v27 }
 0x1b3   : > { %1873 = vmatmul.bf16.gmra.mxu3 %v7547_v38  ;;  %v1668_v38 = vpop.f32.mrf.mxu2  ;;  %v6598_v27 = vld [vmem:[%s6930_s11 + $0x24] sm:$0xff] }
 0x1b4   : > { %v1698_v49 = vadd.f32 %v7328_v46, %v1248_v63  ;;  %v6596_v63 = vld [vmem:[%s6930_s11 + $0x48] sm:$0xf] }
 0x1b5   : > { %2442 = vmatpush.bf16.msrb.mxu2 %v6365_v7  ;;  %v7577_v7 = vld [vmem:[%s6930_s11 + $0xcc] sm:$0xff] }
 0x1b6   : > { %v1834_v23 = vpop.f32.mrf.mxu3  ;;  %v7555_v1 = vpop.f32.mrf.mxu0 }
 0x1b7   : > { %v7553_v55 = vadd.f32 %v1834_v23, %v7379_v28  ;;  %9106 = vst [vmem:[#allocation77_spill] sm:$0xff] %v7555_v1  ;;  %v1475_v28 = vunpack.c.l.b16 %v1362_v21  ;;  %v6373_v23 = vld [vmem:[#allocation5 + $0x1c8] sm:$0xff]  ;;  %v6364_v1 = vld [vmem:[#allocation5 + $0x180] sm:$0xff] }
 0x1b8   : > { %2670 = vmatpush.bf16.msra.mxu3 %v6373_v23  ;;  %v6356_v21 = vld [vmem:[#allocation5 + $0x140] sm:$0xff] }
 0x1b9   : > { %9105 = vst [vmem:[#allocation76_spill] sm:$0xff] %v7553_v55  ;;  %v6357_v55 = vld [vmem:[#allocation5 + $0x148] sm:$0xff]  ;;  %v7564_v47 = vpack.c.b16 %v1475_v28, %v1474_v15  ;;  %2443 = vmatpush.bf16.msrb.mxu2 %v6364_v1  ;;  %v5757_v15 = vrot.slane %v6596_v63, 9  ;;  %v1367_v28 = vrot.slane %v1365_v39, 4  ;;  %v6597_v1 = vld [vmem:[%s6930_s11 + $0x50] sm:$0xf] }
 0x1ba   : > { %2236 = vmatpush.bf16.msrb.mxu1 %v6357_v55  ;;  %v6594_v55 = vld [vmem:[%s6930_s11 + $0x18] sm:$0xff]  ;;  %v1368_v23 = vrot.slane %v6597_v1, 5 }
 0x1bb   : > { %v7570_v46 = vpop.f32.mrf.mxu2 }
 0x1bc   : > { %2671 = vmatpush.bf16.msra.mxu3 %v6372_v11  ;;  %2444 = vmatmul.bf16.vlgmr.msrb.gmra.mxu2 %v6594_v55  ;;  %v1366_v11 = vsel %vm7035_vm5, %v5757_v15, %v1365_v39 }
 0x1be   : > { %v1836_v60 = vpop.f32.mrf.mxu3  ;;  %v1030_v10 = vpop.f32.mrf.mxu0  ;;  %2237 = vmatpush.bf16.msrb.mxu1 %v6356_v21 }
 0x1bf   : > { %v7566_v50 = vadd.f32 %v1836_v60, %v1698_v49  ;;  %v1286_v20 = vadd.f32 %v7281_v32, %v1030_v10  ;;  %v6387_v32 = vld [vmem:[#allocation5 + $0x238] sm:$0xff]  ;;  %v1369_v10 = vsel %vm7035_vm5, %v1367_v28, %v1368_v23 }
 0x1c0   : > { %2876 = vmatpush.bf16.msrb.mxu0 %v6387_v32  ;;  %v1477_v21 = vunpack.c.l.b16 %v1369_v10 }
 0x1c1   : > { %v7572_v35 = vadd.f32 %v1668_v38, %v1286_v20  ;;  %1617 = vmatmul.bf16.gmra.mxu0 %v7564_v47  ;;  %2238 = vmatmul.bf16.vlgmr.msrb.gmra.mxu1 %v7464_v48  ;;  %v1476_v20 = vunpack.c.l.b16 %v1366_v11  ;;  %v1700_v48 = vadd.f32 %v7364_v2, %v1253_v13 }
 0x1c3   : > { %1878 = vmatmul.bf16.gmra.mxu3 %v7577_v7  ;;  %v1673_v55 = vpop.f32.mrf.mxu2 }
 0x1c6   : > { %v1839_v49 = vpop.f32.mrf.mxu3  ;;  %v7586_v60 = vpop.f32.mrf.mxu0 }
 0x1c7   : > { %v7584_v38 = vadd.f32 %v1839_v49, %v7408_v25  ;;  %v7595_v25 = vpack.c.b16 %v1477_v21, %v1476_v20  ;;  %v7600_v49 = vld [vmem:[%s6930_s11 + $0xd8] sm:$0xff] }
 0x1cb   : > { %v7608_v2 = vpop.f32.mrf.mxu2 }
 0x1cc   : > { %2449 = vmatmul.bf16.gmra.mxu2 %v6598_v27 }
 0x1ce   : > { %v1841_v63 = vpop.f32.mrf.mxu3  ;;  %v1035_v32 = vpop.f32.mrf.mxu0 }
 0x1cf   : > { %v7597_v1 = vadd.f32 %v1841_v63, %v1700_v48  ;;  %v1291_v39 = vadd.f32 %v7315_v62, %v1035_v32  ;;  %v1258_v62 = vadd.f32 %v7439_v9, %v7437_v58  ;;  %v1262_v63 = vpop.f32.mrf.mxu1  ;;  %v6386_v32 = vld [vmem:[#allocation5 + $0x230] sm:$0xff] }
 0x1d0   : > { %2877 = vmatpush.bf16.msrb.mxu0 %v6386_v32 }
 0x1d1   : > { %v7603_v15 = vadd.f32 %v1673_v55, %v1291_v39  ;;  %1622 = vmatmul.bf16.gmra.mxu0 %v7595_v25  ;;  %2243 = vmatmul.bf16.gmra.mxu1 %v7489_v29  ;;  %v1702_v11 = vadd.f32 %v7395_v45, %v1258_v62 }
 0x1d3   : > { %1883 = vmatmul.bf16.gmra.mxu3 %v7600_v49  ;;  %v1678_v21 = vpop.f32.mrf.mxu2 }
 0x1d6   : > { %v1844_v17 = vpop.f32.mrf.mxu3  ;;  %v7614_v23 = vpop.f32.mrf.mxu0 }
 0x1d7   : > { %v7612_v28 = vadd.f32 %v1844_v17, %v7428_v24  ;;  %v6599_v24 = vld [vmem:[%s6930_s11 + $0x30] sm:$0xff] }
 0x1dc   : > { %2454 = vmatmul.bf16.gmra.mxu2 %v6599_v24 }
 0x1de   : > { %v1846_v10 = vpop.f32.mrf.mxu3  ;;  %v1040_v20 = vpop.f32.mrf.mxu0 }
 0x1df   : > { %v7619_v13 = vadd.f32 %v1846_v10, %v1702_v11  ;;  %v1296_v55 = vadd.f32 %v7351_v8, %v1040_v20  ;;  %v1263_v8 = vadd.f32 %v1262_v63, %v7456_v19  ;;  %v6600_v11 = vld [vmem:[%s6930_s11 + $0x3c] sm:$0xff] }
 0x1e1   : > { %v7622_v48 = vadd.f32 %v1678_v21, %v1296_v55  ;;  %2026 = vmatmul.bf16.vlgmr.msra.gmra.mxu0 %v6967_v14  ;;  %2248 = vmatmul.bf16.gmra.mxu1 %v7514_v5  ;;  %v1704_v14 = vadd.f32 %v7422_v26, %v1263_v8 }
 0x1e3   : > { %2672 = vmatmul.bf16.vlgmr.msra.gmra.mxu3 %v6982_v36 }
 0x1e6   : > { %v1849_v58 = vpop.f32.mrf.mxu3  ;;  %v7631_v9 = vpop.f32.mrf.mxu0 }
 0x1e7   : > { %v7629_v45 = vadd.f32 %v1849_v58, %v7446_v0  ;;  %v1213_v0 = vadd.f32 %v7151_v44, %v7149_v43  ;;  %v6601_v44 = vld [vmem:[%s6930_s11 + $0x48] sm:$0xff] }
 0x1ec   : > { %2459 = vmatmul.bf16.gmra.mxu2 %v6600_v11 }
 0x1ee   : > { %v1851_v39 = vpop.f32.mrf.mxu3  ;;  %v1593_v17 = vpop.f32.mrf.mxu0 }
 0x1ef   : > { %v7635_v27 = vadd.f32 %v1851_v39, %v1704_v14  ;;  %v7638_v62 = vadd.f32 %v1593_v17, %v7137_v22  ;;  %v9108_v17 = vld [vmem:[#allocation69_spill] sm:$0xff] }
 0x1f1   : > { %2031 = vmatmul.bf16.gmra.mxu0 %v6982_v36  ;;  %2253 = vmatmul.bf16.gmra.mxu1 %v7539_v57  ;;  %v1268_v36 = vadd.f32 %v7164_v3, %v7481_v59 }
 0x1f3   : > { %2677 = vmatmul.bf16.gmra.mxu3 %v6997_v61  ;;  %v1706_v22 = vadd.f32 %v7444_v37, %v1268_v36  ;;  %v9109_v36 = vld [vmem:[#allocation28_spill] sm:$0xff] }
 0x1f6   : > { %v1854_v19 = vpop.f32.mrf.mxu3  ;;  %v1595_v10 = vpop.f32.mrf.mxu0 }
 0x1f7   : > { %v7647_v26 = vadd.f32 %v1854_v19, %v7468_v31  ;;  %v7649_v20 = vadd.f32 %v1595_v10, %v1213_v0  ;;  %v1218_v31 = vadd.f32 %v7187_v42, %v7185_v41 }
 0x1fc   : > { %2464 = vmatmul.bf16.gmra.mxu2 %v6601_v44  ;;  %v9113_v44 = vld [vmem:[#allocation14_spill] sm:$0xff] }
 0x1fe   : > { %v1856_v21 = vpop.f32.mrf.mxu3  ;;  %v1598_v24 = vpop.f32.mrf.mxu0 }
 0x1ff   : > { %v7654_v55 = vadd.f32 %v1856_v21, %v1706_v22  ;;  %v7657_v43 = vadd.f32 %v1598_v24, %v7173_v18  ;;  %v6385_v18 = vld [vmem:[#allocation5 + $0x228] sm:$0xff]  ;;  %v9112_v21 = vld [vmem:[#allocation30_spill] sm:$0xff] }
 0x200   : > { %2878 = vmatpush.bf16.msrb.mxu0 %v6385_v18  ;;  %v9111_v22 = vld [vmem:[#allocation29_spill] sm:$0xff] }
 0x201   : > { %2036 = vmatmul.bf16.gmra.mxu0 %v6997_v61  ;;  %2258 = vmatmul.bf16.gmra.mxu1 %v7564_v47  ;;  %v1273_v61 = vadd.f32 %v7200_v6, %v7504_v34  ;;  %v1223_v6 = vadd.f32 %v7223_v54, %v7221_v51  ;;  %v6603_v54 = vld [vmem:[%s6930_s11 + $0x60] sm:$0xff]  ;;  %v1228_v24 = vadd.f32 %v9112_v21, %v9111_v22  ;;  %v9114_v18 = vld [vmem:[#allocation77_spill] sm:$0xff] }
 0x203   : > { %2682 = vmatmul.bf16.gmra.mxu3 %v7012_v33  ;;  %v1708_v58 = vadd.f32 %v7477_v40, %v1273_v61  ;;  %v9115_v61 = vld [vmem:[#allocation32_spill] sm:$0xff] }
 0x206   : > { %v1859_v3 = vpop.f32.mrf.mxu3  ;;  %v1600_v59 = vpop.f32.mrf.mxu0 }
 0x207   : > { %v7666_v37 = vadd.f32 %v1859_v3, %v7493_v52  ;;  %v7668_v63 = vadd.f32 %v1600_v59, %v1218_v31  ;;  %v6602_v52 = vld [vmem:[%s6930_s11 + $0x54] sm:$0xff] }
 0x20c   : > { %2469 = vmatmul.bf16.gmra.mxu2 %v6602_v52 }
 0x20e   : > { %v1861_v32 = vpop.f32.mrf.mxu3  ;;  %v1603_v41 = vpop.f32.mrf.mxu0 }
 0x20f   : > { %v7673_v8 = vadd.f32 %v1861_v32, %v1708_v58  ;;  %v7676_v42 = vadd.f32 %v1603_v41, %v7209_v56  ;;  %v9107_v56 = vld [vmem:[#allocation26_spill] sm:$0xff]  ;;  %v9116_v58 = vld [vmem:[#allocation73_spill] sm:$0xff] }
 0x211   : > { %2041 = vmatmul.bf16.gmra.mxu0 %v7012_v33  ;;  %2263 = vmatmul.bf16.gmra.mxu1 %v7595_v25  ;;  %v1278_v33 = vadd.f32 %v9107_v56, %v7529_v12 }
 0x213   : > { %2687 = vmatmul.bf16.gmra.mxu3 %v7049_v16  ;;  %v1710_v11 = vadd.f32 %v9108_v17, %v1278_v33  ;;  %v9118_v33 = vld [vmem:[#allocation18_spill] sm:$0xff]  ;;  %v9119_v17 = vld [vmem:[#allocation35_spill] sm:$0xff] }
 0x216   : > { %v1864_v34 = vpop.f32.mrf.mxu3  ;;  %v1605_v14 = vpop.f32.mrf.mxu0 }
 0x217   : > { %v7685_v40 = vadd.f32 %v1864_v34, %v7518_v30  ;;  %v7687_v39 = vadd.f32 %v1605_v14, %v1223_v6  ;;  %v9110_v30 = vld [vmem:[#allocation16_spill] sm:$0xff]  ;;  %v9117_v14 = vld [vmem:[#allocation34_spill] sm:$0xff] }
 0x218   : > { %v6384_v34 = vld [vmem:[#allocation5 + $0x220] sm:$0xff] }
 0x219   : > { %2879 = vmatpush.bf16.msrb.mxu0 %v6384_v34 }
 0x21c   : > { %2474 = vmatmul.bf16.gmra.mxu2 %v6603_v54 }
 0x21e   : > { %v1866_v0 = vpop.f32.mrf.mxu3  ;;  %v1608_v10 = vpop.f32.mrf.mxu0 }
 0x21f   : > { %v7692_v19 = vadd.f32 %v1866_v0, %v1710_v11  ;;  %v7695_v51 = vadd.f32 %v1608_v10, %v9109_v36  ;;  %v9120_v11 = vld [vmem:[#allocation36_spill] sm:$0xff]  ;;  %v9121_v36 = vld [vmem:[#allocation15_spill] sm:$0xff] }
 0x220   : > { %v1233_v0 = vadd.f32 %v9120_v11, %v9119_v17  ;;  %v9129_v17 = vld [vmem:[#allocation17_spill] sm:$0xff] }
 0x221   : > { %2046 = vmatmul.bf16.gmra.mxu0 %v7049_v16  ;;  %2268 = vmatmul.bf16.gmra.mxu1 %v9113_v44  ;;  %v1283_v16 = vadd.f32 %v9115_v61, %v9114_v18  ;;  %v6395_v44 = vld [vmem:[#allocation7 + $0x38] sm:$0xff] }
 0x222   : > { %3854 = vmatpush.bf16.msra.mxu2 %v6395_v44 }
 0x223   : > { %2692 = vmatmul.bf16.gmra.mxu3 %v9110_v30  ;;  %v1712_v32 = vadd.f32 %v9116_v58, %v1283_v16  ;;  %v9125_v58 = vld [vmem:[#allocation40_spill] sm:$0xff] }
 0x226   : > { %v1869_v12 = vpop.f32.mrf.mxu3  ;;  %v1610_v3 = vpop.f32.mrf.mxu0 }
 0x227   : > { %v7704_v31 = vadd.f32 %v1869_v12, %v7543_v4  ;;  %v7706_v59 = vadd.f32 %v1610_v3, %v1228_v24  ;;  %v6604_v4 = vld [vmem:[%s6930_s11 + $0x6c] sm:$0xff]  ;;  %v1680_v3 = vpop.f32.mrf.mxu2 }
 0x228   : > { %v9123_v24 = vld [vmem:[#allocation38_spill] sm:$0xff] }
 0x22c   : > { %2479 = vmatmul.bf16.gmra.mxu2 %v6604_v4 }
 0x22e   : > { %v1871_v41 = vpop.f32.mrf.mxu3  ;;  %v1613_v6 = vpop.f32.mrf.mxu0 }
 0x22f   : > { %v7711_v52 = vadd.f32 %v1871_v41, %v1712_v32  ;;  %v7714_v56 = vadd.f32 %v1613_v6, %v9117_v14  ;;  %v9126_v41 = vld [vmem:[#allocation20_spill] sm:$0xff]  ;;  %v9127_v14 = vld [vmem:[#allocation41_spill] sm:$0xff] }
 0x231   : > { %2051 = vmatmul.bf16.gmra.mxu0 %v9110_v30  ;;  %2273 = vmatmul.bf16.gmra.mxu1 %v9121_v36  ;;  %v1288_v30 = vadd.f32 %v9123_v24, %v7586_v60  ;;  %v9128_v60 = vld [vmem:[#allocation42_spill] sm:$0xff] }
 0x232   : > { %v1238_v4 = vadd.f32 %v9128_v60, %v9127_v14  ;;  %v9135_v60 = vld [vmem:[#allocation22_spill] sm:$0xff] }
 0x233   : > { %2697 = vmatmul.bf16.gmra.mxu3 %v9118_v33  ;;  %v1714_v12 = vadd.f32 %v7570_v46, %v1288_v30 }
 0x236   : > { %v1874_v10 = vpop.f32.mrf.mxu3  ;;  %v1615_v22 = vpop.f32.mrf.mxu0 }
 0x237   : > { %v7723_v54 = vadd.f32 %v1874_v10, %v7572_v35  ;;  %v7725_v21 = vadd.f32 %v1615_v22, %v1233_v0  ;;  %v6605_v35 = vld [vmem:[%s6930_s11 + $0x78] sm:$0xff] }
 0x239   : > { %9122 = vst [vmem:[#allocation26_spill] sm:$0xff] %v7723_v54 }
 0x23c   : > { %2484 = vmatmul.bf16.gmra.mxu2 %v6605_v35  ;;  %v9133_v35 = vld [vmem:[#allocation46_spill] sm:$0xff] }
 0x23e   : > { %v1876_v18 = vpop.f32.mrf.mxu3  ;;  %v1618_v16 = vpop.f32.mrf.mxu0 }
 0x23f   : > { %v7730_v61 = vadd.f32 %v1876_v18, %v1714_v12  ;;  %v7733_v32 = vadd.f32 %v1618_v16, %v9125_v58  ;;  %v2239_v6 = vpop.f32.mrf.mxu1  ;;  %v2445_v34 = vpop.f32.mrf.mxu2 }
 0x241   : > { %9124 = vst [vmem:[#allocation69_spill] sm:$0xff] %v7730_v61  ;;  %2056 = vmatmul.bf16.gmra.mxu0 %v9118_v33  ;;  %2278 = vmatmul.bf16.gmra.mxu1 %v9129_v17  ;;  %v9131_v33 = vld [vmem:[#allocation44_spill] sm:$0xff] }
 0x242   : > { %v1293_v22 = vadd.f32 %v9131_v33, %v7614_v23 }
 0x243   : > { %2702 = vmatmul.bf16.gmra.mxu3 %v9126_v41 }
 0x244   : > { %v1716_v30 = vadd.f32 %v7608_v2, %v1293_v22  ;;  %v9137_v2 = vld [vmem:[#allocation48_spill] sm:$0xff] }
 0x246   : > { %v1879_v46 = vpop.f32.mrf.mxu3  ;;  %v1620_v0 = vpop.f32.mrf.mxu0 }
 0x247   : > { %v7742_v11 = vadd.f32 %v1879_v46, %v7603_v15  ;;  %v7744_v10 = vadd.f32 %v1620_v0, %v1238_v4  ;;  %v2241_v24 = vpop.f32.mrf.mxu1  ;;  %v2447_v12 = vpop.f32.mrf.mxu2  ;;  %v9134_v15 = vld [vmem:[#allocation58_spill] sm:$0xff]  ;;  %v6383_v46 = vld [vmem:[#allocation5 + $0x218] sm:$0xff] }
 0x248   : > { %2880 = vmatpush.bf16.msrb.mxu0 %v6383_v46  ;;  %v9136_v0 = vld [vmem:[#allocation47_spill] sm:$0xff] }
 0x249   : > { %9130 = vst [vmem:[#allocation28_spill] sm:$0xff] %v7742_v11  ;;  %v1243_v33 = vadd.f32 %v9137_v2, %v9136_v0  ;;  %v9141_v11 = vld [vmem:[#allocation52_spill] sm:$0xff] }
 0x24a   : > { %v1889_v61 = vadd.f32 %v9141_v11, %v7638_v62  ;;  %v9145_v62 = vld [vmem:[#allocation53_spill] sm:$0xff] }
 0x24b   : > { %v1890_v11 = vadd.f32 %v9145_v62, %v7649_v20 }
 0x24c   : > { %2489 = vmatmul.bf16.gmra.mxu2 %v9134_v15 }
 0x24e   : > { %v1881_v18 = vpop.f32.mrf.mxu3  ;;  %v1623_v58 = vpop.f32.mrf.mxu0 }
 0x24f   : > { %v7749_v16 = vadd.f32 %v1881_v18, %v1716_v30  ;;  %v7752_v14 = vadd.f32 %v1623_v58, %v9133_v35  ;;  %v2244_v4 = vpop.f32.mrf.mxu1  ;;  %v2450_v23 = vpop.f32.mrf.mxu2  ;;  %v9138_v30 = vld [vmem:[#allocation19_spill] sm:$0xff] }
 0x251   : > { %9132 = vst [vmem:[#allocation16_spill] sm:$0xff] %v7749_v16  ;;  %2061 = vmatmul.bf16.gmra.mxu0 %v9126_v41  ;;  %2283 = vmatmul.bf16.gmra.mxu1 %v9138_v30  ;;  %v9140_v41 = vld [vmem:[#allocation50_spill] sm:$0xff] }
 0x252   : > { %v1298_v15 = vadd.f32 %v9140_v41, %v7631_v9 }
 0x253   : > { %2707 = vmatmul.bf16.gmra.mxu3 %v9135_v60 }
 0x254   : > { %v1718_v16 = vadd.f32 %v1680_v3, %v1298_v15 }
 0x256   : > { %v1884_v22 = vpop.f32.mrf.mxu3  ;;  %v1625_v58 = vpop.f32.mrf.mxu0 }
 0x257   : > { %v7761_v18 = vadd.f32 %v1884_v22, %v7622_v48  ;;  %v7763_v35 = vadd.f32 %v1625_v58, %v1243_v33  ;;  %v2246_v17 = vpop.f32.mrf.mxu1  ;;  %v2452_v36 = vpop.f32.mrf.mxu2  ;;  %v9143_v33 = vld [vmem:[#allocation61_spill] sm:$0xff]  ;;  %v9144_v22 = vld [vmem:[#allocation24_spill] sm:$0xff]  ;;  %v6403_v58 = vld [vmem:[#allocation7 + $0x78] sm:$0xff] }
 0x258   : > { %3717 = vmatpush.bf16.msra.mxu1 %v6403_v58 }
 0x259   : > { %9139 = vst [vmem:[#allocation29_spill] sm:$0xff] %v7761_v18 }
 0x25c   : > { %2494 = vmatmul.bf16.gmra.mxu2 %v9143_v33 }
 0x25e   : > { %v1886_v46 = vpop.f32.mrf.mxu3  ;;  %v2027_v2 = vpop.f32.mrf.mxu0 }
 0x25f   : > { %v7769_v0 = vadd.f32 %v1886_v46, %v1718_v16  ;;  %v2117_v30 = vadd.f32 %v2027_v2, %v1889_v61  ;;  %v2249_v9 = vpop.f32.mrf.mxu1  ;;  %v2455_v41 = vpop.f32.mrf.mxu2  ;;  %v9146_v16 = vld [vmem:[#allocation21_spill] sm:$0xff] }
 0x261   : > { %9142 = vst [vmem:[#allocation30_spill] sm:$0xff] %v7769_v0  ;;  %v2329_v48 = vadd.f32 %v2239_v6, %v2117_v30  ;;  %2066 = vmatmul.bf16.gmra.mxu0 %v9135_v60  ;;  %2288 = vmatmul.bf16.gmra.mxu1 %v9146_v16 }
 0x263   : > { %2712 = vmatmul.bf16.gmra.mxu3 %v9144_v22  ;;  %v2535_v3 = vadd.f32 %v2445_v34, %v2329_v48  ;;  %v9147_v34 = vld [vmem:[#allocation55_spill] sm:$0xff] }
 0x264   : > { %v1891_v48 = vadd.f32 %v9147_v34, %v7657_v43 }
 0x266   : > { %v2673_v15 = vpop.f32.mrf.mxu3  ;;  %v2029_v6 = vpop.f32.mrf.mxu0 }
 0x267   : > { %v7777_v61 = vadd.f32 %v2673_v15, %v2535_v3  ;;  %v2118_v60 = vadd.f32 %v2029_v6, %v1890_v11  ;;  %v2251_v46 = vpop.f32.mrf.mxu1  ;;  %v2457_v33 = vpop.f32.mrf.mxu2  ;;  %v9148_v3 = vld [vmem:[#allocation64_spill] sm:$0xff]  ;;  %v9149_v15 = vld [vmem:[#allocation27_spill] sm:$0xff] }
 0x268   : > { %v9150_v11 = vld [vmem:[#allocation56_spill] sm:$0xff] }
 0x269   : > { %v2330_v30 = vadd.f32 %v2241_v24, %v2118_v60  ;;  %v1892_v6 = vadd.f32 %v9150_v11, %v7668_v63  ;;  %v9151_v60 = vld [vmem:[#allocation23_spill] sm:$0xff] }
 0x26b   : > { %v2536_v2 = vadd.f32 %v2447_v12, %v2330_v30 }
 0x26c   : > { %2499 = vmatmul.bf16.gmra.mxu2 %v9148_v3 }
 0x26e   : > { %v2675_v44 = vpop.f32.mrf.mxu3  ;;  %v2032_v18 = vpop.f32.mrf.mxu0 }
 0x26f   : > { %v7781_v0 = vadd.f32 %v2675_v44, %v2536_v2  ;;  %v2119_v54 = vadd.f32 %v2032_v18, %v1891_v48  ;;  %v2254_v58 = vpop.f32.mrf.mxu1  ;;  %v2460_v62 = vpop.f32.mrf.mxu2  ;;  %v6382_v18 = vld [vmem:[#allocation5 + $0x210] sm:$0xff] }
 0x270   : > { %2881 = vmatpush.bf16.msrb.mxu0 %v6382_v18 }
 0x271   : > { %v2331_v20 = vadd.f32 %v2244_v4, %v2119_v54  ;;  %2071 = vmatmul.bf16.gmra.mxu0 %v9144_v22  ;;  %2293 = vmatmul.bf16.gmra.mxu1 %v9151_v60 }
 0x273   : > { %2717 = vmatmul.bf16.gmra.mxu3 %v9149_v15  ;;  %v2537_v24 = vadd.f32 %v2450_v23, %v2331_v20  ;;  %v9152_v23 = vld [vmem:[#allocation59_spill] sm:$0xff] }
 0x274   : > { %v1893_v48 = vadd.f32 %v9152_v23, %v7676_v42  ;;  %v9156_v42 = vld [vmem:[#allocation25_spill] sm:$0xff] }
 0x276   : > { %v2678_v12 = vpop.f32.mrf.mxu3  ;;  %v2034_v30 = vpop.f32.mrf.mxu0 }
 0x277   : > { %v7789_v43 = vadd.f32 %v2678_v12, %v2537_v24  ;;  %v2120_v54 = vadd.f32 %v2034_v30, %v1892_v6  ;;  %v2256_v22 = vpop.f32.mrf.mxu1  ;;  %v2462_v44 = vpop.f32.mrf.mxu2  ;;  %v9153_v24 = vld [vmem:[#allocation67_spill] sm:$0xff]  ;;  %v9154_v12 = vld [vmem:[#allocation33_spill] sm:$0xff]  ;;  %v6394_v30 = vld [vmem:[#allocation7 + $0x30] sm:$0xff] }
 0x278   : > { %3855 = vmatpush.bf16.msra.mxu2 %v6394_v30  ;;  %v9159_v30 = vld [vmem:[#allocation39_spill] sm:$0xff] }
 0x279   : > { %v2332_v4 = vadd.f32 %v2246_v17, %v2120_v54  ;;  %v9155_v54 = vld [vmem:[#allocation60_spill] sm:$0xff] }
 0x27b   : > { %v2538_v2 = vadd.f32 %v2452_v36, %v2332_v4  ;;  %v1894_v4 = vadd.f32 %v9155_v54, %v7687_v39 }
 0x27c   : > { %2504 = vmatmul.bf16.gmra.mxu2 %v9153_v24 }
 0x27e   : > { %v2680_v34 = vpop.f32.mrf.mxu3  ;;  %v2037_v3 = vpop.f32.mrf.mxu0 }
 0x27f   : > { %v7793_v20 = vadd.f32 %v2680_v34, %v2538_v2  ;;  %v2121_v63 = vadd.f32 %v2037_v3, %v1893_v48  ;;  %v2259_v6 = vpop.f32.mrf.mxu1  ;;  %v2465_v36 = vpop.f32.mrf.mxu2 }
 0x281   : > { %v2333_v11 = vadd.f32 %v2249_v9, %v2121_v63  ;;  %2076 = vmatmul.bf16.gmra.mxu0 %v9149_v15  ;;  %2298 = vmatmul.bf16.gmra.mxu1 %v9156_v42  ;;  %v6402_v15 = vld [vmem:[#allocation7 + $0x70] sm:$0xff] }
 0x282   : > { %3718 = vmatpush.bf16.msra.mxu1 %v6402_v15  ;;  %v9161_v15 = vld [vmem:[#allocation31_spill] sm:$0xff] }
 0x283   : > { %2722 = vmatmul.bf16.gmra.mxu3 %v9154_v12  ;;  %v2539_v17 = vadd.f32 %v2455_v41, %v2333_v11  ;;  %v9157_v11 = vld [vmem:[#allocation62_spill] sm:$0xff] }
 0x284   : > { %v1895_v24 = vadd.f32 %v9157_v11, %v7695_v51 }
 0x286   : > { %v2683_v18 = vpop.f32.mrf.mxu3  ;;  %v2039_v9 = vpop.f32.mrf.mxu0 }
 0x287   : > { %v7801_v2 = vadd.f32 %v2683_v18, %v2539_v17  ;;  %v2122_v34 = vadd.f32 %v2039_v9, %v1894_v4  ;;  %v2261_v48 = vpop.f32.mrf.mxu1  ;;  %v2467_v63 = vpop.f32.mrf.mxu2  ;;  %v9158_v17 = vld [vmem:[#allocation71_spill] sm:$0xff] }
 0x288   : > { %v9160_v9 = vld [vmem:[#allocation63_spill] sm:$0xff] }
 0x289   : > { %v2334_v23 = vadd.f32 %v2251_v46, %v2122_v34  ;;  %v1896_v34 = vadd.f32 %v9160_v9, %v7706_v59 }
 0x28b   : > { %v2540_v3 = vadd.f32 %v2457_v33, %v2334_v23 }
 0x28c   : > { %2509 = vmatmul.bf16.gmra.mxu2 %v9158_v17 }
 0x28e   : > { %v2685_v41 = vpop.f32.mrf.mxu3  ;;  %v2042_v39 = vpop.f32.mrf.mxu0 }
 0x28f   : > { %v7805_v60 = vadd.f32 %v2685_v41, %v2540_v3  ;;  %v2123_v54 = vadd.f32 %v2042_v39, %v1895_v24  ;;  %v2264_v46 = vpop.f32.mrf.mxu1  ;;  %v2470_v4 = vpop.f32.mrf.mxu2  ;;  %v6381_v41 = vld [vmem:[#allocation5 + $0x208] sm:$0xff] }
 0x290   : > { %2882 = vmatpush.bf16.msrb.mxu0 %v6381_v41  ;;  %v9166_v41 = vld [vmem:[#allocation37_spill] sm:$0xff] }
 0x291   : > { %v2335_v42 = vadd.f32 %v2254_v58, %v2123_v54  ;;  %2081 = vmatmul.bf16.gmra.mxu0 %v9154_v12  ;;  %2303 = vmatmul.bf16.gmra.mxu1 %v9161_v15 }
 0x293   : > { %2727 = vmatmul.bf16.gmra.mxu3 %v9159_v30  ;;  %v2541_v18 = vadd.f32 %v2460_v62, %v2335_v42  ;;  %v9162_v62 = vld [vmem:[#allocation65_spill] sm:$0xff] }
 0x294   : > { %v1897_v42 = vadd.f32 %v9162_v62, %v7714_v56 }
 0x296   : > { %v2688_v33 = vpop.f32.mrf.mxu3  ;;  %v2044_v23 = vpop.f32.mrf.mxu0 }
 0x297   : > { %v7813_v51 = vadd.f32 %v2688_v33, %v2541_v18  ;;  %v2124_v3 = vadd.f32 %v2044_v23, %v1896_v34  ;;  %v2266_v12 = vpop.f32.mrf.mxu1  ;;  %v2472_v24 = vpop.f32.mrf.mxu2  ;;  %v9163_v18 = vld [vmem:[#allocation75_spill] sm:$0xff]  ;;  %v9164_v33 = vld [vmem:[#allocation45_spill] sm:$0xff] }
 0x299   : > { %v2336_v58 = vadd.f32 %v2256_v22, %v2124_v3  ;;  %v9165_v3 = vld [vmem:[#allocation66_spill] sm:$0xff] }
 0x29b   : > { %v2542_v11 = vadd.f32 %v2462_v44, %v2336_v58  ;;  %v1898_v58 = vadd.f32 %v9165_v3, %v7725_v21 }
 0x29c   : > { %2514 = vmatmul.bf16.gmra.mxu2 %v9163_v18 }
 0x29e   : > { %v2690_v39 = vpop.f32.mrf.mxu3  ;;  %v2047_v17 = vpop.f32.mrf.mxu0 }
 0x29f   : > { %v7817_v54 = vadd.f32 %v2690_v39, %v2542_v11  ;;  %v2125_v59 = vadd.f32 %v2047_v17, %v1897_v42  ;;  %v2269_v22 = vpop.f32.mrf.mxu1  ;;  %v2475_v44 = vpop.f32.mrf.mxu2  ;;  %v6401_v17 = vld [vmem:[#allocation7 + $0x68] sm:$0xff] }
 0x2a0   : > { %3719 = vmatpush.bf16.msra.mxu1 %v6401_v17 }
 0x2a1   : > { %v2337_v9 = vadd.f32 %v2259_v6, %v2125_v59  ;;  %2086 = vmatmul.bf16.gmra.mxu0 %v9159_v30  ;;  %2308 = vmatmul.bf16.gmra.mxu1 %v9166_v41  ;;  %v6393_v6 = vld [vmem:[#allocation7 + $0x28] sm:$0xff] }
 0x2a2   : > { %3856 = vmatpush.bf16.msra.mxu2 %v6393_v6 }
 0x2a3   : > { %2732 = vmatmul.bf16.gmra.mxu3 %v9164_v33  ;;  %v2543_v34 = vadd.f32 %v2465_v36, %v2337_v9  ;;  %v9169_v9 = vld [vmem:[#allocation68_spill] sm:$0xff] }
 0x2a4   : > { %v1899_v18 = vadd.f32 %v9169_v9, %v7733_v32  ;;  %v9171_v32 = vld [vmem:[#allocation70_spill] sm:$0xff] }
 0x2a5   : > { %v1900_v6 = vadd.f32 %v9171_v32, %v7744_v10  ;;  %v352_v32 = vld [vmem:[%s6930_s11 + $0xd8] sm:$0xf] }
 0x2a6   : > { %v2693_v23 = vpop.f32.mrf.mxu3  ;;  %v2049_v11 = vpop.f32.mrf.mxu0 }
 0x2a7   : > { %v7825_v56 = vadd.f32 %v2693_v23, %v2543_v34  ;;  %v2126_v39 = vadd.f32 %v2049_v11, %v1898_v58  ;;  %v7827_v30 = vpop.f32.mrf.mxu1  ;;  %v7829_v59 = vpop.f32.mrf.mxu2 }
 0x2a8   : > { %9167 = vst [vmem:[#allocation77_spill] sm:$0xff] %v7827_v30  ;;  %v9183_v30 = vld [vmem:[#allocation76_spill] sm:$0xff] }
 0x2a9   : > { %v2338_v62 = vadd.f32 %v2261_v48, %v2126_v39  ;;  %9168 = vst [vmem:[#allocation32_spill] sm:$0xff] %v7829_v59  ;;  %v9170_v48 = vld [vmem:[#allocation51_spill] sm:$0xff] }
 0x2ab   : > { %v2544_v42 = vadd.f32 %v2467_v63, %v2338_v62  ;;  %v9172_v62 = vld [vmem:[#allocation43_spill] sm:$0xff] }
 0x2ac   : > { %2519 = vmatmul.bf16.gmra.mxu2 %v7577_v7 }
 0x2ae   : > { %v2695_v36 = vpop.f32.mrf.mxu3  ;;  %v2052_v34 = vpop.f32.mrf.mxu0 }
 0x2af   : > { %v7833_v21 = vadd.f32 %v2695_v36, %v2544_v42  ;;  %v2127_v23 = vadd.f32 %v2052_v34, %v1899_v18  ;;  %v7838_v63 = vpop.f32.mrf.mxu1  ;;  %v7840_v11 = vpop.f32.mrf.mxu2  ;;  %v9175_v18 = vld [vmem:[#allocation72_spill] sm:$0xff] }
 0x2b0   : > { %v1901_v34 = vadd.f32 %v9175_v18, %v7752_v14  ;;  %v1929_v18 = vshll.u32 %v352_v32, 16 }
 0x2b1   : > { %v2339_v3 = vadd.f32 %v2264_v46, %v2127_v23  ;;  %2091 = vmatmul.bf16.gmra.mxu0 %v9164_v33  ;;  %2313 = vmatmul.bf16.gmra.mxu1 %v9172_v62  ;;  %v354_v62 = vld [vmem:[%s6930_s11 + $0xe0] sm:$0xf] }
 0x2b3   : > { %2737 = vmatmul.bf16.gmra.mxu3 %v9170_v48  ;;  %v2545_v58 = vadd.f32 %v2470_v4, %v2339_v3  ;;  %v6380_v3 = vld [vmem:[#allocation5 + $0x200] sm:$0xff] }
 0x2b4   : > { %2883 = vmatpush.bf16.msrb.mxu0 %v6380_v3 }
 0x2b6   : > { %v2698_v39 = vpop.f32.mrf.mxu3  ;;  %v2054_v46 = vpop.f32.mrf.mxu0 }
 0x2b7   : > { %v7845_v42 = vadd.f32 %v2698_v39, %v2545_v58  ;;  %v2128_v17 = vadd.f32 %v2054_v46, %v1900_v6  ;;  %v7847_v7 = vpop.f32.mrf.mxu1  ;;  %v7849_v9 = vpop.f32.mrf.mxu2  ;;  %v353_v46 = vld [vmem:[%s6930_s11 + $0xdc] sm:$0xf] }
 0x2b8   : > { %9173 = vst [vmem:[#allocation73_spill] sm:$0xff] %v7847_v7 }
 0x2b9   : > { %v2340_v33 = vadd.f32 %v2266_v12, %v2128_v17  ;;  %9174 = vst [vmem:[#allocation34_spill] sm:$0xff] %v7849_v9  ;;  %v9176_v12 = vld [vmem:[#allocation54_spill] sm:$0xff] }
 0x2bb   : > { %v2546_v36 = vadd.f32 %v2472_v24, %v2340_v33  ;;  %v9177_v33 = vld [vmem:[#allocation74_spill] sm:$0xff] }
 0x2bc   : > { %2524 = vmatmul.bf16.gmra.mxu2 %v7600_v49 }
 0x2be   : > { %v2700_v4 = vpop.f32.mrf.mxu3  ;;  %v2057_v10 = vpop.f32.mrf.mxu0 }
 0x2bf   : > { %v7853_v23 = vadd.f32 %v2700_v4, %v2546_v36  ;;  %v2129_v58 = vadd.f32 %v2057_v10, %v1901_v34  ;;  %v7858_v24 = vpop.f32.mrf.mxu1  ;;  %v7862_v17 = vpop.f32.mrf.mxu2  ;;  %v1902_v36 = vadd.f32 %v9177_v33, %v7763_v35  ;;  %v1926_v4 = vshrl.u32 %v352_v32, 16  ;;  %v6392_v35 = vld [vmem:[#allocation7 + $0x20] sm:$0xff] }
 0x2c0   : > { %v1935_v34 = vshll.u32 %v353_v46, 16  ;;  %v1939_v10 = vshrl.u32 %v353_v46, 16  ;;  %v2156_v33 = vrot.slane %v353_v46, 5  ;;  %3857 = vmatpush.bf16.msra.mxu2 %v6392_v35 }
 0x2c1   : > { %v2341_v39 = vadd.f32 %v2269_v22, %v2129_v58  ;;  %2096 = vmatmul.bf16.gmra.mxu0 %v9170_v48  ;;  %v9178_v22 = vld [vmem:[#allocation49_spill] sm:$0xff]  ;;  %v1931_v58 = vrot.slane %v1929_v18, 5  ;;  %v1945_v18 = vshll.u32 %v354_v62, 16 }
 0x2c2   : > { %2318 = vmatmul.bf16.gmra.mxu1 %v9178_v22  ;;  %v1941_v9 = vrot.slane %v1939_v10, 4  ;;  %v2158_v22 = vrot.slane %v2156_v33, 4 }
 0x2c3   : > { %2742 = vmatmul.bf16.gmra.mxu3 %v9176_v12  ;;  %v2547_v6 = vadd.f32 %v2475_v44, %v2341_v39  ;;  %v1928_v44 = vrot.slane %v1926_v4, 4  ;;  %v1937_v39 = vrot.slane %v1935_v34, 5  ;;  %v6315_v34 = vld [vmem:[%s6930_s11 + $0xe4] sm:$0xff] }
 0x2c5   : > { %v1942_v4 = vor.u32 %v1941_v9, %v1937_v39 }
 0x2c6   : > { %v2703_v14 = vpop.f32.mrf.mxu3  ;;  %v2059_v49 = vpop.f32.mrf.mxu0 }
 0x2c7   : > { %v7867_v48 = vadd.f32 %v2703_v14, %v2547_v6  ;;  %v7869_v3 = vadd.f32 %v2059_v49, %v1902_v36  ;;  %v7871_v7 = vpop.f32.mrf.mxu1  ;;  %v7874_v59 = vpop.f32.mrf.mxu2  ;;  %v5869_v14 = vrot.slane %v352_v32, 9  ;;  %v1932_v49 = vor.u32 %v1931_v58, %v1928_v44 }
 0x2c8   : > { %9181 = vst [vmem:[#allocation36_spill] sm:$0xff] %v7871_v7  ;;  %v1947_v44 = vrot.slane %v1945_v18, 5 }
 0x2c9   : > { %9179 = vst [vmem:[#allocation18_spill] sm:$0xff] %v7867_v48  ;;  %v2159_v48 = vrot.slane %v354_v62, 5  ;;  %v2157_v46 = vsel %vm7035_vm5, %v5869_v14, %v2156_v33  ;;  %v9184_v62 = vld [vmem:[#allocation57_spill] sm:$0xff]  ;;  %v1933_v9 = vrot.slane %v1932_v49, 4  ;;  %v7891_v14 = vld [vmem:[%s6930_s11 + $0xe4] sm:$0xf] }
 0x2ca   : > { %9180 = vst [vmem:[#allocation35_spill] sm:$0xff] %v7869_v3  ;;  %v6400_v3 = vld [vmem:[#allocation7 + $0x60] sm:$0xff]  ;;  %v2178_v35 = vunpack.c.l.b16 %v2157_v46  ;;  %v2575_v18 = vshll.u32 %v7891_v14, 16  ;;  %v6399_v49 = vld [vmem:[#allocation7 + $0x58] sm:$0xff] }
 0x2cb   : > { %9182 = vst [vmem:[#allocation38_spill] sm:$0xff] %v7874_v59  ;;  %v2160_v59 = vsel %vm7035_vm5, %v2158_v22, %v2159_v48  ;;  %3720 = vmatpush.bf16.msra.mxu1 %v6400_v3  ;;  %v7894_v22 = vld [vmem:[%s6930_s11 + $0xe8] sm:$0xf]  ;;  %v1938_v3 = vsel %vm6947_vm2, %v1933_v9, %v1937_v39 }
 0x2cc   : > { %v2179_v32 = vunpack.c.l.b16 %v2160_v59  ;;  %2529 = vmatmul.bf16.gmra.mxu2 %v6315_v34  ;;  %9186 = vst [vmem:[#allocation20_spill] sm:$0xff] %v7891_v14  ;;  %v2581_v34 = vshll.u32 %v7894_v22, 16  ;;  %v1966_v46 = vunpack.c.l.b16 %v1938_v3  ;;  %v2577_v39 = vrot.slane %v2575_v18, 5 }
 0x2cd   : > { %9187 = vst [vmem:[#allocation41_spill] sm:$0xff] %v7894_v22 }
 0x2ce   : > { %v7876_v6 = vpop.f32.mrf.mxu3  ;;  %v2062_v36 = vpop.f32.mrf.mxu0  ;;  %v2583_v9 = vrot.slane %v2581_v34, 5 }
 0x2cf   : > { %v2131_v10 = vadd.f32 %v2062_v36, %v9183_v30  ;;  %v1943_v30 = vrot.slane %v1942_v4, 4  ;;  %v2284_v58 = vpop.f32.mrf.mxu1  ;;  %v7887_v36 = vpack.c.b16 %v2179_v32, %v2178_v35  ;;  %v2490_v59 = vpop.f32.mrf.mxu2  ;;  %3721 = vmatpush.bf16.msra.mxu1 %v6399_v49 }
 0x2d1   : > { %v2343_v7 = vadd.f32 %v7838_v63, %v2131_v10  ;;  %2101 = vmatmul.bf16.gmra.mxu0 %v9176_v12  ;;  %9185 = vst [vmem:[#allocation40_spill] sm:$0xff] %v7887_v36  ;;  %v1948_v4 = vsel %vm6947_vm2, %v1943_v30, %v1947_v44  ;;  %v2585_v10 = vshrl.u32 %v7894_v22, 16  ;;  %v7913_v30 = vld [vmem:[%s6930_s11 + $0xec] sm:$0xf]  ;;  %s6713_s11 = scalar_lea.hbm %s6712_s9, 256 }
 0x2d2   : > { %2323 = vmatmul.bf16.gmra.mxu1 %v7887_v36  ;;  %v1967_v35 = vunpack.c.l.b16 %v1948_v4  ;;  %v2591_v3 = vshll.u32 %v7913_v30, 16  ;;  %p6714_p1 = scmp.ne.s32.totalorder %s6712_s9, %s6713_s11  ;;  %p6719_p12 = scmp.lt.s32.totalorder %s6717_s26, %s6713_s11 }
 0x2d3   : > { %2747 = vmatmul.bf16.gmra.mxu3 %v9184_v62  ;;  %v2549_v33 = vadd.f32 %v7840_v11, %v2343_v7  ;;  %v2572_v11 = vshrl.u32 %v7891_v14, 16 }
 0x2d4   : > { %v1968_v53 = vpack.c.b16 %v1967_v35, %v1966_v46  ;;  %p6715_p2 = pnand %p6714_p1, %p6906_p7  ;;  %p6720_p13 = por %p6719_p12, %p6718_p8 }
 0x2d6   : > { %v2708_v63 = vpop.f32.mrf.mxu3  ;;  %v2064_v48 = vpop.f32.mrf.mxu0  ;;  %p6716_p4 = pneg %p6715_p2 }
 0x2d7   : > { %v7897_v12 = vadd.f32 %v2708_v63, %v2549_v33  ;;  %v7905_v7 = vadd.f32 %v2064_v48, %v7566_v50  ;;  %v7910_v32 = vpop.f32.mrf.mxu1  ;;  %v2574_v33 = vrot.slane %v2572_v11, 4  ;;  %v2587_v63 = vrot.slane %v2585_v10, 4  ;;  %v7915_v44 = vpop.f32.mrf.mxu2 }
 0x2d8   : > { %9189 = vst [vmem:[#allocation42_spill] sm:$0xff] %v7910_v32  ;;  %p6721_p0 = pnand %p6720_p13, %p6716_p4 }
 0x2d9   : > { %9190 = vst [vmem:[#allocation44_spill] sm:$0xff] %v7915_v44  ;;  %v2578_v36 = vor.u32 %v2577_v39, %v2574_v33  ;;  %v2588_v22 = vor.u32 %v2587_v63, %v2583_v9  ;;  %v2593_v44 = vrot.slane %v2591_v3, 5 }
 0x2db   : > { %v2579_v34 = vrot.slane %v2578_v36, 4  ;;  %v2589_v10 = vrot.slane %v2588_v22, 4 }
 0x2de   : > { %v7917_v50 = vpop.f32.mrf.mxu3  ;;  %v2067_v48 = vpop.f32.mrf.mxu0 }
 0x2df   : > { %9191 = vst [vmem:[#allocation46_spill] sm:$0xff] %v7917_v50  ;;  %v2133_v14 = vadd.f32 %v2067_v48, %v7584_v38  ;;  %v2289_v11 = vpop.f32.mrf.mxu1  ;;  %v2495_v32 = vpop.f32.mrf.mxu2 }
 0x2e1   : > { %v2345_v4 = vadd.f32 %v7858_v24, %v2133_v14  ;;  %2106 = vmatmul.bf16.gmra.mxu0 %v9184_v62  ;;  %v2584_v24 = vsel %vm6947_vm2, %v2579_v34, %v2583_v9  ;;  %v2594_v62 = vsel %vm6947_vm2, %v2589_v10, %v2593_v44 }
 0x2e2   : > { %v2612_v14 = vunpack.c.l.b16 %v2584_v24  ;;  %v2613_v33 = vunpack.c.l.b16 %v2594_v62 }
 0x2e3   : > { %2752 = vmatmul.bf16.gmra.mxu3 %v1968_v53  ;;  %v2551_v18 = vadd.f32 %v7862_v17, %v2345_v4 }
 0x2e4   : > { %v2614_v39 = vpack.c.b16 %v2613_v33, %v2612_v14 }
 0x2e6   : > { %v2713_v50 = vpop.f32.mrf.mxu3  ;;  %v2069_v38 = vpop.f32.mrf.mxu0 }
 0x2e7   : > { %v7924_v46 = vadd.f32 %v2713_v50, %v2551_v18  ;;  %v7927_v35 = vadd.f32 %v2069_v38, %v7597_v1  ;;  %v7933_v17 = vpop.f32.mrf.mxu1  ;;  %v7937_v63 = vpop.f32.mrf.mxu2  ;;  %v6391_v1 = vld [vmem:[#allocation7 + $0x18] sm:$0xff] }
 0x2e8   : > { %3858 = vmatpush.bf16.msra.mxu2 %v6391_v1 }
 0x2ee   : > { %v7935_v36 = vpop.f32.mrf.mxu3  ;;  %v2072_v22 = vpop.f32.mrf.mxu0 }
 0x2ef   : > { %v2135_v50 = vadd.f32 %v2072_v22, %v7612_v28  ;;  %v2294_v18 = vpop.f32.mrf.mxu1  ;;  %v2500_v10 = vpop.f32.mrf.mxu2 }
 0x2f1   : > { %v2347_v48 = vadd.f32 %v2284_v58, %v2135_v50  ;;  %2111 = vmatmul.bf16.gmra.mxu0 %v1968_v53 }
 0x2f3   : > { %2757 = vmatmul.bf16.gmra.mxu3 %v2614_v39  ;;  %v2553_v9 = vadd.f32 %v2490_v59, %v2347_v48 }
 0x2f6   : > { %v2718_v44 = vpop.f32.mrf.mxu3  ;;  %v2074_v4 = vpop.f32.mrf.mxu0 }
 0x2f7   : > { %v7940_v3 = vadd.f32 %v2718_v44, %v2553_v9  ;;  %v7943_v34 = vadd.f32 %v2074_v4, %v7619_v13  ;;  %v7948_v53 = vpop.f32.mrf.mxu1  ;;  %v7951_v59 = vpop.f32.mrf.mxu2  ;;  %v6390_v9 = vld [vmem:[#allocation7 + $0x10] sm:$0xff] }
 0x2f8   : > { %3859 = vmatpush.bf16.msra.mxu2 %v6390_v9 }
 0x2fe   : > { %v7945_v38 = vpop.f32.mrf.mxu3  ;;  %v2077_v28 = vpop.f32.mrf.mxu0 }
 0x2ff   : > { %v2137_v58 = vadd.f32 %v2077_v28, %v7629_v45  ;;  %v2299_v39 = vpop.f32.mrf.mxu1  ;;  %v2505_v50 = vpop.f32.mrf.mxu2 }
 0x301   : > { %v2349_v24 = vadd.f32 %v2289_v11, %v2137_v58  ;;  %2884 = vmatmul.bf16.vlgmr.msrb.gmra.mxu0 %v7489_v29  ;;  %v6398_v58 = vld [vmem:[#allocation7 + $0x50] sm:$0xff] }
 0x302   : > { %3722 = vmatpush.bf16.msra.mxu1 %v6398_v58 }
 0x303   : > { %v2555_v62 = vadd.f32 %v2495_v32, %v2349_v24 }
 0x306   : > { %v2723_v14 = vpop.f32.mrf.mxu3  ;;  %v2079_v22 = vpop.f32.mrf.mxu0 }
 0x307   : > { %v7953_v33 = vadd.f32 %v2723_v14, %v2555_v62  ;;  %v7956_v13 = vadd.f32 %v2079_v22, %v7635_v27  ;;  %v7962_v32 = vpop.f32.mrf.mxu1  ;;  %v7966_v4 = vpop.f32.mrf.mxu2 }
 0x30e   : > { %v7958_v1 = vpop.f32.mrf.mxu3  ;;  %v2082_v45 = vpop.f32.mrf.mxu0 }
 0x30f   : > { %v2139_v48 = vadd.f32 %v2082_v45, %v7647_v26  ;;  %v2510_v24 = vpop.f32.mrf.mxu2 }
 0x311   : > { %v2351_v11 = vadd.f32 %v2294_v18, %v2139_v48  ;;  %2889 = vmatmul.bf16.gmra.mxu0 %v7514_v5  ;;  %v2304_v5 = vpop.f32.mrf.mxu1 }
 0x313   : > { %v2557_v29 = vadd.f32 %v2500_v10, %v2351_v11 }
 0x316   : > { %v2728_v49 = vpop.f32.mrf.mxu3  ;;  %v2084_v27 = vpop.f32.mrf.mxu0 }
 0x317   : > { %v7964_v44 = vadd.f32 %v2728_v49, %v2557_v29  ;;  %v7969_v28 = vadd.f32 %v2084_v27, %v7654_v55  ;;  %v7982_v29 = vpop.f32.mrf.mxu2 }
 0x319   : > { %v7980_v11 = vpop.f32.mrf.mxu1 }
 0x31e   : > { %v7971_v26 = vpop.f32.mrf.mxu3  ;;  %v2087_v18 = vpop.f32.mrf.mxu0 }
 0x31f   : > { %v2141_v10 = vadd.f32 %v2087_v18, %v7666_v37  ;;  %v2515_v27 = vpop.f32.mrf.mxu2 }
 0x321   : > { %v2353_v62 = vadd.f32 %v2299_v39, %v2141_v10  ;;  %2894 = vmatmul.bf16.gmra.mxu0 %v7539_v57  ;;  %v2309_v57 = vpop.f32.mrf.mxu1 }
 0x323   : > { %v2559_v14 = vadd.f32 %v2505_v50, %v2353_v62  ;;  %v6389_v62 = vld [vmem:[#allocation7 + $0x8] sm:$0xff] }
 0x324   : > { %3860 = vmatpush.bf16.msra.mxu2 %v6389_v62 }
 0x326   : > { %v2733_v22 = vpop.f32.mrf.mxu3  ;;  %v2089_v48 = vpop.f32.mrf.mxu0 }
 0x327   : > { %v7975_v45 = vadd.f32 %v2733_v22, %v2559_v14  ;;  %v7978_v55 = vadd.f32 %v2089_v48, %v7673_v8  ;;  %v6397_v14 = vld [vmem:[#allocation7 + $0x48] sm:$0xff] }
 0x328   : > { %3723 = vmatpush.bf16.msra.mxu1 %v6397_v14 }
 0x329   : > { %v7993_v22 = vpop.f32.mrf.mxu1 }
 0x32a   : > { %9192 = vst [vmem:[#allocation58_spill] sm:$0xff] %v7993_v22  ;;  %v9196_v22 = vld [vmem:[#allocation26_spill] sm:$0xff] }
 0x32e   : > { %v7984_v9 = vpop.f32.mrf.mxu3  ;;  %v2092_v49 = vpop.f32.mrf.mxu0 }
 0x32f   : > { %v2143_v37 = vadd.f32 %v2092_v49, %v7685_v40 }
 0x331   : > { %v2355_v39 = vadd.f32 %v2304_v5, %v2143_v37  ;;  %2899 = vmatmul.bf16.gmra.mxu0 %v7564_v47  ;;  %v7997_v47 = vpop.f32.mrf.mxu2 }
 0x332   : > { %9194 = vst [vmem:[#allocation47_spill] sm:$0xff] %v7997_v47 }
 0x333   : > { %v2561_v50 = vadd.f32 %v2510_v24, %v2355_v39 }
 0x336   : > { %v2738_v58 = vpop.f32.mrf.mxu3  ;;  %v2094_v8 = vpop.f32.mrf.mxu0 }
 0x337   : > { %v7988_v18 = vadd.f32 %v2738_v58, %v2561_v50  ;;  %v7991_v10 = vadd.f32 %v2094_v8, %v7692_v19  ;;  %v2314_v50 = vpop.f32.mrf.mxu1 }
 0x339   : > { %v2520_v8 = vpop.f32.mrf.mxu2 }
 0x33e   : > { %v7995_v48 = vpop.f32.mrf.mxu3  ;;  %v2097_v40 = vpop.f32.mrf.mxu0 }
 0x33f   : > { %9193 = vst [vmem:[#allocation22_spill] sm:$0xff] %v7995_v48  ;;  %v2145_v5 = vadd.f32 %v2097_v40, %v7704_v31  ;;  %v8009_v48 = vpop.f32.mrf.mxu1 }
 0x340   : > { %9197 = vst [vmem:[#allocation50_spill] sm:$0xff] %v8009_v48  ;;  %v9209_v48 = vld [vmem:[#allocation16_spill] sm:$0xff] }
 0x341   : > { %v2357_v24 = vadd.f32 %v2309_v57, %v2145_v5  ;;  %2904 = vmatmul.bf16.gmra.mxu0 %v7595_v25  ;;  %v9198_v57 = vld [vmem:[#allocation14_spill] sm:$0xff]  ;;  %v8012_v25 = vpop.f32.mrf.mxu2 }
 0x342   : > { %9199 = vst [vmem:[#allocation52_spill] sm:$0xff] %v8012_v25 }
 0x343   : > { %v2563_v49 = vadd.f32 %v2515_v27, %v2357_v24 }
 0x346   : > { %v2743_v37 = vpop.f32.mrf.mxu3  ;;  %v2099_v39 = vpop.f32.mrf.mxu0 }
 0x347   : > { %v8001_v19 = vadd.f32 %v2743_v37, %v2563_v49  ;;  %v8004_v58 = vadd.f32 %v2099_v39, %v7711_v52  ;;  %v9201_v52 = vld [vmem:[#allocation69_spill] sm:$0xff]  ;;  %v6411_v37 = vld [vmem:[#allocation7 + $0xb8] sm:$0xff]  ;;  %v2319_v39 = vpop.f32.mrf.mxu1 }
 0x348   : > { %4105 = vmatpush.bf16.msrb.mxu3 %v6411_v37 }
 0x34e   : > { %v8006_v62 = vpop.f32.mrf.mxu3  ;;  %v2102_v14 = vpop.f32.mrf.mxu0 }
 0x34f   : > { %9195 = vst [vmem:[#allocation48_spill] sm:$0xff] %v8006_v62  ;;  %v2147_v47 = vadd.f32 %v2102_v14, %v9196_v22  ;;  %v6388_v62 = vld [vmem:[#allocation7] sm:$0xff]  ;;  %v2525_v22 = vpop.f32.mrf.mxu2 }
 0x350   : > { %3861 = vmatpush.bf16.msra.mxu2 %v6388_v62  ;;  %v6409_v62 = vld [vmem:[#allocation7 + $0xa8] sm:$0xff] }
 0x351   : > { %v2359_v31 = vadd.f32 %v2314_v50, %v2147_v47  ;;  %2909 = vmatmul.bf16.gmra.mxu0 %v9198_v57  ;;  %v9204_v50 = vld [vmem:[#allocation28_spill] sm:$0xff] }
 0x353   : > { %v2565_v27 = vadd.f32 %v2520_v8, %v2359_v31  ;;  %v9205_v8 = vld [vmem:[#allocation15_spill] sm:$0xff] }
 0x356   : > { %v2748_v40 = vpop.f32.mrf.mxu3  ;;  %v2104_v24 = vpop.f32.mrf.mxu0 }
 0x357   : > { %v8014_v5 = vadd.f32 %v2748_v40, %v2565_v27  ;;  %v8017_v49 = vadd.f32 %v2104_v24, %v9201_v52  ;;  %v6410_v27 = vld [vmem:[#allocation7 + $0xb0] sm:$0xff]  ;;  %v8023_v40 = vpop.f32.mrf.mxu1 }
 0x358   : > { %9206 = vst [vmem:[#allocation21_spill] sm:$0xff] %v8023_v40  ;;  %4106 = vmatpush.bf16.msrb.mxu3 %v6410_v27  ;;  %v6404_v40 = vld [vmem:[#allocation7 + $0x80] sm:$0xff] }
 0x359   : > { %9200 = vst [vmem:[#allocation61_spill] sm:$0xff] %v8014_v5  ;;  %v8027_v5 = vpop.f32.mrf.mxu2 }
 0x35a   : > { %9202 = vst [vmem:[#allocation24_spill] sm:$0xff] %v8017_v49  ;;  %v6396_v49 = vld [vmem:[#allocation7 + $0x40] sm:$0xff] }
 0x35b   : > { %9208 = vst [vmem:[#allocation64_spill] sm:$0xff] %v8027_v5  ;;  %3724 = vmatpush.bf16.msra.mxu1 %v6396_v49 }
 0x35c   : > { %4107 = vmatpush.bf16.msrb.mxu3 %v6409_v62 }
 0x35e   : > { %v8019_v14 = vpop.f32.mrf.mxu3  ;;  %v2107_v47 = vpop.f32.mrf.mxu0 }
 0x35f   : > { %9203 = vst [vmem:[#allocation53_spill] sm:$0xff] %v8019_v14  ;;  %v2149_v57 = vadd.f32 %v2107_v47, %v9204_v50  ;;  %v9212_v50 = vld [vmem:[#allocation29_spill] sm:$0xff] }
 0x361   : > { %v2361_v25 = vadd.f32 %v2319_v39, %v2149_v57  ;;  %2914 = vmatmul.bf16.gmra.mxu0 %v9205_v8  ;;  %v6408_v39 = vld [vmem:[#allocation7 + $0xa0] sm:$0xff]  ;;  %v6407_v8 = vld [vmem:[#allocation7 + $0x98] sm:$0xff] }
 0x362   : > { %4108 = vmatpush.bf16.msrb.mxu3 %v6408_v39  ;;  %v6405_v39 = vld [vmem:[#allocation7 + $0x88] sm:$0xff] }
 0x363   : > { %v2567_v31 = vadd.f32 %v2525_v22, %v2361_v25  ;;  %v2324_v22 = vpop.f32.mrf.mxu1 }
 0x366   : > { %v2753_v24 = vpop.f32.mrf.mxu3  ;;  %v2109_v37 = vpop.f32.mrf.mxu0  ;;  %4109 = vmatpush.bf16.msrb.mxu3 %v6407_v8 }
 0x367   : > { %v8025_v52 = vadd.f32 %v2753_v24, %v2567_v31  ;;  %v8030_v14 = vadd.f32 %v2109_v37, %v9209_v48  ;;  %v2530_v31 = vpop.f32.mrf.mxu2  ;;  %v9213_v24 = vld [vmem:[#allocation17_spill] sm:$0xff]  ;;  %v6406_v37 = vld [vmem:[#allocation7 + $0x90] sm:$0xff] }
 0x369   : > { %9207 = vst [vmem:[#allocation55_spill] sm:$0xff] %v8025_v52  ;;  %v9215_v52 = vld [vmem:[#allocation30_spill] sm:$0xff] }
 0x36a   : > { %9210 = vst [vmem:[#allocation27_spill] sm:$0xff] %v8030_v14  ;;  %4110 = vmatpush.bf16.msrb.mxu3 %v6406_v37 }
 0x36e   : > { %v8032_v47 = vpop.f32.mrf.mxu3  ;;  %v2112_v25 = vpop.f32.mrf.mxu0  ;;  %4111 = vmatpush.bf16.msrb.mxu3 %v6405_v39 }
 0x36f   : > { %9211 = vst [vmem:[#allocation56_spill] sm:$0xff] %v8032_v47  ;;  %v2151_v57 = vadd.f32 %v2112_v25, %v9212_v50  ;;  %v8044_v25 = vld [vmem:[%s8932_s2] ss:$0 sm:$0xff] }
 0x371   : > { %v2363_v27 = vadd.f32 %v2324_v22, %v2151_v57  ;;  %2919 = vmatmul.bf16.gmra.mxu0 %v9213_v24  ;;  %v6419_v24 = vld [vmem:[#allocation7 + $0xf8] sm:$0xff] }
 0x372   : > { %4112 = vmatpush.bf16.msrb.mxu3 %v6404_v40  ;;  %4291 = vmatpush.bf16.msrb.mxu1 %v6419_v24 }
 0x373   : > { %v2569_v48 = vadd.f32 %v2530_v31, %v2363_v27  ;;  %v6427_v27 = vld [vmem:[#allocation7 + $0x138] sm:$0xff] }
 0x374   : > { %4490 = vmatpush.bf16.msrb.mxu2 %v6427_v27 }
 0x376   : > { %v2758_v5 = vpop.f32.mrf.mxu3  ;;  %v2114_v49 = vpop.f32.mrf.mxu0 }
 0x377   : > { %v8036_v62 = vadd.f32 %v2758_v5, %v2569_v48  ;;  %v8039_v47 = vadd.f32 %v2114_v49, %v9215_v52  ;;  %v9217_v5 = vld [vmem:[#allocation19_spill] sm:$0xff] }
 0x379   : > { %9214 = vst [vmem:[#allocation59_spill] sm:$0xff] %v8036_v62 }
 0x37a   : > { %9216 = vst [vmem:[#allocation67_spill] sm:$0xff] %v8039_v47  ;;  %v9220_v47 = vld [vmem:[#allocation23_spill] sm:$0xff] }
 0x37e   : > { %v2885_v22 = vpop.f32.mrf.mxu0 }
 0x37f   : > { %v2975_v50 = vadd.f32 %v2885_v22, %v7777_v61 }
 0x381   : > { %v3015_v57 = vadd.f32 %v8044_v25, %v2975_v50  ;;  %2924 = vmatmul.bf16.gmra.mxu0 %v9217_v5 }
 0x383   : > { %v3051_v8 = vmax.f32 %v3015_v57, 0.0 }
 0x385   : > { %v3095_v48 = vmul.f32 0.0, %v3051_v8 }
 0x386   : > { %v2887_v31 = vpop.f32.mrf.mxu0 }
 0x387   : > { %v2976_v52 = vadd.f32 %v2887_v31, %v7781_v0  ;;  %v3100_v40 = vpack.c.bf16 %v3095_v48, %v3095_v48 }
 0x389   : > { %v3016_v37 = vadd.f32 %v8044_v25, %v2976_v52  ;;  %v3172_v50 = vunpack.c.l.b16 %v3100_v40 }
 0x38b   : > { %v3052_v49 = vmax.f32 %v3016_v37, 0.0 }
 0x38d   : > { %v3096_v39 = vmul.f32 0.0, %v3052_v49 }
 0x38e   : > { %v2890_v62 = vpop.f32.mrf.mxu0 }
 0x38f   : > { %v3101_v61 = vpack.c.bf16 %v3096_v39, %v3096_v39  ;;  %v2977_v22 = vadd.f32 %v2890_v62, %v7789_v43 }
 0x391   : > { %v3173_v5 = vunpack.c.l.b16 %v3101_v61  ;;  %2929 = vmatmul.bf16.gmra.mxu0 %v9146_v16  ;;  %v3017_v0 = vadd.f32 %v8044_v25, %v2977_v22 }
 0x393   : > { %v3208_v57 = vpack.c.b16 %v3173_v5, %v3172_v50  ;;  %v3053_v27 = vmax.f32 %v3017_v0, 0.0 }
 0x395   : > { %v3227_v8 = vshrl.u32 %v3208_v57, 16  ;;  %v3230_v43 = vshll.u32 %v3208_v57, 16  ;;  %v3102_v49 = vpack.c.bf16 %v3053_v27, %v3053_v27 }
 0x396   : > { %v2892_v31 = vpop.f32.mrf.mxu0 }
 0x397   : > { %v2978_v24 = vadd.f32 %v2892_v31, %v7793_v20  ;;  %v3229_v48 = vrot.slane %v3227_v8, 7 }
 0x399   : > { %v3018_v62 = vadd.f32 %v8044_v25, %v2978_v24  ;;  %v3232_v37 = vor.u32 %v3230_v43, %v3229_v48  ;;  %v3409_v16 = vsel %vm8054_vm8, %v3229_v48, 0  ;;  %v3174_v24 = vunpack.c.l.b16 %v3102_v49 }
 0x39a   : > { %v3977_v50 = vrot.slane %v3409_v16, 1  ;;  %v3452_v5 = vshll.u32 %v3409_v16, 16 }
 0x39b   : > { %v3054_v40 = vmax.f32 %v3018_v62, 0.0  ;;  %v3391_v39 = vsel %vm8054_vm8, 0, %v3232_v37 }
 0x39c   : > { %v3447_v61 = vshll.u32 %v3391_v39, 16  ;;  %3862 = vmatmul.bf16.vlgmr.msra.gmra.mxu2 %v3391_v39  ;;  %v3976_v22 = vrot.slane %v3391_v39, 1  ;;  %v3445_v0 = vshrl.u32 %v3391_v39, 16  ;;  %v3454_v62 = vrot.slane %v3452_v5, 1 }
 0x39d   : > { %v3103_v20 = vpack.c.bf16 %v3054_v40, %v3054_v40 }
 0x39e   : > { %v3449_v57 = vrot.slane %v3447_v61, 1  ;;  %v2895_v8 = vpop.f32.mrf.mxu0  ;;  %v3978_v31 = vsel %vm3975_vm9, %v3976_v22, %v3977_v50 }
 0x39f   : > { %v3175_v43 = vunpack.c.l.b16 %v3103_v20  ;;  %v2979_v27 = vadd.f32 %v2895_v8, %v7801_v2  ;;  %4113 = vmatmul.bf16.vlgmr.msrb.gmra.mxu3 %v3978_v31  ;;  %v6426_v20 = vld [vmem:[#allocation7 + $0x130] sm:$0xff] }
 0x3a0   : > { %v3450_v48 = vor.u32 %v3449_v57, %v3445_v0  ;;  %v6418_v8 = vld [vmem:[#allocation7 + $0xf0] sm:$0xff]  ;;  %4491 = vmatpush.bf16.msrb.mxu2 %v6426_v20 }
 0x3a1   : > { %v3209_v37 = vpack.c.b16 %v3175_v43, %v3174_v24  ;;  %2934 = vmatmul.bf16.gmra.mxu0 %v9220_v47  ;;  %v3019_v40 = vadd.f32 %v8044_v25, %v2979_v27  ;;  %4292 = vmatpush.bf16.msrb.mxu1 %v6418_v8 }
 0x3a2   : > { %v3455_v14 = vsel %vm3443_vm10, %v3450_v48, %v3454_v62 }
 0x3a3   : > { %v3234_v16 = vshrl.u32 %v3209_v37, 16  ;;  %3725 = vmatmul.bf16.vlgmr.msra.gmra.mxu1 %v3455_v14  ;;  %v3237_v39 = vshll.u32 %v3209_v37, 16  ;;  %v3055_v49 = vmax.f32 %v3019_v40, 0.0 }
 0x3a5   : > { %v3236_v61 = vrot.slane %v3234_v16, 7  ;;  %v3104_v31 = vpack.c.bf16 %v3055_v49, %v3055_v49 }
 0x3a6   : > { %v2897_v22 = vpop.f32.mrf.mxu0 }
 0x3a7   : > { %v2980_v50 = vadd.f32 %v2897_v22, %v7805_v60  ;;  %v3239_v2 = vor.u32 %v3237_v39, %v3236_v61  ;;  %v3410_v0 = vsel %vm8054_vm8, %v3236_v61, 0  ;;  %v3176_v39 = vunpack.c.l.b16 %v3104_v31 }
 0x3a8   : > { %v3980_v24 = vrot.slane %v3410_v0, 1  ;;  %v3464_v48 = vshll.u32 %v3410_v0, 16 }
 0x3a9   : > { %v3020_v5 = vadd.f32 %v8044_v25, %v2980_v50  ;;  %v8073_v47 = vsel %vm8054_vm8, 0, %v3239_v2  ;;  %v9221_v2 = vld [vmem:[#allocation25_spill] sm:$0xff] }
 0x3aa   : > { %v3979_v14 = vrot.slane %v8073_v47, 1  ;;  %v3459_v57 = vshll.u32 %v8073_v47, 16  ;;  %v3457_v43 = vshrl.u32 %v8073_v47, 16  ;;  %v3466_v49 = vrot.slane %v3464_v48, 1 }
 0x3ab   : > { %v3056_v60 = vmax.f32 %v3020_v5, 0.0 }
 0x3ac   : > { %3867 = vmatmul.bf16.gmra.mxu2 %v8073_v47  ;;  %v3461_v27 = vrot.slane %v3459_v57, 1  ;;  %v8082_v16 = vsel %vm3975_vm9, %v3979_v14, %v3980_v24 }
 0x3ad   : > { %v3105_v62 = vpack.c.bf16 %v3056_v60, %v3056_v60 }
 0x3ae   : > { %v2900_v37 = vpop.f32.mrf.mxu0  ;;  %v3462_v40 = vor.u32 %v3461_v27, %v3457_v43 }
 0x3af   : > { %v3177_v61 = vunpack.c.l.b16 %v3105_v62  ;;  %v2981_v22 = vadd.f32 %v2900_v37, %v7813_v51  ;;  %4118 = vmatmul.bf16.gmra.mxu3 %v8082_v16 }
 0x3b0   : > { %v8088_v20 = vsel %vm3443_vm10, %v3462_v40, %v3466_v49 }
 0x3b1   : > { %v3210_v50 = vpack.c.b16 %v3177_v61, %v3176_v39  ;;  %2939 = vmatmul.bf16.gmra.mxu0 %v9221_v2  ;;  %v3021_v5 = vadd.f32 %v8044_v25, %v2981_v22 }
 0x3b3   : > { %v3241_v8 = vshrl.u32 %v3210_v50, 16  ;;  %3730 = vmatmul.bf16.gmra.mxu1 %v8088_v20  ;;  %v3244_v14 = vshll.u32 %v3210_v50, 16  ;;  %v3057_v31 = vmax.f32 %v3021_v5, 0.0 }
 0x3b5   : > { %v3243_v0 = vrot.slane %v3241_v8, 7  ;;  %v3106_v37 = vpack.c.bf16 %v3057_v31, %v3057_v31 }
 0x3b6   : > { %v2902_v57 = vpop.f32.mrf.mxu0 }
 0x3b7   : > { %v2982_v51 = vadd.f32 %v2902_v57, %v7817_v54  ;;  %v3246_v60 = vor.u32 %v3244_v14, %v3243_v0  ;;  %v3411_v27 = vsel %vm8054_vm8, %v3243_v0, 0  ;;  %v3178_v5 = vunpack.c.l.b16 %v3106_v37 }
 0x3b8   : > { %v3983_v39 = vrot.slane %v3411_v27, 1  ;;  %v3476_v22 = vshll.u32 %v3411_v27, 16 }
 0x3b9   : > { %v3022_v24 = vadd.f32 %v8044_v25, %v2982_v51  ;;  %v8096_v43 = vsel %vm8054_vm8, 0, %v3246_v60 }
 0x3ba   : > { %v3982_v48 = vrot.slane %v8096_v43, 1  ;;  %v3471_v62 = vshll.u32 %v8096_v43, 16  ;;  %v3469_v54 = vshrl.u32 %v8096_v43, 16  ;;  %v3478_v57 = vrot.slane %v3476_v22, 1 }
 0x3bb   : > { %v3058_v40 = vmax.f32 %v3022_v24, 0.0 }
 0x3bc   : > { %3872 = vmatmul.bf16.gmra.mxu2 %v8096_v43  ;;  %v3473_v61 = vrot.slane %v3471_v62, 1  ;;  %v8105_v2 = vsel %vm3975_vm9, %v3982_v48, %v3983_v39  ;;  %v6425_v39 = vld [vmem:[#allocation7 + $0x128] sm:$0xff] }
 0x3bd   : > { %v3107_v49 = vpack.c.bf16 %v3058_v40, %v3058_v40  ;;  %9222 = vst [vmem:[#allocation33_spill] sm:$0xff] %v8105_v2  ;;  %4492 = vmatpush.bf16.msrb.mxu2 %v6425_v39 }
 0x3be   : > { %v2905_v50 = vpop.f32.mrf.mxu0  ;;  %v3474_v8 = vor.u32 %v3473_v61, %v3469_v54  ;;  %v6417_v54 = vld [vmem:[#allocation7 + $0xe8] sm:$0xff] }
 0x3bf   : > { %v3179_v0 = vunpack.c.l.b16 %v3107_v49  ;;  %v2983_v14 = vadd.f32 %v2905_v50, %v7825_v56  ;;  %4123 = vmatmul.bf16.gmra.mxu3 %v8105_v2  ;;  %4293 = vmatpush.bf16.msrb.mxu1 %v6417_v54  ;;  %v6443_v2 = vld [vmem:[#allocation7 + $0x1b8] sm:$0xff] }
 0x3c0   : > { %v8111_v51 = vsel %vm3443_vm10, %v3474_v8, %v3478_v57  ;;  %4868 = vmatpush.bf16.msra.mxu0 %v6443_v2 }
 0x3c1   : > { %v3211_v31 = vpack.c.b16 %v3179_v0, %v3178_v5  ;;  %2944 = vmatmul.bf16.gmra.mxu0 %v9161_v15  ;;  %v3023_v24 = vadd.f32 %v8044_v25, %v2983_v14 }
 0x3c3   : > { %v3248_v60 = vshrl.u32 %v3211_v31, 16  ;;  %3735 = vmatmul.bf16.gmra.mxu1 %v8111_v51  ;;  %v3251_v48 = vshll.u32 %v3211_v31, 16  ;;  %v3059_v37 = vmax.f32 %v3023_v24, 0.0 }
 0x3c5   : > { %v3250_v27 = vrot.slane %v3248_v60, 7  ;;  %v3108_v8 = vpack.c.bf16 %v3059_v37, %v3059_v37 }
 0x3c6   : > { %v2907_v62 = vpop.f32.mrf.mxu0 }
 0x3c7   : > { %v2984_v56 = vadd.f32 %v2907_v62, %v7833_v21  ;;  %v3253_v40 = vor.u32 %v3251_v48, %v3250_v27  ;;  %v3412_v22 = vsel %vm8054_vm8, %v3250_v27, 0  ;;  %v3180_v48 = vunpack.c.l.b16 %v3108_v8 }
 0x3c8   : > { %v3986_v5 = vrot.slane %v3412_v22, 1  ;;  %v3488_v57 = vshll.u32 %v3412_v22, 16 }
 0x3c9   : > { %v3024_v61 = vadd.f32 %v8044_v25, %v2984_v56  ;;  %v8119_v15 = vsel %vm8054_vm8, 0, %v3253_v40 }
 0x3ca   : > { %v3985_v49 = vrot.slane %v8119_v15, 1  ;;  %v3483_v50 = vshll.u32 %v8119_v15, 16  ;;  %v3481_v0 = vshrl.u32 %v8119_v15, 16  ;;  %v3490_v37 = vrot.slane %v3488_v57, 1 }
 0x3cb   : > { %v3060_v21 = vmax.f32 %v3024_v61, 0.0 }
 0x3cc   : > { %3877 = vmatmul.bf16.gmra.mxu2 %v8119_v15  ;;  %v3485_v14 = vrot.slane %v3483_v50, 1  ;;  %v8128_v24 = vsel %vm3975_vm9, %v3985_v49, %v3986_v5 }
 0x3cd   : > { %v3109_v31 = vpack.c.bf16 %v3060_v21, %v3060_v21  ;;  %9223 = vst [vmem:[#allocation60_spill] sm:$0xff] %v8128_v24 }
 0x3ce   : > { %v2910_v60 = vpop.f32.mrf.mxu0  ;;  %v3486_v27 = vor.u32 %v3485_v14, %v3481_v0 }
 0x3cf   : > { %v3181_v62 = vunpack.c.l.b16 %v3109_v31  ;;  %v2985_v56 = vadd.f32 %v2910_v60, %v7845_v42  ;;  %4128 = vmatmul.bf16.gmra.mxu3 %v8128_v24  ;;  %v9228_v24 = vld [vmem:[#allocation32_spill] sm:$0xff] }
 0x3d0   : > { %v8134_v39 = vsel %vm3443_vm10, %v3486_v27, %v3490_v37  ;;  %v9226_v37 = vld [vmem:[#allocation77_spill] sm:$0xff] }
 0x3d1   : > { %v3212_v40 = vpack.c.b16 %v3181_v62, %v3180_v48  ;;  %2949 = vmatmul.bf16.gmra.mxu0 %v9166_v41  ;;  %9224 = vst [vmem:[#allocation62_spill] sm:$0xff] %v8134_v39  ;;  %v3025_v61 = vadd.f32 %v8044_v25, %v2985_v56  ;;  %v9225_v56 = vld [vmem:[#allocation35_spill] sm:$0xff] }
 0x3d3   : > { %v3255_v54 = vshrl.u32 %v3212_v40, 16  ;;  %3740 = vmatmul.bf16.gmra.mxu1 %v8134_v39  ;;  %v3258_v49 = vshll.u32 %v3212_v40, 16  ;;  %v3061_v8 = vmax.f32 %v3025_v61, 0.0  ;;  %v2342_v40 = vadd.f32 %v9226_v37, %v9225_v56 }
 0x3d5   : > { %v3257_v22 = vrot.slane %v3255_v54, 7  ;;  %v3110_v31 = vpack.c.bf16 %v3061_v8, %v3061_v8  ;;  %v9227_v8 = vld [vmem:[#allocation18_spill] sm:$0xff]  ;;  %v2548_v39 = vadd.f32 %v9228_v24, %v2342_v40 }
 0x3d6   : > { %v2912_v50 = vpop.f32.mrf.mxu0 }
 0x3d7   : > { %v2986_v42 = vadd.f32 %v2912_v50, %v7853_v23  ;;  %v3260_v21 = vor.u32 %v3258_v49, %v3257_v22  ;;  %v3413_v0 = vsel %vm8054_vm8, %v3257_v22, 0  ;;  %v3182_v50 = vunpack.c.l.b16 %v3110_v31 }
 0x3d8   : > { %v3989_v27 = vrot.slane %v3413_v0, 1  ;;  %v3500_v62 = vshll.u32 %v3413_v0, 16  ;;  %v9229_v0 = vld [vmem:[#allocation43_spill] sm:$0xff]  ;;  %v2776_v31 = vadd.f32 %v7876_v6, %v2548_v39  ;;  %v6441_v6 = vld [vmem:[#allocation7 + $0x1a8] sm:$0xff] }
 0x3d9   : > { %v3026_v5 = vadd.f32 %v8044_v25, %v2986_v42  ;;  %v8142_v41 = vsel %vm8054_vm8, 0, %v3260_v21 }
 0x3da   : > { %v3988_v14 = vrot.slane %v8142_v41, 1  ;;  %v3495_v57 = vshll.u32 %v8142_v41, 16  ;;  %v3493_v23 = vshrl.u32 %v8142_v41, 16 }
 0x3db   : > { %v3062_v60 = vmax.f32 %v3026_v5, 0.0  ;;  %v3502_v5 = vrot.slane %v3500_v62, 1 }
 0x3dc   : > { %3882 = vmatmul.bf16.gmra.mxu2 %v8142_v41  ;;  %v3497_v48 = vrot.slane %v3495_v57, 1  ;;  %v8153_v22 = vsel %vm3975_vm9, %v3988_v14, %v3989_v27 }
 0x3dd   : > { %v3111_v54 = vpack.c.bf16 %v3062_v60, %v3062_v60 }
 0x3de   : > { %v2915_v61 = vpop.f32.mrf.mxu0  ;;  %v3498_v49 = vor.u32 %v3497_v48, %v3493_v23  ;;  %v6442_v48 = vld [vmem:[#allocation7 + $0x1b0] sm:$0xff] }
 0x3df   : > { %v3183_v42 = vunpack.c.l.b16 %v3111_v54  ;;  %v2987_v21 = vadd.f32 %v2915_v61, %v9227_v8  ;;  %4133 = vmatmul.bf16.gmra.mxu3 %v8153_v22  ;;  %v6424_v54 = vld [vmem:[#allocation7 + $0x120] sm:$0xff]  ;;  %4869 = vmatpush.bf16.msra.mxu0 %v6442_v48 }
 0x3e0   : > { %v8160_v60 = vsel %vm3443_vm10, %v3498_v49, %v3502_v5  ;;  %v6416_v61 = vld [vmem:[#allocation7 + $0xe0] sm:$0xff]  ;;  %4493 = vmatpush.bf16.msrb.mxu2 %v6424_v54 }
 0x3e1   : > { %v3213_v57 = vpack.c.b16 %v3183_v42, %v3182_v50  ;;  %2954 = vmatmul.bf16.gmra.mxu0 %v9229_v0  ;;  %v3027_v14 = vadd.f32 %v8044_v25, %v2987_v21  ;;  %4294 = vmatpush.bf16.msrb.mxu1 %v6416_v61 }
 0x3e3   : > { %v3262_v56 = vshrl.u32 %v3213_v57, 16  ;;  %3745 = vmatmul.bf16.gmra.mxu1 %v8160_v60  ;;  %v3265_v23 = vshll.u32 %v3213_v57, 16  ;;  %v3063_v24 = vmax.f32 %v3027_v14, 0.0  ;;  %4870 = vmatpush.bf16.msra.mxu0 %v6441_v6  ;;  %v9230_v14 = vld [vmem:[#allocation73_spill] sm:$0xff] }
 0x3e5   : > { %v3264_v27 = vrot.slane %v3262_v56, 7  ;;  %v3112_v8 = vpack.c.bf16 %v3063_v24, %v3063_v24 }
 0x3e6   : > { %v2917_v62 = vpop.f32.mrf.mxu0 }
 0x3e7   : > { %v2988_v37 = vadd.f32 %v2917_v62, %v2776_v31  ;;  %v3267_v40 = vor.u32 %v3265_v23, %v3264_v27  ;;  %v3414_v2 = vsel %vm8054_vm8, %v3264_v27, 0  ;;  %v2344_v31 = vadd.f32 %v9230_v14, %v7905_v7  ;;  %v6440_v23 = vld [vmem:[#allocation7 + $0x1a0] sm:$0xff]  ;;  %v6439_v7 = vld [vmem:[#allocation7 + $0x198] sm:$0xff] }
 0x3e8   : > { %v3992_v5 = vrot.slane %v3414_v2, 1  ;;  %v3512_v56 = vshll.u32 %v3414_v2, 16  ;;  %v3184_v24 = vunpack.c.l.b16 %v3112_v8  ;;  %4871 = vmatpush.bf16.msra.mxu0 %v6440_v23 }
 0x3e9   : > { %v3028_v49 = vadd.f32 %v8044_v25, %v2988_v37  ;;  %v8168_v50 = vsel %vm8054_vm8, 0, %v3267_v40 }
 0x3ea   : > { %v3991_v39 = vrot.slane %v8168_v50, 1  ;;  %v3507_v42 = vshll.u32 %v8168_v50, 16  ;;  %v3505_v57 = vshrl.u32 %v8168_v50, 16  ;;  %v3514_v61 = vrot.slane %v3512_v56, 1  ;;  %v6438_v56 = vld [vmem:[#allocation7 + $0x190] sm:$0xff] }
 0x3eb   : > { %v3064_v21 = vmax.f32 %v3028_v49, 0.0  ;;  %v9232_v49 = vld [vmem:[#allocation34_spill] sm:$0xff] }
 0x3ec   : > { %3887 = vmatmul.bf16.gmra.mxu2 %v8168_v50  ;;  %v3509_v0 = vrot.slane %v3507_v42, 1  ;;  %v8179_v62 = vsel %vm3975_vm9, %v3991_v39, %v3992_v5  ;;  %v2550_v2 = vadd.f32 %v9232_v49, %v2344_v31  ;;  %v9233_v42 = vld [vmem:[#allocation49_spill] sm:$0xff]  ;;  %4872 = vmatpush.bf16.msra.mxu0 %v6439_v7 }
 0x3ed   : > { %v3113_v27 = vpack.c.bf16 %v3064_v21, %v3064_v21  ;;  %9231 = vst [vmem:[#allocation71_spill] sm:$0xff] %v8179_v62 }
 0x3ee   : > { %v2920_v48 = vpop.f32.mrf.mxu0  ;;  %v3510_v37 = vor.u32 %v3509_v0, %v3505_v57 }
 0x3ef   : > { %v3185_v40 = vunpack.c.l.b16 %v3113_v27  ;;  %v2989_v54 = vadd.f32 %v2920_v48, %v7897_v12  ;;  %4138 = vmatmul.bf16.gmra.mxu3 %v8179_v62  ;;  %v9235_v12 = vld [vmem:[#allocation46_spill] sm:$0xff] }
 0x3f0   : > { %v8186_v21 = vsel %vm3443_vm10, %v3510_v37, %v3514_v61  ;;  %v2778_v8 = vadd.f32 %v9235_v12, %v2550_v2  ;;  %4873 = vmatpush.bf16.msra.mxu0 %v6438_v56 }
 0x3f1   : > { %v3214_v6 = vpack.c.b16 %v3185_v40, %v3184_v24  ;;  %2959 = vmatmul.bf16.gmra.mxu0 %v9233_v42  ;;  %9234 = vst [vmem:[#allocation39_spill] sm:$0xff] %v8186_v21  ;;  %v3029_v5 = vadd.f32 %v8044_v25, %v2989_v54  ;;  %v6437_v40 = vld [vmem:[#allocation7 + $0x188] sm:$0xff] }
 0x3f3   : > { %v3269_v39 = vshrl.u32 %v3214_v6, 16  ;;  %3750 = vmatmul.bf16.gmra.mxu1 %v8186_v21  ;;  %v3272_v0 = vshll.u32 %v3214_v6, 16  ;;  %v3065_v31 = vmax.f32 %v3029_v5, 0.0  ;;  %v9236_v5 = vld [vmem:[#allocation36_spill] sm:$0xff] }
 0x3f4   : > { %4874 = vmatpush.bf16.msra.mxu0 %v6437_v40  ;;  %v2346_v12 = vadd.f32 %v9236_v5, %v7927_v35  ;;  %v9240_v5 = vld [vmem:[#allocation20_spill] sm:$0xff] }
 0x3f5   : > { %v3271_v57 = vrot.slane %v3269_v39, 7  ;;  %v3114_v49 = vpack.c.bf16 %v3065_v31, %v3065_v31  ;;  %v9237_v31 = vld [vmem:[#allocation41_spill] sm:$0xff]  ;;  %v5970_v21 = vrot.slane %v9240_v5, 9 }
 0x3f6   : > { %v2922_v14 = vpop.f32.mrf.mxu0 }
 0x3f7   : > { %v2990_v27 = vadd.f32 %v2922_v14, %v2778_v8  ;;  %v3274_v23 = vor.u32 %v3272_v0, %v3271_v57  ;;  %v3415_v24 = vsel %vm8054_vm8, %v3271_v57, 0  ;;  %v6436_v57 = vld [vmem:[#allocation7 + $0x180] sm:$0xff] }
 0x3f8   : > { %v3995_v6 = vrot.slane %v3415_v24, 1  ;;  %v3524_v39 = vshll.u32 %v3415_v24, 16  ;;  %4875 = vmatpush.bf16.msra.mxu0 %v6436_v57 }
 0x3f9   : > { %v3030_v48 = vadd.f32 %v8044_v25, %v2990_v27  ;;  %v8194_v37 = vsel %vm8054_vm8, 0, %v3274_v23  ;;  %v2802_v27 = vrot.slane %v9237_v31, 5  ;;  %v3186_v23 = vunpack.c.l.b16 %v3114_v49 }
 0x3fa   : > { %v3994_v54 = vrot.slane %v8194_v37, 1  ;;  %v3519_v61 = vshll.u32 %v8194_v37, 16  ;;  %v3517_v42 = vshrl.u32 %v8194_v37, 16  ;;  %v3526_v24 = vrot.slane %v3524_v39, 1 }
 0x3fb   : > { %v3066_v2 = vmax.f32 %v3030_v48, 0.0  ;;  %v2805_v49 = vrot.slane %v7913_v30, 5  ;;  %v2803_v57 = vsel %vm7035_vm5, %v5970_v21, %v2802_v27  ;;  %v6423_v30 = vld [vmem:[#allocation7 + $0x118] sm:$0xff] }
 0x3fc   : > { %3892 = vmatmul.bf16.gmra.mxu2 %v8194_v37  ;;  %v3521_v7 = vrot.slane %v3519_v61, 1  ;;  %v8205_v56 = vsel %vm3975_vm9, %v3994_v54, %v3995_v6  ;;  %v9238_v61 = vld [vmem:[#allocation38_spill] sm:$0xff]  ;;  %v2804_v6 = vrot.slane %v2802_v27, 4 }
 0x3fd   : > { %v3115_v8 = vpack.c.bf16 %v3066_v2, %v3066_v2  ;;  %v2552_v62 = vadd.f32 %v9238_v61, %v2346_v12  ;;  %v9239_v2 = vld [vmem:[#allocation40_spill] sm:$0xff]  ;;  %v2824_v61 = vunpack.c.l.b16 %v2803_v57  ;;  %4494 = vmatpush.bf16.msrb.mxu2 %v6423_v30 }
 0x3fe   : > { %v2925_v0 = vpop.f32.mrf.mxu0  ;;  %v3522_v14 = vor.u32 %v3521_v7, %v3517_v42 }
 0x3ff   : > { %v3187_v48 = vunpack.c.l.b16 %v3115_v8  ;;  %v2991_v40 = vadd.f32 %v2925_v0, %v7924_v46  ;;  %4143 = vmatmul.bf16.gmra.mxu3 %v8205_v56  ;;  %v2780_v7 = vadd.f32 %v7935_v36, %v2552_v62 }
 0x400   : > { %v8214_v54 = vsel %vm3443_vm10, %v3522_v14, %v3526_v24  ;;  %v2806_v14 = vsel %vm7035_vm5, %v2804_v6, %v2805_v49  ;;  %v6415_v24 = vld [vmem:[#allocation7 + $0xd8] sm:$0xff] }
 0x401   : > { %v3215_v35 = vpack.c.b16 %v3187_v48, %v3186_v23  ;;  %2964 = vmatmul.bf16.gmra.mxu0 %v9239_v2  ;;  %v3031_v46 = vadd.f32 %v8044_v25, %v2991_v40  ;;  %v2825_v21 = vunpack.c.l.b16 %v2806_v14  ;;  %4295 = vmatpush.bf16.msrb.mxu1 %v6415_v24  ;;  %v9243_v24 = vld [vmem:[#allocation44_spill] sm:$0xff] }
 0x403   : > { %v3276_v42 = vshrl.u32 %v3215_v35, 16  ;;  %3755 = vmatmul.bf16.gmra.mxu1 %v8214_v54  ;;  %v3279_v12 = vshll.u32 %v3215_v35, 16  ;;  %v3067_v31 = vmax.f32 %v3031_v46, 0.0  ;;  %v2826_v8 = vpack.c.b16 %v2825_v21, %v2824_v61 }
 0x405   : > { %v3278_v39 = vrot.slane %v3276_v42, 7  ;;  %v3116_v2 = vpack.c.bf16 %v3067_v31, %v3067_v31 }
 0x406   : > { %v2927_v0 = vpop.f32.mrf.mxu0 }
 0x407   : > { %v2992_v23 = vadd.f32 %v2927_v0, %v2780_v7  ;;  %v3281_v48 = vor.u32 %v3279_v12, %v3278_v39  ;;  %v3416_v62 = vsel %vm8054_vm8, %v3278_v39, 0  ;;  %v9242_v7 = vld [vmem:[#allocation42_spill] sm:$0xff] }
 0x408   : > { %v3998_v6 = vrot.slane %v3416_v62, 1  ;;  %v3536_v46 = vshll.u32 %v3416_v62, 16  ;;  %v2348_v12 = vadd.f32 %v9242_v7, %v7943_v34 }
 0x409   : > { %v3032_v40 = vadd.f32 %v8044_v25, %v2992_v23  ;;  %v8227_v36 = vsel %vm8054_vm8, 0, %v3281_v48  ;;  %v3188_v23 = vunpack.c.l.b16 %v3116_v2 }
 0x40a   : > { %v3997_v27 = vrot.slane %v8227_v36, 1  ;;  %v3531_v35 = vshll.u32 %v8227_v36, 16  ;;  %v3529_v49 = vshrl.u32 %v8227_v36, 16  ;;  %v3538_v30 = vrot.slane %v3536_v46, 1  ;;  %v8251_v46 = vpop.f32.mrf.mxu1 }
 0x40b   : > { %v3068_v5 = vmax.f32 %v3032_v40, 0.0  ;;  %v2554_v40 = vadd.f32 %v9243_v24, %v2348_v12 }
 0x40c   : > { %3897 = vmatmul.bf16.gmra.mxu2 %v8227_v36  ;;  %v3533_v42 = vrot.slane %v3531_v35, 1  ;;  %v8238_v0 = vsel %vm3975_vm9, %v3997_v27, %v3998_v6 }
 0x40d   : > { %v3117_v39 = vpack.c.bf16 %v3068_v5, %v3068_v5  ;;  %v2782_v27 = vadd.f32 %v7945_v38, %v2554_v40  ;;  %v8249_v5 = vpop.f32.mrf.mxu2  ;;  %v8260_v38 = vpop.f32.mrf.mxu3  ;;  %v2350_v40 = vadd.f32 %v7933_v17, %v7956_v13 }
 0x40e   : > { %v2930_v57 = vpop.f32.mrf.mxu0  ;;  %v3534_v14 = vor.u32 %v3533_v42, %v3529_v49 }
 0x40f   : > { %v3189_v31 = vunpack.c.l.b16 %v3117_v39  ;;  %v2993_v48 = vadd.f32 %v2930_v57, %v7940_v3  ;;  %4148 = vmatmul.bf16.gmra.mxu3 %v8238_v0 }
 0x410   : > { %v8244_v34 = vsel %vm3443_vm10, %v3534_v14, %v3538_v30 }
 0x411   : > { %v3216_v62 = vpack.c.b16 %v3189_v31, %v3188_v23  ;;  %2969 = vmatmul.bf16.gmra.mxu0 %v2826_v8  ;;  %9244 = vst [vmem:[#allocation63_spill] sm:$0xff] %v8244_v34  ;;  %v3033_v21 = vadd.f32 %v8044_v25, %v2993_v48 }
 0x413   : > { %v3283_v61 = vshrl.u32 %v3216_v62, 16  ;;  %3760 = vmatmul.bf16.gmra.mxu1 %v8244_v34  ;;  %v3286_v2 = vshll.u32 %v3216_v62, 16  ;;  %v3069_v6 = vmax.f32 %v3033_v21, 0.0 }
 0x415   : > { %v3285_v35 = vrot.slane %v3283_v61, 7  ;;  %v3118_v14 = vpack.c.bf16 %v3069_v6, %v3069_v6 }
 0x416   : > { %v2932_v3 = vpop.f32.mrf.mxu0 }
 0x417   : > { %v2994_v49 = vadd.f32 %v2932_v3, %v2782_v27  ;;  %v3288_v42 = vor.u32 %v3286_v2, %v3285_v35  ;;  %v3417_v39 = vsel %vm8054_vm8, %v3285_v35, 0  ;;  %v3190_v35 = vunpack.c.l.b16 %v3118_v14 }
 0x418   : > { %v4001_v31 = vrot.slane %v3417_v39, 1  ;;  %v3548_v24 = vshll.u32 %v3417_v39, 16 }
 0x419   : > { %v3034_v7 = vadd.f32 %v8044_v25, %v2994_v49  ;;  %v8256_v12 = vsel %vm8054_vm8, 0, %v3288_v42 }
 0x41a   : > { %v4000_v8 = vrot.slane %v8256_v12, 1  ;;  %v3543_v57 = vshll.u32 %v8256_v12, 16  ;;  %v3541_v48 = vshrl.u32 %v8256_v12, 16  ;;  %v3550_v42 = vrot.slane %v3548_v24, 1 }
 0x41b   : > { %v3070_v23 = vmax.f32 %v3034_v7, 0.0  ;;  %v2556_v7 = vadd.f32 %v7937_v63, %v2350_v40 }
 0x41c   : > { %3902 = vmatmul.bf16.gmra.mxu2 %v8256_v12  ;;  %v3545_v30 = vrot.slane %v3543_v57, 1  ;;  %v8269_v21 = vsel %vm3975_vm9, %v4000_v8, %v4001_v31 }
 0x41d   : > { %v3119_v62 = vpack.c.bf16 %v3070_v23, %v3070_v23 }
 0x41e   : > { %v2935_v61 = vpop.f32.mrf.mxu0  ;;  %v3546_v27 = vor.u32 %v3545_v30, %v3541_v48 }
 0x41f   : > { %v3191_v2 = vunpack.c.l.b16 %v3119_v62  ;;  %v2995_v3 = vadd.f32 %v2935_v61, %v7953_v33  ;;  %v3863_v6 = vpop.f32.mrf.mxu2  ;;  %4153 = vmatmul.bf16.gmra.mxu3 %v8269_v21  ;;  %v2784_v33 = vadd.f32 %v7958_v1, %v2556_v7  ;;  %v6422_v61 = vld [vmem:[#allocation7 + $0x110] sm:$0xff] }
 0x420   : > { %v3726_v49 = vpop.f32.mrf.mxu1  ;;  %v8276_v13 = vsel %vm3443_vm10, %v3546_v27, %v3550_v42  ;;  %4495 = vmatpush.bf16.msrb.mxu2 %v6422_v61 }
 0x421   : > { %v3217_v39 = vpack.c.b16 %v3191_v2, %v3190_v35  ;;  %v3864_v57 = vadd.f32 %v3863_v6, %v3726_v49  ;;  %4876 = vmatmul.bf16.vlgmr.msra.gmra.mxu0 %v8096_v43  ;;  %v3035_v14 = vadd.f32 %v8044_v25, %v2995_v3  ;;  %v6414_v35 = vld [vmem:[#allocation7 + $0xd0] sm:$0xff] }
 0x422   : > { %v4114_v17 = vpop.f32.mrf.mxu3  ;;  %4296 = vmatpush.bf16.msrb.mxu1 %v6414_v35 }
 0x423   : > { %v3290_v8 = vshrl.u32 %v3217_v39, 16  ;;  %v8279_v23 = vadd.f32 %v4114_v17, %v3864_v57  ;;  %3765 = vmatmul.bf16.gmra.mxu1 %v8276_v13  ;;  %v3293_v48 = vshll.u32 %v3217_v39, 16  ;;  %v3071_v30 = vmax.f32 %v3035_v14, 0.0 }
 0x425   : > { %v3292_v31 = vrot.slane %v3290_v8, 7  ;;  %v3120_v39 = vpack.c.bf16 %v3071_v30, %v3071_v30 }
 0x426   : > { %v2937_v63 = vpop.f32.mrf.mxu0 }
 0x427   : > { %v2996_v24 = vadd.f32 %v2937_v63, %v2784_v33  ;;  %v3865_v40 = vpop.f32.mrf.mxu2  ;;  %v3295_v62 = vor.u32 %v3293_v48, %v3292_v31  ;;  %v3418_v1 = vsel %vm8054_vm8, %v3292_v31, 0  ;;  %v2352_v31 = vadd.f32 %v7948_v53, %v7969_v28 }
 0x428   : > { %v3728_v27 = vpop.f32.mrf.mxu1  ;;  %v4004_v8 = vrot.slane %v3418_v1, 1  ;;  %v3560_v48 = vshll.u32 %v3418_v1, 16  ;;  %v3192_v30 = vunpack.c.l.b16 %v3120_v39 }
 0x429   : > { %v3036_v2 = vadd.f32 %v8044_v25, %v2996_v24  ;;  %v3866_v6 = vadd.f32 %v3865_v40, %v3728_v27  ;;  %v8286_v3 = vsel %vm8054_vm8, 0, %v3295_v62  ;;  %v2558_v1 = vadd.f32 %v7951_v59, %v2352_v31 }
 0x42a   : > { %v4116_v49 = vpop.f32.mrf.mxu3  ;;  %v4003_v42 = vrot.slane %v8286_v3, 1  ;;  %v3555_v7 = vshll.u32 %v8286_v3, 16  ;;  %v3553_v14 = vshrl.u32 %v8286_v3, 16 }
 0x42b   : > { %v3072_v57 = vmax.f32 %v3036_v2, 0.0  ;;  %v8292_v17 = vadd.f32 %v4116_v49, %v3866_v6  ;;  %v3562_v6 = vrot.slane %v3560_v48, 1 }
 0x42c   : > { %3907 = vmatmul.bf16.gmra.mxu2 %v8286_v3  ;;  %v3557_v33 = vrot.slane %v3555_v7, 1  ;;  %v8299_v40 = vsel %vm3975_vm9, %v4003_v42, %v4004_v8 }
 0x42d   : > { %v3121_v63 = vpack.c.bf16 %v3072_v57, %v3072_v57 }
 0x42e   : > { %v2940_v24 = vpop.f32.mrf.mxu0  ;;  %v3558_v62 = vor.u32 %v3557_v33, %v3553_v14 }
 0x42f   : > { %v3193_v61 = vunpack.c.l.b16 %v3121_v63  ;;  %v2997_v35 = vadd.f32 %v2940_v24, %v7964_v44  ;;  %v3868_v27 = vpop.f32.mrf.mxu2  ;;  %4158 = vmatmul.bf16.gmra.mxu3 %v8299_v40  ;;  %v2786_v44 = vadd.f32 %v7971_v26, %v2558_v1 }
 0x430   : > { %v3731_v2 = vpop.f32.mrf.mxu1  ;;  %v8306_v28 = vsel %vm3443_vm10, %v3558_v62, %v3562_v6 }
 0x431   : > { %v3218_v49 = vpack.c.b16 %v3193_v61, %v3192_v30  ;;  %v3869_v7 = vadd.f32 %v3868_v27, %v3731_v2  ;;  %4881 = vmatmul.bf16.gmra.mxu0 %v8119_v15  ;;  %9245 = vst [vmem:[#allocation31_spill] sm:$0xff] %v8306_v28  ;;  %v3037_v39 = vadd.f32 %v8044_v25, %v2997_v35 }
 0x432   : > { %v4119_v53 = vpop.f32.mrf.mxu3 }
 0x433   : > { %v3297_v42 = vshrl.u32 %v3218_v49, 16  ;;  %v8309_v57 = vadd.f32 %v4119_v53, %v3869_v7  ;;  %3770 = vmatmul.bf16.gmra.mxu1 %v8306_v28  ;;  %v3300_v14 = vshll.u32 %v3218_v49, 16  ;;  %v3073_v33 = vmax.f32 %v3037_v39, 0.0 }
 0x435   : > { %v3299_v8 = vrot.slane %v3297_v42, 7  ;;  %v3122_v6 = vpack.c.bf16 %v3073_v33, %v3073_v33 }
 0x436   : > { %v2942_v59 = vpop.f32.mrf.mxu0 }
 0x437   : > { %v2998_v48 = vadd.f32 %v2942_v59, %v2786_v44  ;;  %v3870_v31 = vpop.f32.mrf.mxu2  ;;  %v3302_v63 = vor.u32 %v3300_v14, %v3299_v8  ;;  %v3419_v35 = vsel %vm8054_vm8, %v3299_v8, 0  ;;  %v2354_v44 = vadd.f32 %v7962_v32, %v7978_v55 }
 0x438   : > { %v3733_v24 = vpop.f32.mrf.mxu1  ;;  %v4007_v7 = vrot.slane %v3419_v35, 1  ;;  %v3572_v39 = vshll.u32 %v3419_v35, 16  ;;  %v3194_v33 = vunpack.c.l.b16 %v3122_v6 }
 0x439   : > { %v3038_v62 = vadd.f32 %v8044_v25, %v2998_v48  ;;  %v3871_v30 = vadd.f32 %v3870_v31, %v3733_v24  ;;  %v8316_v61 = vsel %vm8054_vm8, 0, %v3302_v63  ;;  %v2560_v35 = vadd.f32 %v7966_v4, %v2354_v44 }
 0x43a   : > { %v4121_v27 = vpop.f32.mrf.mxu3  ;;  %v4006_v26 = vrot.slane %v8316_v61, 1  ;;  %v3567_v2 = vshll.u32 %v8316_v61, 16  ;;  %v3565_v53 = vshrl.u32 %v8316_v61, 16 }
 0x43b   : > { %v3074_v1 = vmax.f32 %v3038_v62, 0.0  ;;  %v8322_v49 = vadd.f32 %v4121_v27, %v3871_v30  ;;  %v3574_v30 = vrot.slane %v3572_v39, 1 }
 0x43c   : > { %3912 = vmatmul.bf16.gmra.mxu2 %v8316_v61  ;;  %v3569_v42 = vrot.slane %v3567_v2, 1  ;;  %v8329_v59 = vsel %vm3975_vm9, %v4006_v26, %v4007_v7 }
 0x43d   : > { %v3123_v8 = vpack.c.bf16 %v3074_v1, %v3074_v1 }
 0x43e   : > { %v2945_v14 = vpop.f32.mrf.mxu0  ;;  %v3570_v48 = vor.u32 %v3569_v42, %v3565_v53 }
 0x43f   : > { %v3195_v31 = vunpack.c.l.b16 %v3123_v8  ;;  %v2999_v63 = vadd.f32 %v2945_v14, %v7975_v45  ;;  %v3873_v24 = vpop.f32.mrf.mxu2  ;;  %4163 = vmatmul.bf16.gmra.mxu3 %v8329_v59  ;;  %v2788_v45 = vadd.f32 %v7984_v9, %v2560_v35  ;;  %v6421_v14 = vld [vmem:[#allocation7 + $0x108] sm:$0xff] }
 0x440   : > { %v3736_v62 = vpop.f32.mrf.mxu1  ;;  %v8336_v55 = vsel %vm3443_vm10, %v3570_v48, %v3574_v30  ;;  %4496 = vmatpush.bf16.msrb.mxu2 %v6421_v14 }
 0x441   : > { %v3219_v27 = vpack.c.b16 %v3195_v31, %v3194_v33  ;;  %v3874_v2 = vadd.f32 %v3873_v24, %v3736_v62  ;;  %4886 = vmatmul.bf16.gmra.mxu0 %v8142_v41  ;;  %v3039_v6 = vadd.f32 %v8044_v25, %v2999_v63  ;;  %v6413_v33 = vld [vmem:[#allocation7 + $0xc8] sm:$0xff] }
 0x442   : > { %v4124_v32 = vpop.f32.mrf.mxu3  ;;  %4297 = vmatpush.bf16.msrb.mxu1 %v6413_v33 }
 0x443   : > { %v3304_v26 = vshrl.u32 %v3219_v27, 16  ;;  %v8339_v1 = vadd.f32 %v4124_v32, %v3874_v2  ;;  %3775 = vmatmul.bf16.gmra.mxu1 %v8336_v55  ;;  %v3307_v53 = vshll.u32 %v3219_v27, 16  ;;  %v3075_v42 = vmax.f32 %v3039_v6, 0.0 }
 0x445   : > { %9246 = vst [vmem:[#allocation65_spill] sm:$0xff] %v8339_v1  ;;  %v3306_v7 = vrot.slane %v3304_v26, 7  ;;  %v3124_v27 = vpack.c.bf16 %v3075_v42, %v3075_v42 }
 0x446   : > { %v2947_v4 = vpop.f32.mrf.mxu0 }
 0x447   : > { %v3000_v39 = vadd.f32 %v2947_v4, %v2788_v45  ;;  %v3875_v44 = vpop.f32.mrf.mxu2  ;;  %v3309_v8 = vor.u32 %v3307_v53, %v3306_v7  ;;  %v3420_v9 = vsel %vm8054_vm8, %v3306_v7, 0  ;;  %v2356_v7 = vadd.f32 %v7980_v11, %v7991_v10 }
 0x448   : > { %v3738_v48 = vpop.f32.mrf.mxu1  ;;  %v3584_v45 = vshll.u32 %v3420_v9, 16  ;;  %v3196_v42 = vunpack.c.l.b16 %v3124_v27 }
 0x449   : > { %v3040_v31 = vadd.f32 %v8044_v25, %v3000_v39  ;;  %v3876_v24 = vadd.f32 %v3875_v44, %v3738_v48  ;;  %v8346_v63 = vsel %vm8054_vm8, 0, %v3309_v8  ;;  %v4010_v25 = vrot.slane %v3420_v9, 1 }
 0x44a   : > { %v4126_v62 = vpop.f32.mrf.mxu3  ;;  %v4009_v30 = vrot.slane %v8346_v63, 1  ;;  %v3579_v35 = vshll.u32 %v8346_v63, 16  ;;  %v3577_v26 = vshrl.u32 %v8346_v63, 16 }
 0x44b   : > { %v3076_v2 = vmax.f32 %v3040_v31, 0.0  ;;  %v8352_v32 = vadd.f32 %v4126_v62, %v3876_v24  ;;  %v3586_v31 = vrot.slane %v3584_v45, 1  ;;  %v2562_v24 = vadd.f32 %v7982_v29, %v2356_v7  ;;  %v9251_v29 = vld [vmem:[#allocation22_spill] sm:$0xff] }
 0x44c   : > { %3917 = vmatmul.bf16.gmra.mxu2 %v8346_v63  ;;  %v3581_v6 = vrot.slane %v3579_v35, 1  ;;  %v8359_v39 = vsel %vm3975_vm9, %v4009_v30, %v4010_v25 }
 0x44d   : > { %9247 = vst [vmem:[#allocation75_spill] sm:$0xff] %v8352_v32  ;;  %v3125_v53 = vpack.c.bf16 %v3076_v2, %v3076_v2  ;;  %v2790_v2 = vadd.f32 %v9251_v29, %v2562_v24 }
 0x44e   : > { %v2950_v4 = vpop.f32.mrf.mxu0  ;;  %9248 = vst [vmem:[#allocation45_spill] sm:$0xff] %v8359_v39  ;;  %v3582_v44 = vor.u32 %v3581_v6, %v3577_v26 }
 0x44f   : > { %v3197_v8 = vunpack.c.l.b16 %v3125_v53  ;;  %v3001_v14 = vadd.f32 %v2950_v4, %v7988_v18  ;;  %v3878_v33 = vpop.f32.mrf.mxu2  ;;  %4168 = vmatmul.bf16.gmra.mxu3 %v8359_v39  ;;  %v8371_v18 = vld [vmem:[%s8932_s2] ss:$0 sm:$0xff] }
 0x450   : > { %v3741_v48 = vpop.f32.mrf.mxu1  ;;  %v8366_v10 = vsel %vm3443_vm10, %v3582_v44, %v3586_v31 }
 0x451   : > { %v3220_v9 = vpack.c.b16 %v3197_v8, %v3196_v42  ;;  %v3879_v62 = vadd.f32 %v3878_v33, %v3741_v48  ;;  %4891 = vmatmul.bf16.gmra.mxu0 %v8168_v50  ;;  %9249 = vst [vmem:[#allocation66_spill] sm:$0xff] %v8366_v10  ;;  %v3041_v35 = vadd.f32 %v8371_v18, %v3001_v14 }
 0x452   : > { %v4129_v11 = vpop.f32.mrf.mxu3 }
 0x453   : > { %v3311_v30 = vshrl.u32 %v3220_v9, 16  ;;  %v8374_v27 = vadd.f32 %v4129_v11, %v3879_v62  ;;  %3780 = vmatmul.bf16.gmra.mxu1 %v8366_v10  ;;  %v3314_v26 = vshll.u32 %v3220_v9, 16  ;;  %v3077_v45 = vmax.f32 %v3041_v35, 0.0 }
 0x455   : > { %9250 = vst [vmem:[#allocation37_spill] sm:$0xff] %v8374_v27  ;;  %v3313_v25 = vrot.slane %v3311_v30, 7  ;;  %v3126_v9 = vpack.c.bf16 %v3077_v45, %v3077_v45 }
 0x456   : > { %v2952_v6 = vpop.f32.mrf.mxu0 }
 0x457   : > { %v3002_v7 = vadd.f32 %v2952_v6, %v2790_v2  ;;  %v3880_v53 = vpop.f32.mrf.mxu2  ;;  %v3316_v4 = vor.u32 %v3314_v26, %v3313_v25  ;;  %v3421_v33 = vsel %vm8054_vm8, %v3313_v25, 0  ;;  %v9253_v26 = vld [vmem:[#allocation58_spill] sm:$0xff]  ;;  %v3198_v45 = vunpack.c.l.b16 %v3126_v9 }
 0x458   : > { %v3743_v44 = vpop.f32.mrf.mxu1  ;;  %v4013_v30 = vrot.slane %v3421_v33, 1  ;;  %v3596_v2 = vshll.u32 %v3421_v33, 16  ;;  %v2358_v6 = vadd.f32 %v9253_v26, %v8004_v58  ;;  %v9255_v33 = vld [vmem:[#allocation47_spill] sm:$0xff] }
 0x459   : > { %v3042_v42 = vadd.f32 %v8371_v18, %v3002_v7  ;;  %v3881_v8 = vadd.f32 %v3880_v53, %v3743_v44  ;;  %v8381_v14 = vsel %vm8054_vm8, 0, %v3316_v4 }
 0x45a   : > { %v4131_v48 = vpop.f32.mrf.mxu3  ;;  %v4012_v31 = vrot.slane %v8381_v14, 1  ;;  %v3591_v24 = vshll.u32 %v8381_v14, 16  ;;  %v3589_v35 = vshrl.u32 %v8381_v14, 16  ;;  %v2564_v27 = vadd.f32 %v9255_v33, %v2358_v6 }
 0x45b   : > { %v3078_v62 = vmax.f32 %v3042_v42, 0.0  ;;  %v8387_v11 = vadd.f32 %v4131_v48, %v3881_v8  ;;  %v6435_v48 = vld [vmem:[#allocation7 + $0x178] sm:$0xff] }
 0x45c   : > { %3922 = vmatmul.bf16.gmra.mxu2 %v8381_v14  ;;  %v3593_v29 = vrot.slane %v3591_v24, 1  ;;  %v8394_v53 = vsel %vm3975_vm9, %v4012_v31, %v4013_v30  ;;  %v3598_v24 = vrot.slane %v3596_v2, 1  ;;  %4682 = vmatpush.bf16.msra.mxu3 %v6435_v48  ;;  %v6433_v48 = vld [vmem:[#allocation7 + $0x168] sm:$0xff] }
 0x45d   : > { %9252 = vst [vmem:[#allocation68_spill] sm:$0xff] %v8387_v11  ;;  %v3127_v25 = vpack.c.bf16 %v3078_v62, %v3078_v62 }
 0x45e   : > { %v2955_v7 = vpop.f32.mrf.mxu0  ;;  %9254 = vst [vmem:[#allocation51_spill] sm:$0xff] %v8394_v53  ;;  %v3594_v4 = vor.u32 %v3593_v29, %v3589_v35  ;;  %v6434_v35 = vld [vmem:[#allocation7 + $0x170] sm:$0xff]  ;;  %v9258_v29 = vld [vmem:[#allocation48_spill] sm:$0xff] }
 0x45f   : > { %v3199_v44 = vunpack.c.l.b16 %v3127_v25  ;;  %v3003_v42 = vadd.f32 %v2955_v7, %v8001_v19  ;;  %v3883_v8 = vpop.f32.mrf.mxu2  ;;  %4173 = vmatmul.bf16.gmra.mxu3 %v8394_v53  ;;  %v2792_v2 = vadd.f32 %v9258_v29, %v2564_v27  ;;  %v6431_v53 = vld [vmem:[#allocation7 + $0x158] sm:$0xff] }
 0x460   : > { %v3746_v11 = vpop.f32.mrf.mxu1  ;;  %v8401_v62 = vsel %vm3443_vm10, %v3594_v4, %v3598_v24  ;;  %4683 = vmatpush.bf16.msra.mxu3 %v6434_v35  ;;  %v6420_v4 = vld [vmem:[#allocation7 + $0x100] sm:$0xff] }
 0x461   : > { %v3221_v32 = vpack.c.b16 %v3199_v44, %v3198_v45  ;;  %v3884_v58 = vadd.f32 %v3883_v8, %v3746_v11  ;;  %4896 = vmatmul.bf16.gmra.mxu0 %v8194_v37  ;;  %9256 = vst [vmem:[#allocation70_spill] sm:$0xff] %v8401_v62  ;;  %v3043_v19 = vadd.f32 %v8371_v18, %v3003_v42  ;;  %v6412_v8 = vld [vmem:[#allocation7 + $0xc0] sm:$0xff] }
 0x462   : > { %v4134_v31 = vpop.f32.mrf.mxu3  ;;  %4497 = vmatpush.bf16.msrb.mxu2 %v6420_v4  ;;  %4298 = vmatpush.bf16.msrb.mxu1 %v6412_v8 }
 0x463   : > { %v3318_v9 = vshrl.u32 %v3221_v32, 16  ;;  %v8404_v30 = vadd.f32 %v4134_v31, %v3884_v58  ;;  %3785 = vmatmul.bf16.gmra.mxu1 %v8401_v62  ;;  %v3321_v6 = vshll.u32 %v3221_v32, 16  ;;  %v3079_v25 = vmax.f32 %v3043_v19, 0.0  ;;  %v9264_v62 = vld [vmem:[#allocation52_spill] sm:$0xff] }
 0x464   : > { %4684 = vmatpush.bf16.msra.mxu3 %v6433_v48 }
 0x465   : > { %9257 = vst [vmem:[#allocation72_spill] sm:$0xff] %v8404_v30  ;;  %v3320_v26 = vrot.slane %v3318_v9, 7  ;;  %v3128_v19 = vpack.c.bf16 %v3079_v25, %v3079_v25 }
 0x466   : > { %v2957_v11 = vpop.f32.mrf.mxu0 }
 0x467   : > { %v3004_v7 = vadd.f32 %v2957_v11, %v2792_v2  ;;  %v3885_v45 = vpop.f32.mrf.mxu2  ;;  %v3323_v44 = vor.u32 %v3321_v6, %v3320_v26  ;;  %v3422_v32 = vsel %vm8054_vm8, %v3320_v26, 0  ;;  %v6432_v2 = vld [vmem:[#allocation7 + $0x160] sm:$0xff]  ;;  %v3200_v48 = vunpack.c.l.b16 %v3128_v19 }
 0x468   : > { %v3748_v24 = vpop.f32.mrf.mxu1  ;;  %v4016_v6 = vrot.slane %v3422_v32, 1  ;;  %v3608_v26 = vshll.u32 %v3422_v32, 16  ;;  %4685 = vmatpush.bf16.msra.mxu3 %v6432_v2 }
 0x469   : > { %v3044_v42 = vadd.f32 %v8371_v18, %v3004_v7  ;;  %v3886_v33 = vadd.f32 %v3885_v45, %v3748_v24  ;;  %v8411_v58 = vsel %vm8054_vm8, 0, %v3323_v44  ;;  %v9260_v45 = vld [vmem:[#allocation24_spill] sm:$0xff]  ;;  %v9261_v44 = vld [vmem:[#allocation50_spill] sm:$0xff] }
 0x46a   : > { %v4136_v27 = vpop.f32.mrf.mxu3  ;;  %v4015_v31 = vrot.slane %v8411_v58, 1  ;;  %v3603_v9 = vshll.u32 %v8411_v58, 16  ;;  %v3601_v11 = vshrl.u32 %v8411_v58, 16  ;;  %v2360_v4 = vadd.f32 %v9261_v44, %v9260_v45 }
 0x46b   : > { %v3080_v35 = vmax.f32 %v3044_v42, 0.0  ;;  %v8417_v29 = vadd.f32 %v4136_v27, %v3886_v33  ;;  %v9263_v33 = vld [vmem:[#allocation61_spill] sm:$0xff]  ;;  %v3610_v32 = vrot.slane %v3608_v26, 1 }
 0x46c   : > { %3927 = vmatmul.bf16.gmra.mxu2 %v8411_v58  ;;  %v3605_v7 = vrot.slane %v3603_v9, 1  ;;  %v8424_v30 = vsel %vm3975_vm9, %v4015_v31, %v4016_v6  ;;  %v2566_v1 = vadd.f32 %v9264_v62, %v2360_v4  ;;  %4686 = vmatpush.bf16.msra.mxu3 %v6431_v53  ;;  %v9267_v26 = vld [vmem:[#allocation53_spill] sm:$0xff] }
 0x46d   : > { %9259 = vst [vmem:[#allocation54_spill] sm:$0xff] %v8417_v29  ;;  %v3129_v8 = vpack.c.bf16 %v3080_v35, %v3080_v35 }
 0x46e   : > { %v2960_v24 = vpop.f32.mrf.mxu0  ;;  %9262 = vst [vmem:[#allocation74_spill] sm:$0xff] %v8424_v30  ;;  %v3606_v25 = vor.u32 %v3605_v7, %v3601_v11  ;;  %v6430_v7 = vld [vmem:[#allocation7 + $0x150] sm:$0xff]  ;;  %v2794_v44 = vadd.f32 %v9267_v26, %v2566_v1 }
 0x46f   : > { %v3201_v42 = vunpack.c.l.b16 %v3129_v8  ;;  %v3005_v27 = vadd.f32 %v2960_v24, %v9263_v33  ;;  %v3888_v29 = vpop.f32.mrf.mxu2  ;;  %4178 = vmatmul.bf16.gmra.mxu3 %v8424_v30 }
 0x470   : > { %v3751_v9 = vpop.f32.mrf.mxu1  ;;  %v8431_v6 = vsel %vm3443_vm10, %v3606_v25, %v3610_v32  ;;  %4687 = vmatpush.bf16.msra.mxu3 %v6430_v7  ;;  %v6428_v7 = vld [vmem:[#allocation7 + $0x140] sm:$0xff] }
 0x471   : > { %v3222_v45 = vpack.c.b16 %v3201_v42, %v3200_v48  ;;  %v3889_v35 = vadd.f32 %v3888_v29, %v3751_v9  ;;  %4901 = vmatmul.bf16.gmra.mxu0 %v8227_v36  ;;  %9265 = vst [vmem:[#allocation76_spill] sm:$0xff] %v8431_v6  ;;  %v3045_v2 = vadd.f32 %v8371_v18, %v3005_v27  ;;  %v6429_v42 = vld [vmem:[#allocation7 + $0x148] sm:$0xff] }
 0x472   : > { %v4139_v31 = vpop.f32.mrf.mxu3 }
 0x473   : > { %v3325_v19 = vshrl.u32 %v3222_v45, 16  ;;  %v8434_v11 = vadd.f32 %v4139_v31, %v3889_v35  ;;  %3790 = vmatmul.bf16.gmra.mxu1 %v8431_v6  ;;  %v3328_v4 = vshll.u32 %v3222_v45, 16  ;;  %v3081_v8 = vmax.f32 %v3045_v2, 0.0 }
 0x474   : > { %4688 = vmatpush.bf16.msra.mxu3 %v6429_v42 }
 0x475   : > { %9266 = vst [vmem:[#allocation57_spill] sm:$0xff] %v8434_v11  ;;  %v3327_v62 = vrot.slane %v3325_v19, 7  ;;  %v3130_v31 = vpack.c.bf16 %v3081_v8, %v3081_v8 }
 0x476   : > { %v2962_v29 = vpop.f32.mrf.mxu0 }
 0x477   : > { %v3006_v24 = vadd.f32 %v2962_v29, %v2794_v44  ;;  %v3890_v48 = vpop.f32.mrf.mxu2  ;;  %v3330_v25 = vor.u32 %v3328_v4, %v3327_v62  ;;  %v3423_v1 = vsel %vm8054_vm8, %v3327_v62, 0  ;;  %v9270_v62 = vld [vmem:[#allocation21_spill] sm:$0xff]  ;;  %v3202_v42 = vunpack.c.l.b16 %v3130_v31 }
 0x478   : > { %v3753_v53 = vpop.f32.mrf.mxu1  ;;  %v4019_v26 = vrot.slane %v3423_v1, 1  ;;  %v3620_v29 = vshll.u32 %v3423_v1, 16  ;;  %4689 = vmatpush.bf16.msra.mxu3 %v6428_v7  ;;  %v9272_v1 = vld [vmem:[#allocation64_spill] sm:$0xff] }
 0x479   : > { %v3046_v33 = vadd.f32 %v8371_v18, %v3006_v24  ;;  %v3891_v27 = vadd.f32 %v3890_v48, %v3753_v53  ;;  %v8441_v9 = vsel %vm8054_vm8, 0, %v3330_v25  ;;  %v9269_v24 = vld [vmem:[#allocation27_spill] sm:$0xff] }
 0x47a   : > { %v4141_v32 = vpop.f32.mrf.mxu3  ;;  %v4018_v45 = vrot.slane %v8441_v9, 1  ;;  %v3615_v35 = vshll.u32 %v8441_v9, 16  ;;  %v3613_v44 = vshrl.u32 %v8441_v9, 16  ;;  %v2362_v48 = vadd.f32 %v9270_v62, %v9269_v24 }
 0x47b   : > { %v3082_v19 = vmax.f32 %v3046_v33, 0.0  ;;  %v8447_v2 = vadd.f32 %v4141_v32, %v3891_v27  ;;  %v9271_v27 = vld [vmem:[#allocation55_spill] sm:$0xff] }
 0x47c   : > { %3932 = vmatmul.bf16.gmra.mxu2 %v8441_v9  ;;  %v3617_v4 = vrot.slane %v3615_v35, 1  ;;  %v8454_v11 = vsel %vm3975_vm9, %v4018_v45, %v4019_v26  ;;  %v3622_v35 = vrot.slane %v3620_v29, 1  ;;  %v2568_v6 = vadd.f32 %v9272_v1, %v2362_v48  ;;  %v9274_v29 = vld [vmem:[#allocation56_spill] sm:$0xff] }
 0x47d   : > { %9268 = vst [vmem:[#allocation12_spill] sm:$0xff] %v8447_v2  ;;  %v3131_v25 = vpack.c.bf16 %v3082_v19, %v3082_v19 }
 0x47e   : > { %v2965_v53 = vpop.f32.mrf.mxu0  ;;  %v3618_v8 = vor.u32 %v3617_v4, %v3613_v44  ;;  %v6459_v44 = vld [vmem:[#allocation7 + $0x238] sm:$0xff]  ;;  %v2796_v62 = vadd.f32 %v9274_v29, %v2568_v6 }
 0x47f   : > { %v3203_v33 = vunpack.c.l.b16 %v3131_v25  ;;  %v3007_v32 = vadd.f32 %v2965_v53, %v9271_v27  ;;  %v3893_v2 = vpop.f32.mrf.mxu2  ;;  %4183 = vmatmul.bf16.gmra.mxu3 %v8454_v11  ;;  %v6451_v4 = vld [vmem:[#allocation7 + $0x1f8] sm:$0xff]  ;;  %5259 = vmatpush.bf16.msra.mxu2 %v6459_v44 }
 0x480   : > { %v3756_v30 = vpop.f32.mrf.mxu1  ;;  %v8461_v45 = vsel %vm3443_vm10, %v3618_v8, %v3622_v35  ;;  %5067 = vmatpush.bf16.msra.mxu1 %v6451_v4 }
 0x481   : > { %v3223_v39 = vpack.c.b16 %v3203_v33, %v3202_v42  ;;  %v3894_v24 = vadd.f32 %v3893_v2, %v3756_v30  ;;  %4906 = vmatmul.bf16.gmra.mxu0 %v8256_v12  ;;  %v3047_v31 = vadd.f32 %v8371_v18, %v3007_v32 }
 0x482   : > { %v4144_v19 = vpop.f32.mrf.mxu3 }
 0x483   : > { %v3332_v7 = vshrl.u32 %v3223_v39, 16  ;;  %v8464_v26 = vadd.f32 %v4144_v19, %v3894_v24  ;;  %3795 = vmatmul.bf16.gmra.mxu1 %v8461_v45  ;;  %v3335_v25 = vshll.u32 %v3223_v39, 16  ;;  %v3083_v2 = vmax.f32 %v3047_v31, 0.0 }
 0x485   : > { %9273 = vst [vmem:[#allocation26_spill] sm:$0xff] %v8464_v26  ;;  %v3334_v48 = vrot.slane %v3332_v7, 7  ;;  %v3132_v19 = vpack.c.bf16 %v3083_v2, %v3083_v2 }
 0x486   : > { %v2967_v30 = vpop.f32.mrf.mxu0 }
 0x487   : > { %v3008_v53 = vadd.f32 %v2967_v30, %v2796_v62  ;;  %v3895_v8 = vpop.f32.mrf.mxu2  ;;  %v3337_v42 = vor.u32 %v3335_v25, %v3334_v48  ;;  %v3424_v6 = vsel %vm8054_vm8, %v3334_v48, 0  ;;  %v9276_v25 = vld [vmem:[#allocation67_spill] sm:$0xff]  ;;  %v3204_v2 = vunpack.c.l.b16 %v3132_v19 }
 0x488   : > { %v3758_v33 = vpop.f32.mrf.mxu1  ;;  %v4022_v44 = vrot.slane %v3424_v6, 1  ;;  %v3632_v62 = vshll.u32 %v3424_v6, 16  ;;  %v2364_v30 = vadd.f32 %v8251_v46, %v9276_v25 }
 0x489   : > { %v3048_v27 = vadd.f32 %v8371_v18, %v3008_v53  ;;  %v3896_v32 = vadd.f32 %v3895_v8, %v3758_v33  ;;  %v8471_v35 = vsel %vm8054_vm8, 0, %v3337_v42 }
 0x48a   : > { %v4146_v1 = vpop.f32.mrf.mxu3  ;;  %v4021_v39 = vrot.slane %v8471_v35, 1  ;;  %v3627_v24 = vshll.u32 %v8471_v35, 16  ;;  %v3625_v4 = vshrl.u32 %v8471_v35, 16  ;;  %v3634_v26 = vrot.slane %v3632_v62, 1 }
 0x48b   : > { %v3084_v7 = vmax.f32 %v3048_v27, 0.0  ;;  %v8477_v31 = vadd.f32 %v4146_v1, %v3896_v32  ;;  %v9278_v27 = vld [vmem:[#allocation59_spill] sm:$0xff]  ;;  %v2570_v6 = vadd.f32 %v8249_v5, %v2364_v30 }
 0x48c   : > { %3937 = vmatmul.bf16.gmra.mxu2 %v8471_v35  ;;  %v3629_v29 = vrot.slane %v3627_v24, 1  ;;  %v8484_v8 = vsel %vm3975_vm9, %v4021_v39, %v4022_v44 }
 0x48d   : > { %9275 = vst [vmem:[#allocation14_spill] sm:$0xff] %v8477_v31  ;;  %v3133_v48 = vpack.c.bf16 %v3084_v7, %v3084_v7 }
 0x48e   : > { %v2970_v53 = vpop.f32.mrf.mxu0  ;;  %9277 = vst [vmem:[#allocation69_spill] sm:$0xff] %v8484_v8  ;;  %v3630_v42 = vor.u32 %v3629_v29, %v3625_v4  ;;  %v2798_v4 = vadd.f32 %v8260_v38, %v2570_v6  ;;  %v6458_v38 = vld [vmem:[#allocation7 + $0x230] sm:$0xff] }
 0x48f   : > { %v3205_v33 = vunpack.c.l.b16 %v3133_v48  ;;  %v3009_v32 = vadd.f32 %v2970_v53, %v9278_v27  ;;  %v3898_v1 = vpop.f32.mrf.mxu2  ;;  %4188 = vmatmul.bf16.gmra.mxu3 %v8484_v8  ;;  %5260 = vmatpush.bf16.msra.mxu2 %v6458_v38 }
 0x490   : > { %v3761_v31 = vpop.f32.mrf.mxu1  ;;  %v8494_v19 = vsel %vm3443_vm10, %v3630_v42, %v3634_v26 }
 0x491   : > { %v8489_v24 = vpack.c.b16 %v3205_v33, %v3204_v2  ;;  %v3049_v46 = vadd.f32 %v8371_v18, %v3009_v32  ;;  %v3899_v7 = vadd.f32 %v3898_v1, %v3761_v31  ;;  %4911 = vmatmul.bf16.gmra.mxu0 %v8286_v3  ;;  %9279 = vst [vmem:[#allocation28_spill] sm:$0xff] %v8494_v19 }
 0x492   : > { %v4149_v39 = vpop.f32.mrf.mxu3 }
 0x493   : > { %v8496_v44 = vadd.f32 %v4149_v39, %v3899_v7  ;;  %3800 = vmatmul.bf16.gmra.mxu1 %v8494_v19  ;;  %v3085_v29 = vmax.f32 %v3049_v46, 0.0 }
 0x495   : > { %v3098_v48 = vmul.f32 0.0, %v3085_v29 }
 0x496   : > { %v2972_v62 = vpop.f32.mrf.mxu0 }
 0x497   : > { %v3010_v5 = vadd.f32 %v2972_v62, %v2798_v4  ;;  %v3900_v25 = vpop.f32.mrf.mxu2  ;;  %v3134_v26 = vpack.c.bf16 %v3098_v48, %v3098_v48 }
 0x498   : > { %v3763_v30 = vpop.f32.mrf.mxu1 }
 0x499   : > { %v3050_v31 = vadd.f32 %v8371_v18, %v3010_v5  ;;  %v3901_v53 = vadd.f32 %v3900_v25, %v3763_v30  ;;  %v3206_v46 = vunpack.c.l.b16 %v3134_v26 }
 0x49a   : > { %v4151_v2 = vpop.f32.mrf.mxu3 }
 0x49b   : > { %v3086_v33 = vmax.f32 %v3050_v31, 0.0  ;;  %v8501_v27 = vadd.f32 %v4151_v2, %v3901_v53  ;;  %v9280_v31 = vld [vmem:[#allocation33_spill] sm:$0xff] }
 0x49c   : > { %4498 = vmatmul.bf16.vlgmr.msrb.gmra.mxu2 %v8088_v20  ;;  %v6450_v20 = vld [vmem:[#allocation7 + $0x1f0] sm:$0xff] }
 0x49d   : > { %v3099_v42 = vmul.f32 0.0, %v3086_v33  ;;  %5068 = vmatpush.bf16.msra.mxu1 %v6450_v20 }
 0x49f   : > { %v3135_v32 = vpack.c.bf16 %v3099_v42, %v3099_v42  ;;  %v3903_v1 = vpop.f32.mrf.mxu2  ;;  %4690 = vmatmul.bf16.vlgmr.msra.gmra.mxu3 %v8082_v16 }
 0x4a0   : > { %v3766_v6 = vpop.f32.mrf.mxu1 }
 0x4a1   : > { %v3207_v7 = vunpack.c.l.b16 %v3135_v32  ;;  %v3904_v39 = vadd.f32 %v3903_v1, %v3766_v6  ;;  %4916 = vmatmul.bf16.gmra.mxu0 %v8316_v61  ;;  %v9281_v6 = vld [vmem:[#allocation62_spill] sm:$0xff] }
 0x4a2   : > { %v4154_v18 = vpop.f32.mrf.mxu3 }
 0x4a3   : > { %v8506_v4 = vpack.c.b16 %v3207_v7, %v3206_v46  ;;  %v8508_v29 = vadd.f32 %v4154_v18, %v3904_v39  ;;  %4299 = vmatmul.bf16.vlgmr.msrb.gmra.mxu1 %v8073_v47  ;;  %v9282_v7 = vld [vmem:[#allocation60_spill] sm:$0xff]  ;;  %v6457_v39 = vld [vmem:[#allocation7 + $0x228] sm:$0xff] }
 0x4a4   : > { %5261 = vmatpush.bf16.msra.mxu2 %v6457_v39 }
 0x4a7   : > { %v3905_v62 = vpop.f32.mrf.mxu2 }
 0x4a8   : > { %v3768_v5 = vpop.f32.mrf.mxu1 }
 0x4a9   : > { %v3906_v16 = vadd.f32 %v3905_v62, %v3768_v5 }
 0x4aa   : > { %v4156_v25 = vpop.f32.mrf.mxu3 }
 0x4ab   : > { %v8511_v30 = vadd.f32 %v4156_v25, %v3906_v16 }
 0x4ac   : > { %4503 = vmatmul.bf16.gmra.mxu2 %v8111_v51 }
 0x4af   : > { %v3908_v48 = vpop.f32.mrf.mxu2  ;;  %4695 = vmatmul.bf16.gmra.mxu3 %v9280_v31 }
 0x4b0   : > { %v3771_v53 = vpop.f32.mrf.mxu1 }
 0x4b1   : > { %v3909_v2 = vadd.f32 %v3908_v48, %v3771_v53  ;;  %4921 = vmatmul.bf16.gmra.mxu0 %v8346_v63 }
 0x4b2   : > { %v4159_v33 = vpop.f32.mrf.mxu3 }
 0x4b3   : > { %v8516_v26 = vadd.f32 %v4159_v33, %v3909_v2  ;;  %4304 = vmatmul.bf16.gmra.mxu1 %v8096_v43  ;;  %v6449_v43 = vld [vmem:[#allocation7 + $0x1e8] sm:$0xff]  ;;  %v8527_v2 = vpop.f32.mrf.mxu0 }
 0x4b4   : > { %5069 = vmatpush.bf16.msra.mxu1 %v6449_v43  ;;  %9283 = vst [vmem:[#allocation15_spill] sm:$0xff] %v8527_v2 }
 0x4b7   : > { %v3910_v47 = vpop.f32.mrf.mxu2 }
 0x4b8   : > { %v3773_v42 = vpop.f32.mrf.mxu1 }
 0x4b9   : > { %v3911_v32 = vadd.f32 %v3910_v47, %v3773_v42 }
 0x4ba   : > { %v4161_v1 = vpop.f32.mrf.mxu3 }
 0x4bb   : > { %v8519_v38 = vadd.f32 %v4161_v1, %v3911_v32 }
 0x4bc   : > { %4508 = vmatmul.bf16.gmra.mxu2 %v9281_v6 }
 0x4bf   : > { %v3913_v46 = vpop.f32.mrf.mxu2  ;;  %4700 = vmatmul.bf16.gmra.mxu3 %v9282_v7 }
 0x4c0   : > { %v3776_v18 = vpop.f32.mrf.mxu1 }
 0x4c1   : > { %v3914_v20 = vadd.f32 %v3913_v46, %v3776_v18  ;;  %4926 = vmatmul.bf16.gmra.mxu0 %v8381_v14  ;;  %v8537_v46 = vpop.f32.mrf.mxu0 }
 0x4c2   : > { %v4164_v62 = vpop.f32.mrf.mxu3  ;;  %9284 = vst [vmem:[#allocation16_spill] sm:$0xff] %v8537_v46 }
 0x4c3   : > { %v8524_v5 = vadd.f32 %v4164_v62, %v3914_v20  ;;  %4309 = vmatmul.bf16.gmra.mxu1 %v8119_v15 }
 0x4c7   : > { %v3915_v16 = vpop.f32.mrf.mxu2 }
 0x4c8   : > { %v3778_v25 = vpop.f32.mrf.mxu1 }
 0x4c9   : > { %v3916_v48 = vadd.f32 %v3915_v16, %v3778_v25  ;;  %v9285_v16 = vld [vmem:[#allocation39_spill] sm:$0xff]  ;;  %v8542_v25 = vpop.f32.mrf.mxu0 }
 0x4ca   : > { %v4166_v53 = vpop.f32.mrf.mxu3  ;;  %9286 = vst [vmem:[#allocation29_spill] sm:$0xff] %v8542_v25 }
 0x4cb   : > { %v8529_v33 = vadd.f32 %v4166_v53, %v3916_v48  ;;  %v9287_v53 = vld [vmem:[#allocation71_spill] sm:$0xff] }
 0x4cc   : > { %4513 = vmatmul.bf16.gmra.mxu2 %v8160_v60 }
 0x4cf   : > { %v3918_v47 = vpop.f32.mrf.mxu2  ;;  %4705 = vmatmul.bf16.gmra.mxu3 %v8153_v22 }
 0x4d0   : > { %v3781_v42 = vpop.f32.mrf.mxu1 }
 0x4d1   : > { %v3919_v32 = vadd.f32 %v3918_v47, %v3781_v42  ;;  %4931 = vmatmul.bf16.gmra.mxu0 %v8411_v58  ;;  %v6456_v47 = vld [vmem:[#allocation7 + $0x220] sm:$0xff] }
 0x4d2   : > { %v4169_v15 = vpop.f32.mrf.mxu3  ;;  %5262 = vmatpush.bf16.msra.mxu2 %v6456_v47 }
 0x4d3   : > { %v8534_v1 = vadd.f32 %v4169_v15, %v3919_v32  ;;  %4314 = vmatmul.bf16.gmra.mxu1 %v8142_v41 }
 0x4d7   : > { %v3920_v39 = vpop.f32.mrf.mxu2 }
 0x4d8   : > { %v3783_v18 = vpop.f32.mrf.mxu1 }
 0x4d9   : > { %v3921_v20 = vadd.f32 %v3920_v39, %v3783_v18  ;;  %v6448_v39 = vld [vmem:[#allocation7 + $0x1e0] sm:$0xff] }
 0x4da   : > { %v4171_v62 = vpop.f32.mrf.mxu3  ;;  %5070 = vmatpush.bf16.msra.mxu1 %v6448_v39  ;;  %v3339_v39 = vshrl.u32 %v8489_v24, 16 }
 0x4db   : > { %v8539_v43 = vadd.f32 %v4171_v62, %v3921_v20  ;;  %v8549_v62 = vpop.f32.mrf.mxu0 }
 0x4dc   : > { %4518 = vmatmul.bf16.gmra.mxu2 %v9285_v16  ;;  %9288 = vst [vmem:[#allocation17_spill] sm:$0xff] %v8549_v62  ;;  %v3342_v62 = vshll.u32 %v8489_v24, 16 }
 0x4df   : > { %v3923_v48 = vpop.f32.mrf.mxu2  ;;  %4710 = vmatmul.bf16.gmra.mxu3 %v9287_v53 }
 0x4e0   : > { %v3786_v42 = vpop.f32.mrf.mxu1 }
 0x4e1   : > { %v3924_v32 = vadd.f32 %v3923_v48, %v3786_v42  ;;  %4936 = vmatmul.bf16.gmra.mxu0 %v8441_v9 }
 0x4e2   : > { %v4174_v41 = vpop.f32.mrf.mxu3 }
 0x4e3   : > { %v8546_v15 = vadd.f32 %v4174_v41, %v3924_v32  ;;  %4319 = vmatmul.bf16.gmra.mxu1 %v8168_v50  ;;  %v8556_v32 = vpop.f32.mrf.mxu0 }
 0x4e4   : > { %9290 = vst [vmem:[#allocation19_spill] sm:$0xff] %v8556_v32 }
 0x4e7   : > { %v3925_v18 = vpop.f32.mrf.mxu2 }
 0x4e8   : > { %v3788_v20 = vpop.f32.mrf.mxu1 }
 0x4e9   : > { %v3926_v25 = vadd.f32 %v3925_v18, %v3788_v20  ;;  %v8562_v18 = vrot.slane %v3339_v39, 7 }
 0x4ea   : > { %v4176_v46 = vpop.f32.mrf.mxu3 }
 0x4eb   : > { %v8551_v2 = vadd.f32 %v4176_v46, %v3926_v25 }
 0x4ec   : > { %4523 = vmatmul.bf16.gmra.mxu2 %v8214_v54 }
 0x4ed   : > { %9289 = vst [vmem:[#allocation30_spill] sm:$0xff] %v8551_v2 }
 0x4ef   : > { %v3928_v48 = vpop.f32.mrf.mxu2  ;;  %4715 = vmatmul.bf16.gmra.mxu3 %v8205_v56 }
 0x4f0   : > { %v3791_v47 = vpop.f32.mrf.mxu1 }
 0x4f1   : > { %v3929_v42 = vadd.f32 %v3928_v48, %v3791_v47  ;;  %4941 = vmatmul.bf16.gmra.mxu0 %v8471_v35  ;;  %v3344_v47 = vor.u32 %v3342_v62, %v8562_v18  ;;  %v3346_v62 = vshrl.u32 %v8506_v4, 16 }
 0x4f2   : > { %v4179_v50 = vpop.f32.mrf.mxu3 }
 0x4f3   : > { %v8558_v41 = vadd.f32 %v4179_v50, %v3929_v42  ;;  %4324 = vmatmul.bf16.gmra.mxu1 %v8194_v37  ;;  %v8569_v42 = vpop.f32.mrf.mxu0  ;;  %v6455_v37 = vld [vmem:[#allocation7 + $0x218] sm:$0xff]  ;;  %v8574_v39 = vsel %vm8054_vm8, 0, %v3344_v47 }
 0x4f4   : > { %9292 = vst [vmem:[#allocation25_spill] sm:$0xff] %v8569_v42  ;;  %5263 = vmatpush.bf16.msra.mxu2 %v6455_v37 }
 0x4f7   : > { %v3930_v46 = vpop.f32.mrf.mxu2 }
 0x4f8   : > { %v3793_v25 = vpop.f32.mrf.mxu1 }
 0x4f9   : > { %v3931_v20 = vadd.f32 %v3930_v46, %v3793_v25  ;;  %v6447_v25 = vld [vmem:[#allocation7 + $0x1d8] sm:$0xff] }
 0x4fa   : > { %v4181_v2 = vpop.f32.mrf.mxu3  ;;  %5071 = vmatpush.bf16.msra.mxu1 %v6447_v25 }
 0x4fb   : > { %v8565_v48 = vadd.f32 %v4181_v2, %v3931_v20  ;;  %v8581_v20 = vpop.f32.mrf.mxu0 }
 0x4fc   : > { %4528 = vmatmul.bf16.gmra.mxu2 %v8244_v34  ;;  %9293 = vst [vmem:[#allocation35_spill] sm:$0xff] %v8581_v20  ;;  %v8583_v34 = vrot.slane %v3346_v62, 7 }
 0x4fd   : > { %9291 = vst [vmem:[#allocation23_spill] sm:$0xff] %v8565_v48 }
 0x4fe   : > { %9294 = vst [vmem:[#allocation77_spill] sm:$0xff] %v8583_v34 }
 0x4ff   : > { %v3933_v50 = vpop.f32.mrf.mxu2  ;;  %4720 = vmatmul.bf16.gmra.mxu3 %v8238_v0 }
 0x500   : > { %v3796_v32 = vpop.f32.mrf.mxu1 }
 0x501   : > { %v3934_v46 = vadd.f32 %v3933_v50, %v3796_v32  ;;  %4946 = vmatmul.bf16.gmra.mxu0 %v8574_v39  ;;  %v3349_v50 = vshll.u32 %v8506_v4, 16 }
 0x502   : > { %v4184_v24 = vpop.f32.mrf.mxu3 }
 0x503   : > { %v8577_v2 = vadd.f32 %v4184_v24, %v3934_v46  ;;  %4329 = vmatmul.bf16.gmra.mxu1 %v8227_v36  ;;  %v3351_v36 = vor.u32 %v3349_v50, %v8583_v34  ;;  %v8595_v62 = vpop.f32.mrf.mxu0 }
 0x504   : > { %9296 = vst [vmem:[#allocation32_spill] sm:$0xff] %v8595_v62  ;;  %v6454_v62 = vld [vmem:[#allocation7 + $0x210] sm:$0xff] }
 0x505   : > { %v8593_v25 = vsel %vm8054_vm8, 0, %v3351_v36  ;;  %5264 = vmatpush.bf16.msra.mxu2 %v6454_v62 }
 0x506   : > { %9295 = vst [vmem:[#allocation18_spill] sm:$0xff] %v8593_v25 }
 0x507   : > { %v3935_v42 = vpop.f32.mrf.mxu2 }
 0x508   : > { %v3798_v48 = vpop.f32.mrf.mxu1 }
 0x509   : > { %v3936_v47 = vadd.f32 %v3935_v42, %v3798_v48 }
 0x50a   : > { %v4186_v32 = vpop.f32.mrf.mxu3 }
 0x50b   : > { %v8586_v37 = vadd.f32 %v4186_v32, %v3936_v47 }
 0x50c   : > { %4533 = vmatmul.bf16.gmra.mxu2 %v8276_v13 }
 0x50f   : > { %v3938_v46 = vpop.f32.mrf.mxu2  ;;  %4725 = vmatmul.bf16.gmra.mxu3 %v8269_v21 }
 0x510   : > { %v3801_v24 = vpop.f32.mrf.mxu1 }
 0x511   : > { %v3939_v48 = vadd.f32 %v3938_v46, %v3801_v24  ;;  %4951 = vmatmul.bf16.gmra.mxu0 %v8593_v25 }
 0x512   : > { %v4189_v4 = vpop.f32.mrf.mxu3 }
 0x513   : > { %v8598_v42 = vadd.f32 %v4189_v4, %v3939_v48  ;;  %4334 = vmatmul.bf16.gmra.mxu1 %v8256_v12 }
 0x517   : > { %v3940_v47 = vpop.f32.mrf.mxu2 }
 0x518   : > { %v3803_v32 = vpop.f32.mrf.mxu1 }
 0x519   : > { %v3941_v50 = vadd.f32 %v3940_v47, %v3803_v32  ;;  %v6446_v47 = vld [vmem:[#allocation7 + $0x1d0] sm:$0xff] }
 0x51a   : > { %v4191_v34 = vpop.f32.mrf.mxu3  ;;  %5072 = vmatpush.bf16.msra.mxu1 %v6446_v47 }
 0x51b   : > { %v8601_v20 = vadd.f32 %v4191_v34, %v3941_v50 }
 0x51c   : > { %4538 = vmatmul.bf16.gmra.mxu2 %v8306_v28 }
 0x51d   : > { %9297 = vst [vmem:[#allocation43_spill] sm:$0xff] %v8601_v20 }
 0x51f   : > { %v4499_v36 = vpop.f32.mrf.mxu2  ;;  %4730 = vmatmul.bf16.gmra.mxu3 %v8299_v40 }
 0x520   : > { %v4300_v46 = vpop.f32.mrf.mxu1 }
 0x521   : > { %v4380_v24 = vadd.f32 %v4300_v46, %v8279_v23 }
 0x522   : > { %v4691_v48 = vpop.f32.mrf.mxu3 }
 0x523   : > { %v4579_v4 = vadd.f32 %v4499_v36, %v4380_v24  ;;  %4339 = vmatmul.bf16.gmra.mxu1 %v8286_v3 }
 0x525   : > { %v8607_v12 = vadd.f32 %v4691_v48, %v4579_v4 }
 0x527   : > { %v4501_v32 = vpop.f32.mrf.mxu2 }
 0x528   : > { %v4302_v34 = vpop.f32.mrf.mxu1 }
 0x529   : > { %v4381_v50 = vadd.f32 %v4302_v34, %v8292_v17  ;;  %v9299_v34 = vld [vmem:[#allocation45_spill] sm:$0xff] }
 0x52a   : > { %v4693_v25 = vpop.f32.mrf.mxu3 }
 0x52b   : > { %v4580_v20 = vadd.f32 %v4501_v32, %v4381_v50 }
 0x52c   : > { %4543 = vmatmul.bf16.gmra.mxu2 %v8336_v55 }
 0x52d   : > { %v8611_v28 = vadd.f32 %v4693_v25, %v4580_v20 }
 0x52f   : > { %v4504_v23 = vpop.f32.mrf.mxu2  ;;  %4735 = vmatmul.bf16.gmra.mxu3 %v8329_v59 }
 0x530   : > { %v4305_v62 = vpop.f32.mrf.mxu1 }
 0x531   : > { %v4382_v3 = vadd.f32 %v4305_v62, %v8309_v57  ;;  %v6453_v57 = vld [vmem:[#allocation7 + $0x208] sm:$0xff] }
 0x532   : > { %v4696_v36 = vpop.f32.mrf.mxu3  ;;  %5265 = vmatpush.bf16.msra.mxu2 %v6453_v57  ;;  %v9305_v57 = vld [vmem:[#allocation51_spill] sm:$0xff] }
 0x533   : > { %v4581_v46 = vadd.f32 %v4504_v23, %v4382_v3  ;;  %4344 = vmatmul.bf16.gmra.mxu1 %v8316_v61  ;;  %v9300_v23 = vld [vmem:[#allocation65_spill] sm:$0xff] }
 0x535   : > { %v8616_v24 = vadd.f32 %v4696_v36, %v4581_v46 }
 0x537   : > { %v4506_v48 = vpop.f32.mrf.mxu2 }
 0x538   : > { %v4307_v17 = vpop.f32.mrf.mxu1 }
 0x539   : > { %v4383_v4 = vadd.f32 %v4307_v17, %v8322_v49  ;;  %v6445_v49 = vld [vmem:[#allocation7 + $0x1c8] sm:$0xff]  ;;  %v9302_v17 = vld [vmem:[#allocation75_spill] sm:$0xff] }
 0x53a   : > { %v4698_v47 = vpop.f32.mrf.mxu3  ;;  %5073 = vmatpush.bf16.msra.mxu1 %v6445_v49 }
 0x53b   : > { %v4582_v32 = vadd.f32 %v4506_v48, %v4383_v4 }
 0x53c   : > { %4548 = vmatmul.bf16.gmra.mxu2 %v8366_v10 }
 0x53d   : > { %v8620_v20 = vadd.f32 %v4698_v47, %v4582_v32 }
 0x53f   : > { %9298 = vst [vmem:[#allocation73_spill] sm:$0xff] %v8620_v20  ;;  %v4509_v25 = vpop.f32.mrf.mxu2  ;;  %4740 = vmatmul.bf16.gmra.mxu3 %v9299_v34  ;;  %v9303_v20 = vld [vmem:[#allocation70_spill] sm:$0xff] }
 0x540   : > { %v4310_v50 = vpop.f32.mrf.mxu1 }
 0x541   : > { %v4384_v62 = vadd.f32 %v4310_v50, %v9300_v23  ;;  %v9306_v23 = vld [vmem:[#allocation37_spill] sm:$0xff] }
 0x542   : > { %v4701_v61 = vpop.f32.mrf.mxu3 }
 0x543   : > { %v4583_v3 = vadd.f32 %v4509_v25, %v4384_v62  ;;  %4349 = vmatmul.bf16.gmra.mxu1 %v8346_v63 }
 0x545   : > { %v8625_v36 = vadd.f32 %v4701_v61, %v4583_v3 }
 0x547   : > { %9301 = vst [vmem:[#allocation34_spill] sm:$0xff] %v8625_v36  ;;  %v4511_v46 = vpop.f32.mrf.mxu2  ;;  %v9309_v36 = vld [vmem:[#allocation74_spill] sm:$0xff] }
 0x548   : > { %v4312_v48 = vpop.f32.mrf.mxu1 }
 0x549   : > { %v4385_v4 = vadd.f32 %v4312_v48, %v9302_v17  ;;  %v9307_v17 = vld [vmem:[#allocation68_spill] sm:$0xff] }
 0x54a   : > { %v4703_v47 = vpop.f32.mrf.mxu3 }
 0x54b   : > { %v4584_v32 = vadd.f32 %v4511_v46, %v4385_v4 }
 0x54c   : > { %4553 = vmatmul.bf16.gmra.mxu2 %v9303_v20 }
 0x54d   : > { %v8629_v10 = vadd.f32 %v4703_v47, %v4584_v32  ;;  %v9308_v47 = vld [vmem:[#allocation76_spill] sm:$0xff] }
 0x54f   : > { %9304 = vst [vmem:[#allocation49_spill] sm:$0xff] %v8629_v10  ;;  %v4514_v50 = vpop.f32.mrf.mxu2  ;;  %4745 = vmatmul.bf16.gmra.mxu3 %v9305_v57 }
 0x550   : > { %v4315_v25 = vpop.f32.mrf.mxu1 }
 0x551   : > { %v4386_v63 = vadd.f32 %v4315_v25, %v9306_v23  ;;  %v6452_v25 = vld [vmem:[#allocation7 + $0x200] sm:$0xff] }
 0x552   : > { %v4706_v62 = vpop.f32.mrf.mxu3  ;;  %5266 = vmatpush.bf16.msra.mxu2 %v6452_v25 }
 0x553   : > { %v4585_v61 = vadd.f32 %v4514_v50, %v4386_v63  ;;  %4354 = vmatmul.bf16.gmra.mxu1 %v8381_v14  ;;  %v9310_v50 = vld [vmem:[#allocation72_spill] sm:$0xff] }
 0x555   : > { %v8634_v3 = vadd.f32 %v4706_v62, %v4585_v61  ;;  %v6444_v62 = vld [vmem:[#allocation7 + $0x1c0] sm:$0xff] }
 0x556   : > { %5074 = vmatpush.bf16.msra.mxu1 %v6444_v62 }
 0x557   : > { %v4516_v49 = vpop.f32.mrf.mxu2 }
 0x558   : > { %v4317_v48 = vpop.f32.mrf.mxu1 }
 0x559   : > { %v4387_v46 = vadd.f32 %v4317_v48, %v9307_v17  ;;  %v9312_v48 = vld [vmem:[#allocation54_spill] sm:$0xff] }
 0x55a   : > { %v4708_v20 = vpop.f32.mrf.mxu3 }
 0x55b   : > { %v4586_v4 = vadd.f32 %v4516_v49, %v4387_v46 }
 0x55c   : > { %4558 = vmatmul.bf16.gmra.mxu2 %v9308_v47 }
 0x55d   : > { %v8638_v32 = vadd.f32 %v4708_v20, %v4586_v4 }
 0x55f   : > { %v4519_v10 = vpop.f32.mrf.mxu2  ;;  %4750 = vmatmul.bf16.gmra.mxu3 %v9309_v36 }
 0x560   : > { %v4320_v23 = vpop.f32.mrf.mxu1 }
 0x561   : > { %v4388_v63 = vadd.f32 %v4320_v23, %v9310_v50  ;;  %v9313_v23 = vld [vmem:[#allocation57_spill] sm:$0xff] }
 0x563   : > { %v8642_v14 = vadd.f32 %v4519_v10, %v4388_v63  ;;  %4359 = vmatmul.bf16.gmra.mxu1 %v8411_v58  ;;  %v9314_v63 = vld [vmem:[#allocation12_spill] sm:$0xff] }
 0x565   : > { %9311 = vst [vmem:[#allocation46_spill] sm:$0xff] %v8642_v14 }
 0x567   : > { %v4521_v61 = vpop.f32.mrf.mxu2 }
 0x568   : > { %v4322_v49 = vpop.f32.mrf.mxu1 }
 0x569   : > { %v4389_v17 = vadd.f32 %v4322_v49, %v9312_v48  ;;  %v4415_v49 = vshll.u32 %v8574_v39, 16 }
 0x56b   : > { %v8646_v20 = vadd.f32 %v4521_v61, %v4389_v17  ;;  %v9316_v17 = vld [vmem:[#allocation26_spill] sm:$0xff] }
 0x56c   : > { %4563 = vmatmul.bf16.gmra.mxu2 %v8461_v45 }
 0x56f   : > { %v4524_v46 = vpop.f32.mrf.mxu2  ;;  %4755 = vmatmul.bf16.gmra.mxu3 %v8454_v11 }
 0x570   : > { %v4325_v4 = vpop.f32.mrf.mxu1 }
 0x571   : > { %v4390_v25 = vadd.f32 %v4325_v4, %v9313_v23  ;;  %v4417_v23 = vrot.slane %v4415_v49, 1 }
 0x573   : > { %v8651_v10 = vadd.f32 %v4524_v46, %v4390_v25  ;;  %4364 = vmatmul.bf16.gmra.mxu1 %v8441_v9  ;;  %v3425_v9 = vsel %vm8054_vm8, %v8562_v18, 0  ;;  %v4413_v25 = vshrl.u32 %v8574_v39, 16 }
 0x577   : > { %v4526_v58 = vpop.f32.mrf.mxu2 }
 0x578   : > { %v4327_v50 = vpop.f32.mrf.mxu1 }
 0x579   : > { %v4391_v62 = vadd.f32 %v4327_v50, %v9314_v63  ;;  %v4418_v63 = vor.u32 %v4417_v23, %v4413_v25 }
 0x57b   : > { %v8655_v14 = vadd.f32 %v4526_v58, %v4391_v62  ;;  %v4420_v58 = vshll.u32 %v3425_v9, 16 }
 0x57c   : > { %4568 = vmatmul.bf16.gmra.mxu2 %v8494_v19  ;;  %v9317_v19 = vld [vmem:[#allocation14_spill] sm:$0xff] }
 0x57d   : > { %9315 = vst [vmem:[#allocation36_spill] sm:$0xff] %v8655_v14 }
 0x57f   : > { %v4529_v61 = vpop.f32.mrf.mxu2  ;;  %4760 = vmatmul.bf16.gmra.mxu3 %v8484_v8  ;;  %v4422_v8 = vrot.slane %v4420_v58, 1 }
 0x580   : > { %v4330_v48 = vpop.f32.mrf.mxu1 }
 0x581   : > { %v4392_v4 = vadd.f32 %v4330_v48, %v9316_v17  ;;  %v4613_v48 = vrot.slane %v8574_v39, 1  ;;  %v8673_v18 = vsel %vm3443_vm10, %v4418_v63, %v4422_v8 }
 0x583   : > { %v8664_v46 = vadd.f32 %v4529_v61, %v4392_v4  ;;  %4369 = vmatmul.bf16.gmra.mxu1 %v8471_v35  ;;  %v4614_v35 = vrot.slane %v3425_v9, 1 }
 0x585   : > { %v8677_v61 = vsel %vm3975_vm9, %v4613_v48, %v4614_v35 }
 0x587   : > { %v4531_v50 = vpop.f32.mrf.mxu2 }
 0x588   : > { %v4332_v62 = vpop.f32.mrf.mxu1 }
 0x589   : > { %v4393_v14 = vadd.f32 %v4332_v62, %v9317_v19 }
 0x58b   : > { %v8670_v17 = vadd.f32 %v4531_v50, %v4393_v14 }
 0x58c   : > { %4573 = vmatmul.bf16.gmra.mxu2 %v8673_v18 }
 0x58f   : > { %v4534_v49 = vpop.f32.mrf.mxu2  ;;  %4765 = vmatmul.bf16.gmra.mxu3 %v8677_v61 }
 0x590   : > { %v4335_v4 = vpop.f32.mrf.mxu1 }
 0x591   : > { %v4394_v19 = vadd.f32 %v4335_v4, %v8496_v44 }
 0x593   : > { %v8681_v23 = vadd.f32 %v4534_v49, %v4394_v19  ;;  %4374 = vmatmul.bf16.gmra.mxu1 %v8574_v39 }
 0x597   : > { %v4536_v14 = vpop.f32.mrf.mxu2 }
 0x598   : > { %v4337_v25 = vpop.f32.mrf.mxu1 }
 0x599   : > { %v4395_v8 = vadd.f32 %v4337_v25, %v8501_v27 }
 0x59b   : > { %v8685_v58 = vadd.f32 %v4536_v14, %v4395_v8 }
 0x59c   : > { %5267 = vmatmul.bf16.vlgmr.msra.gmra.mxu2 %v9280_v31 }
 0x59f   : > { %v4539_v9 = vpop.f32.mrf.mxu2 }
 0x5a0   : > { %v4340_v50 = vpop.f32.mrf.mxu1 }
 0x5a1   : > { %v4396_v63 = vadd.f32 %v4340_v50, %v8508_v29 }
 0x5a3   : > { %v8689_v62 = vadd.f32 %v4539_v9, %v4396_v63  ;;  %5075 = vmatmul.bf16.vlgmr.msra.gmra.mxu1 %v8111_v51 }
 0x5a7   : > { %v4541_v44 = vpop.f32.mrf.mxu2 }
 0x5a8   : > { %v4342_v48 = vpop.f32.mrf.mxu1 }
 0x5a9   : > { %v4397_v39 = vadd.f32 %v4342_v48, %v8511_v30 }
 0x5ab   : > { %v8693_v35 = vadd.f32 %v4541_v44, %v4397_v39 }
 0x5ac   : > { %5272 = vmatmul.bf16.gmra.mxu2 %v9282_v7 }
 0x5af   : > { %v4544_v27 = vpop.f32.mrf.mxu2 }
 0x5b0   : > { %v4345_v49 = vpop.f32.mrf.mxu1 }
 0x5b1   : > { %v4398_v31 = vadd.f32 %v4345_v49, %v8516_v26 }
 0x5b3   : > { %v8697_v4 = vadd.f32 %v4544_v27, %v4398_v31  ;;  %5080 = vmatmul.bf16.gmra.mxu1 %v9281_v6 }
 0x5b7   : > { %v4546_v29 = vpop.f32.mrf.mxu2 }
 0x5b8   : > { %v4347_v19 = vpop.f32.mrf.mxu1 }
 0x5b9   : > { %v4399_v51 = vadd.f32 %v4347_v19, %v8519_v38 }
 0x5bb   : > { %v8701_v14 = vadd.f32 %v4546_v29, %v4399_v51  ;;  %v9318_v29 = vld [vmem:[#allocation30_spill] sm:$0xff] }
 0x5bc   : > { %5277 = vmatmul.bf16.gmra.mxu2 %v8153_v22 }
 0x5bf   : > { %v4549_v30 = vpop.f32.mrf.mxu2 }
 0x5c0   : > { %v4350_v25 = vpop.f32.mrf.mxu1 }
 0x5c1   : > { %v4400_v7 = vadd.f32 %v4350_v25, %v8524_v5  ;;  %v9319_v25 = vld [vmem:[#allocation63_spill] sm:$0xff] }
 0x5c3   : > { %v8705_v8 = vadd.f32 %v4549_v30, %v4400_v7  ;;  %5085 = vmatmul.bf16.gmra.mxu1 %v8160_v60 }
 0x5c7   : > { %v4551_v26 = vpop.f32.mrf.mxu2 }
 0x5c8   : > { %v4352_v9 = vpop.f32.mrf.mxu1 }
 0x5c9   : > { %v4401_v6 = vadd.f32 %v4352_v9, %v8529_v33 }
 0x5cb   : > { %v8709_v50 = vadd.f32 %v4551_v26, %v4401_v6  ;;  %v9320_v26 = vld [vmem:[#allocation23_spill] sm:$0xff] }
 0x5cc   : > { %5282 = vmatmul.bf16.gmra.mxu2 %v9287_v53 }
 0x5cf   : > { %v4554_v38 = vpop.f32.mrf.mxu2 }
 0x5d0   : > { %v4355_v63 = vpop.f32.mrf.mxu1 }
 0x5d1   : > { %v4402_v22 = vadd.f32 %v4355_v63, %v8534_v1 }
 0x5d3   : > { %v8713_v44 = vadd.f32 %v4554_v38, %v4402_v22  ;;  %5090 = vmatmul.bf16.gmra.mxu1 %v9285_v16 }
 0x5d7   : > { %v4556_v5 = vpop.f32.mrf.mxu2 }
 0x5d8   : > { %v4357_v48 = vpop.f32.mrf.mxu1 }
 0x5d9   : > { %v4403_v60 = vadd.f32 %v4357_v48, %v8539_v43 }
 0x5db   : > { %v8717_v39 = vadd.f32 %v4556_v5, %v4403_v60 }
 0x5dc   : > { %5287 = vmatmul.bf16.gmra.mxu2 %v8205_v56 }
 0x5df   : > { %v4559_v33 = vpop.f32.mrf.mxu2 }
 0x5e0   : > { %v4360_v27 = vpop.f32.mrf.mxu1 }
 0x5e1   : > { %v4404_v53 = vadd.f32 %v4360_v27, %v8546_v15 }
 0x5e3   : > { %v8721_v49 = vadd.f32 %v4559_v33, %v4404_v53  ;;  %5095 = vmatmul.bf16.gmra.mxu1 %v8214_v54 }
 0x5e7   : > { %v4561_v1 = vpop.f32.mrf.mxu2 }
 0x5e8   : > { %v4362_v31 = vpop.f32.mrf.mxu1 }
 0x5e9   : > { %v4405_v16 = vadd.f32 %v4362_v31, %v9318_v29 }
 0x5eb   : > { %v8725_v19 = vadd.f32 %v4561_v1, %v4405_v16 }
 0x5ec   : > { %5292 = vmatmul.bf16.gmra.mxu2 %v8238_v0 }
 0x5ef   : > { %v4564_v43 = vpop.f32.mrf.mxu2 }
 0x5f0   : > { %v4365_v51 = vpop.f32.mrf.mxu1 }
 0x5f1   : > { %v4406_v56 = vadd.f32 %v4365_v51, %v8558_v41 }
 0x5f3   : > { %v8729_v30 = vadd.f32 %v4564_v43, %v4406_v56  ;;  %5100 = vmatmul.bf16.gmra.mxu1 %v9319_v25 }
 0x5f7   : > { %v4566_v15 = vpop.f32.mrf.mxu2 }
 0x5f8   : > { %v4367_v7 = vpop.f32.mrf.mxu1 }
 0x5f9   : > { %v4407_v54 = vadd.f32 %v4367_v7, %v9320_v26 }
 0x5fb   : > { %v8733_v9 = vadd.f32 %v4566_v15, %v4407_v54 }
 0x5fc   : > { %5297 = vmatmul.bf16.gmra.mxu2 %v8269_v21 }
 0x5ff   : > { %v4569_v6 = vpop.f32.mrf.mxu2 }
 0x600   : > { %v4370_v38 = vpop.f32.mrf.mxu1 }
 0x601   : > { %v4408_v0 = vadd.f32 %v4370_v38, %v8577_v2  ;;  %v9321_v2 = vld [vmem:[#allocation31_spill] sm:$0xff]  ;;  %v8767_v38 = vpop.f32.mrf.mxu3 }
 0x603   : > { %v8737_v63 = vadd.f32 %v4569_v6, %v4408_v0  ;;  %5105 = vmatmul.bf16.gmra.mxu1 %v8276_v13  ;;  %v9322_v13 = vld [vmem:[#allocation43_spill] sm:$0xff] }
 0x607   : > { %v4571_v41 = vpop.f32.mrf.mxu2 }
 0x608   : > { %v4372_v22 = vpop.f32.mrf.mxu1 }
 0x609   : > { %v4409_v5 = vadd.f32 %v4372_v22, %v8586_v37  ;;  %v9325_v22 = vld [vmem:[#allocation29_spill] sm:$0xff] }
 0x60b   : > { %v8741_v48 = vadd.f32 %v4571_v41, %v4409_v5  ;;  %v8773_v5 = vpop.f32.mrf.mxu0 }
 0x60c   : > { %5302 = vmatmul.bf16.gmra.mxu2 %v8299_v40  ;;  %v9323_v40 = vld [vmem:[#allocation15_spill] sm:$0xff] }
 0x60d   : > { %v4957_v16 = vadd.f32 %v9323_v40, %v8607_v12 }
 0x60f   : > { %v4574_v60 = vpop.f32.mrf.mxu2 }
 0x610   : > { %v4375_v33 = vpop.f32.mrf.mxu1 }
 0x611   : > { %v4410_v21 = vadd.f32 %v4375_v33, %v8598_v42  ;;  %v8757_v42 = vld [vmem:[%s8934_s4] ss:$0 sm:$0xff] }
 0x613   : > { %v8745_v27 = vadd.f32 %v4574_v60, %v4410_v21  ;;  %5110 = vmatmul.bf16.gmra.mxu1 %v9321_v2  ;;  %v9326_v2 = vld [vmem:[#allocation66_spill] sm:$0xff] }
 0x617   : > { %v4576_v53 = vpop.f32.mrf.mxu2 }
 0x618   : > { %v4377_v1 = vpop.f32.mrf.mxu1 }
 0x619   : > { %v4411_v31 = vadd.f32 %v4377_v1, %v9322_v13  ;;  %v4713_v1 = vpop.f32.mrf.mxu3 }
 0x61b   : > { %v8749_v29 = vadd.f32 %v4576_v53, %v4411_v31  ;;  %v9327_v31 = vld [vmem:[#allocation73_spill] sm:$0xff] }
 0x61c   : > { %5307 = vmatmul.bf16.gmra.mxu2 %v8329_v59  ;;  %v9324_v59 = vld [vmem:[#allocation16_spill] sm:$0xff] }
 0x61d   : > { %v4958_v26 = vadd.f32 %v9324_v59, %v8611_v28  ;;  %v4959_v28 = vadd.f32 %v9325_v22, %v8616_v24  ;;  %v9330_v59 = vld [vmem:[#allocation19_spill] sm:$0xff] }
 0x61f   : > { %v5268_v37 = vpop.f32.mrf.mxu2 }
 0x620   : > { %v5076_v43 = vpop.f32.mrf.mxu1 }
 0x621   : > { %v5156_v51 = vadd.f32 %v5076_v43, %v4957_v16  ;;  %v4899_v43 = vpop.f32.mrf.mxu0 }
 0x623   : > { %v5348_v56 = vadd.f32 %v5268_v37, %v5156_v51  ;;  %5115 = vmatmul.bf16.gmra.mxu1 %v8336_v55  ;;  %v9328_v37 = vld [vmem:[#allocation17_spill] sm:$0xff] }
 0x624   : > { %v4960_v40 = vadd.f32 %v9328_v37, %v9327_v31 }
 0x625   : > { %v5384_v25 = vadd.f32 %v8757_v42, %v5348_v56 }
 0x627   : > { %v5416_v15 = vmax.f32 %v5384_v25, 0.0  ;;  %v5270_v7 = vpop.f32.mrf.mxu2 }
 0x628   : > { %v5078_v54 = vpop.f32.mrf.mxu1 }
 0x629   : > { %5448 = vst [vmem:[%s8764_s7] sm:$0xff] %v5416_v15  ;;  %v5157_v12 = vadd.f32 %v5078_v54, %v4958_v26  ;;  %v4716_v54 = vpop.f32.mrf.mxu3 }
 0x62b   : > { %v5349_v6 = vadd.f32 %v5270_v7, %v5157_v12  ;;  %v9329_v7 = vld [vmem:[#allocation34_spill] sm:$0xff] }
 0x62c   : > { %5312 = vmatmul.bf16.gmra.mxu2 %v9299_v34  ;;  %v4961_v26 = vadd.f32 %v9330_v59, %v9329_v7 }
 0x62d   : > { %v5385_v55 = vadd.f32 %v8757_v42, %v5349_v6 }
 0x62f   : > { %v5417_v0 = vmax.f32 %v5385_v55, 0.0  ;;  %v5273_v41 = vpop.f32.mrf.mxu2 }
 0x630   : > { %v5081_v60 = vpop.f32.mrf.mxu1 }
 0x631   : > { %5449 = vst [vmem:[%s8764_s7 + $0x8] sm:$0xff] %v5417_v0  ;;  %v5158_v33 = vadd.f32 %v5081_v60, %v4959_v28  ;;  %v9331_v0 = vld [vmem:[#allocation70_spill] sm:$0xff]  ;;  %v9332_v60 = vld [vmem:[#allocation49_spill] sm:$0xff] }
 0x633   : > { %v5350_v21 = vadd.f32 %v5273_v41, %v5158_v33  ;;  %5120 = vmatmul.bf16.gmra.mxu1 %v9326_v2  ;;  %v4902_v41 = vpop.f32.mrf.mxu0  ;;  %v9333_v33 = vld [vmem:[#allocation25_spill] sm:$0xff] }
 0x635   : > { %v5386_v53 = vadd.f32 %v8757_v42, %v5350_v21  ;;  %v4962_v21 = vadd.f32 %v9333_v33, %v9332_v60 }
 0x637   : > { %v5418_v34 = vmax.f32 %v5386_v53, 0.0  ;;  %v5275_v13 = vpop.f32.mrf.mxu2 }
 0x638   : > { %v5083_v16 = vpop.f32.mrf.mxu1 }
 0x639   : > { %5450 = vst [vmem:[%s8764_s7 + $0x10] sm:$0xff] %v5418_v34  ;;  %v5159_v24 = vadd.f32 %v5083_v16, %v4960_v40  ;;  %v4718_v34 = vpop.f32.mrf.mxu3 }
 0x63b   : > { %v5351_v51 = vadd.f32 %v5275_v13, %v5159_v24  ;;  %v4904_v37 = vpop.f32.mrf.mxu0  ;;  %v9334_v24 = vld [vmem:[#allocation35_spill] sm:$0xff] }
 0x63c   : > { %5317 = vmatmul.bf16.gmra.mxu2 %v9305_v57 }
 0x63d   : > { %v5387_v56 = vadd.f32 %v8757_v42, %v5351_v51  ;;  %v4963_v51 = vadd.f32 %v9334_v24, %v8634_v3  ;;  %v9336_v3 = vld [vmem:[#allocation46_spill] sm:$0xff] }
 0x63f   : > { %v5419_v25 = vmax.f32 %v5387_v56, 0.0  ;;  %v5278_v15 = vpop.f32.mrf.mxu2 }
 0x640   : > { %v5086_v12 = vpop.f32.mrf.mxu1 }
 0x641   : > { %5451 = vst [vmem:[%s8764_s7 + $0x18] sm:$0xff] %v5419_v25  ;;  %v5160_v6 = vadd.f32 %v5086_v12, %v4961_v26  ;;  %v4721_v7 = vpop.f32.mrf.mxu3  ;;  %v9335_v12 = vld [vmem:[#allocation32_spill] sm:$0xff] }
 0x643   : > { %v5352_v55 = vadd.f32 %v5278_v15, %v5160_v6  ;;  %5125 = vmatmul.bf16.gmra.mxu1 %v9331_v0  ;;  %v4964_v6 = vadd.f32 %v9335_v12, %v8638_v32 }
 0x645   : > { %v5388_v22 = vadd.f32 %v8757_v42, %v5352_v55  ;;  %v4907_v55 = vpop.f32.mrf.mxu0 }
 0x647   : > { %v5420_v57 = vmax.f32 %v5388_v22, 0.0  ;;  %v5280_v28 = vpop.f32.mrf.mxu2 }
 0x648   : > { %v5088_v2 = vpop.f32.mrf.mxu1 }
 0x649   : > { %5452 = vst [vmem:[%s8764_s7 + $0x20] sm:$0xff] %v5420_v57  ;;  %v5161_v53 = vadd.f32 %v5088_v2, %v4962_v21  ;;  %v4779_v57 = vadd.f32 %v8767_v38, %v9336_v3  ;;  %v4723_v60 = vpop.f32.mrf.mxu3 }
 0x64b   : > { %v5353_v13 = vadd.f32 %v5280_v28, %v5161_v53  ;;  %v4965_v2 = vadd.f32 %v8773_v5, %v4779_v57  ;;  %v4781_v5 = vadd.f32 %v4716_v54, %v8651_v10  ;;  %v9339_v57 = vld [vmem:[#allocation28_spill] sm:$0xff] }
 0x64c   : > { %5322 = vmatmul.bf16.gmra.mxu2 %v9309_v36 }
 0x64d   : > { %v5389_v31 = vadd.f32 %v8757_v42, %v5353_v13  ;;  %v4909_v13 = vpop.f32.mrf.mxu0 }
 0x64f   : > { %v5421_v40 = vmax.f32 %v5389_v31, 0.0  ;;  %v5283_v16 = vpop.f32.mrf.mxu2  ;;  %v4780_v31 = vadd.f32 %v4713_v1, %v8646_v20 }
 0x650   : > { %v5091_v56 = vpop.f32.mrf.mxu1 }
 0x651   : > { %5453 = vst [vmem:[%s8764_s7 + $0x28] sm:$0xff] %v5421_v40  ;;  %v5162_v25 = vadd.f32 %v5091_v56, %v4963_v51  ;;  %v4966_v24 = vadd.f32 %v4899_v43, %v4780_v31  ;;  %v4726_v51 = vpop.f32.mrf.mxu3 }
 0x653   : > { %v5354_v15 = vadd.f32 %v5283_v16, %v5162_v25  ;;  %5130 = vmatmul.bf16.gmra.mxu1 %v9308_v47 }
 0x655   : > { %v5390_v59 = vadd.f32 %v8757_v42, %v5354_v15 }
 0x657   : > { %v5422_v26 = vmax.f32 %v5390_v59, 0.0  ;;  %v5285_v36 = vpop.f32.mrf.mxu2  ;;  %v4912_v59 = vpop.f32.mrf.mxu0 }
 0x658   : > { %v5093_v0 = vpop.f32.mrf.mxu1 }
 0x659   : > { %5454 = vst [vmem:[%s8764_s7 + $0x30] sm:$0xff] %v5422_v26  ;;  %v5163_v22 = vadd.f32 %v5093_v0, %v4964_v6  ;;  %v9337_v26 = vld [vmem:[#allocation69_spill] sm:$0xff]  ;;  %v4728_v43 = vpop.f32.mrf.mxu3  ;;  %v9338_v0 = vld [vmem:[#allocation36_spill] sm:$0xff] }
 0x65b   : > { %v5355_v28 = vadd.f32 %v5285_v36, %v5163_v22  ;;  %v4967_v36 = vadd.f32 %v4902_v41, %v4781_v5  ;;  %v4782_v22 = vadd.f32 %v4718_v34, %v9338_v0  ;;  %v4783_v41 = vadd.f32 %v4721_v7, %v8664_v46  ;;  %v9340_v7 = vld [vmem:[#allocation18_spill] sm:$0xff]  ;;  %v9341_v5 = vld [vmem:[#allocation77_spill] sm:$0xff] }
 0x65c   : > { %5327 = vmatmul.bf16.gmra.mxu2 %v8454_v11  ;;  %v4990_v52 = vshrl.u32 %v9340_v7, 16 }
 0x65d   : > { %v5391_v47 = vadd.f32 %v8757_v42, %v5355_v28 }
 0x65f   : > { %v5423_v33 = vmax.f32 %v5391_v47, 0.0  ;;  %v5288_v21 = vpop.f32.mrf.mxu2  ;;  %v4914_v54 = vpop.f32.mrf.mxu0 }
 0x660   : > { %v5096_v53 = vpop.f32.mrf.mxu1 }
 0x661   : > { %5455 = vst [vmem:[%s8764_s7 + $0x38] sm:$0xff] %v5423_v33  ;;  %v5164_v32 = vadd.f32 %v5096_v53, %v4965_v2  ;;  %v4968_v33 = vadd.f32 %v4904_v37, %v4782_v22  ;;  %v4784_v37 = vadd.f32 %v4723_v60, %v8670_v17 }
 0x663   : > { %v5356_v40 = vadd.f32 %v5288_v21, %v5164_v32  ;;  %5135 = vmatmul.bf16.gmra.mxu1 %v8461_v45  ;;  %v4731_v32 = vpop.f32.mrf.mxu3 }
 0x665   : > { %v5392_v38 = vadd.f32 %v8757_v42, %v5356_v40 }
 0x667   : > { %v5424_v11 = vmax.f32 %v5392_v38, 0.0  ;;  %v5290_v16 = vpop.f32.mrf.mxu2  ;;  %v4969_v38 = vadd.f32 %v4907_v55, %v4783_v41 }
 0x668   : > { %v5098_v56 = vpop.f32.mrf.mxu1 }
 0x669   : > { %5456 = vst [vmem:[%s8764_s7 + $0x40] sm:$0xff] %v5424_v11  ;;  %v5165_v25 = vadd.f32 %v5098_v56, %v4966_v24  ;;  %v4917_v11 = vpop.f32.mrf.mxu0 }
 0x66b   : > { %v5357_v15 = vadd.f32 %v5290_v16, %v5165_v25  ;;  %v4992_v25 = vshll.u32 %v9340_v7, 16 }
 0x66c   : > { %5332 = vmatmul.bf16.gmra.mxu2 %v9337_v26 }
 0x66d   : > { %v5393_v20 = vadd.f32 %v8757_v42, %v5357_v15  ;;  %v3426_v15 = vsel %vm8054_vm8, %v9341_v5, 0 }
 0x66e   : > { %v5191_v60 = vrot.slane %v3426_v15, 1  ;;  %v4997_v22 = vshll.u32 %v3426_v15, 16 }
 0x66f   : > { %v5425_v1 = vmax.f32 %v5393_v20, 0.0  ;;  %v5293_v45 = vpop.f32.mrf.mxu2  ;;  %v4970_v20 = vadd.f32 %v4909_v13, %v4784_v37  ;;  %v4787_v37 = vadd.f32 %v4731_v32, %v8689_v62 }
 0x670   : > { %v5101_v12 = vpop.f32.mrf.mxu1 }
 0x671   : > { %5457 = vst [vmem:[%s8764_s7 + $0x48] sm:$0xff] %v5425_v1  ;;  %v5166_v6 = vadd.f32 %v5101_v12, %v4967_v36  ;;  %v5190_v1 = vrot.slane %v9340_v7, 1  ;;  %v4994_v36 = vrot.slane %v4992_v25, 1  ;;  %v4785_v12 = vadd.f32 %v4726_v51, %v8681_v23 }
 0x672   : > { %v4786_v51 = vadd.f32 %v4728_v43, %v8685_v58  ;;  %v4973_v25 = vadd.f32 %v4917_v11, %v4787_v37 }
 0x673   : > { %v5358_v3 = vadd.f32 %v5293_v45, %v5166_v6  ;;  %5140 = vmatmul.bf16.gmra.mxu1 %v9339_v57  ;;  %v5192_v0 = vsel %vm3975_vm9, %v5190_v1, %v5191_v60 }
 0x675   : > { %v5394_v10 = vadd.f32 %v8757_v42, %v5358_v3  ;;  %v4995_v3 = vor.u32 %v4994_v36, %v4990_v52 }
 0x677   : > { %v5426_v28 = vmax.f32 %v5394_v10, 0.0  ;;  %v5295_v47 = vpop.f32.mrf.mxu2 }
 0x678   : > { %v5103_v21 = vpop.f32.mrf.mxu1 }
 0x679   : > { %5458 = vst [vmem:[%s8764_s7 + $0x50] sm:$0xff] %v5426_v28  ;;  %v5167_v2 = vadd.f32 %v5103_v21, %v4968_v33  ;;  %v4971_v28 = vadd.f32 %v4912_v59, %v4785_v12  ;;  %v4999_v21 = vrot.slane %v4997_v22, 1 }
 0x67b   : > { %v5359_v53 = vadd.f32 %v5295_v47, %v5167_v2  ;;  %v5000_v23 = vsel %vm3443_vm10, %v4995_v3, %v4999_v21 }
 0x67c   : > { %5337 = vmatmul.bf16.gmra.mxu2 %v8677_v61  ;;  %v4733_v61 = vpop.f32.mrf.mxu3 }
 0x67d   : > { %v5395_v34 = vadd.f32 %v8757_v42, %v5359_v53 }
 0x67f   : > { %v5427_v31 = vmax.f32 %v5395_v34, 0.0  ;;  %v5298_v40 = vpop.f32.mrf.mxu2 }
 0x680   : > { %v5106_v16 = vpop.f32.mrf.mxu1 }
 0x681   : > { %5459 = vst [vmem:[%s8764_s7 + $0x58] sm:$0xff] %v5427_v31  ;;  %v5168_v24 = vadd.f32 %v5106_v16, %v4969_v38  ;;  %v4972_v38 = vadd.f32 %v4914_v54, %v4786_v51 }
 0x683   : > { %v5360_v56 = vadd.f32 %v5298_v40, %v5168_v24  ;;  %5145 = vmatmul.bf16.gmra.mxu1 %v8673_v18  ;;  %v4919_v18 = vpop.f32.mrf.mxu0 }
 0x684   : > { %v4736_v47 = vpop.f32.mrf.mxu3 }
 0x685   : > { %v5396_v46 = vadd.f32 %v8757_v42, %v5360_v56  ;;  %v4789_v36 = vadd.f32 %v4736_v47, %v8697_v4 }
 0x687   : > { %v5428_v55 = vmax.f32 %v5396_v46, 0.0  ;;  %v5300_v26 = vpop.f32.mrf.mxu2 }
 0x688   : > { %v5108_v45 = vpop.f32.mrf.mxu1 }
 0x689   : > { %5460 = vst [vmem:[%s8764_s7 + $0x60] sm:$0xff] %v5428_v55  ;;  %v5169_v17 = vadd.f32 %v5108_v45, %v4970_v20  ;;  %v4788_v55 = vadd.f32 %v4733_v61, %v8693_v35 }
 0x68b   : > { %v5361_v6 = vadd.f32 %v5300_v26, %v5169_v17  ;;  %v4922_v53 = vpop.f32.mrf.mxu0  ;;  %v4974_v32 = vadd.f32 %v4919_v18, %v4788_v55 }
 0x68c   : > { %5342 = vmatmul.bf16.gmra.mxu2 %v5192_v0  ;;  %v4738_v24 = vpop.f32.mrf.mxu3  ;;  %v4975_v0 = vadd.f32 %v4922_v53, %v4789_v36 }
 0x68d   : > { %v5397_v13 = vadd.f32 %v8757_v42, %v5361_v6  ;;  %v4790_v18 = vadd.f32 %v4738_v24, %v8701_v14 }
 0x68f   : > { %v5429_v57 = vmax.f32 %v5397_v13, 0.0  ;;  %v5303_v10 = vpop.f32.mrf.mxu2 }
 0x690   : > { %v5111_v33 = vpop.f32.mrf.mxu1 }
 0x691   : > { %5461 = vst [vmem:[%s8764_s7 + $0x68] sm:$0xff] %v5429_v57  ;;  %v5170_v2 = vadd.f32 %v5111_v33, %v4971_v28 }
 0x693   : > { %v5362_v41 = vadd.f32 %v5303_v10, %v5170_v2  ;;  %5150 = vmatmul.bf16.gmra.mxu1 %v5000_v23  ;;  %v4924_v7 = vpop.f32.mrf.mxu0 }
 0x694   : > { %v4741_v26 = vpop.f32.mrf.mxu3  ;;  %v4976_v28 = vadd.f32 %v4924_v7, %v4790_v18 }
 0x695   : > { %v5398_v34 = vadd.f32 %v8757_v42, %v5362_v41  ;;  %v4791_v2 = vadd.f32 %v4741_v26, %v8705_v8 }
 0x697   : > { %v5430_v31 = vmax.f32 %v5398_v34, 0.0  ;;  %v5305_v40 = vpop.f32.mrf.mxu2 }
 0x698   : > { %v5113_v59 = vpop.f32.mrf.mxu1 }
 0x699   : > { %5462 = vst [vmem:[%s8764_s7 + $0x70] sm:$0xff] %v5430_v31  ;;  %v5171_v16 = vadd.f32 %v5113_v59, %v4972_v38 }
 0x69b   : > { %v5363_v56 = vadd.f32 %v5305_v40, %v5171_v16  ;;  %v4927_v45 = vpop.f32.mrf.mxu0 }
 0x69c   : > { %v4743_v6 = vpop.f32.mrf.mxu3  ;;  %v4977_v34 = vadd.f32 %v4927_v45, %v4791_v2 }
 0x69d   : > { %v5399_v46 = vadd.f32 %v8757_v42, %v5363_v56  ;;  %v4792_v59 = vadd.f32 %v4743_v6, %v8709_v50 }
 0x69f   : > { %v5431_v58 = vmax.f32 %v5399_v46, 0.0  ;;  %v5308_v43 = vpop.f32.mrf.mxu2 }
 0x6a0   : > { %v5116_v5 = vpop.f32.mrf.mxu1 }
 0x6a1   : > { %5463 = vst [vmem:[%s8764_s7 + $0x78] sm:$0xff] %v5431_v58  ;;  %v5172_v15 = vadd.f32 %v5116_v5, %v4973_v25 }
 0x6a3   : > { %v5364_v54 = vadd.f32 %v5308_v43, %v5172_v15  ;;  %v4929_v13 = vpop.f32.mrf.mxu0 }
 0x6a4   : > { %v4746_v47 = vpop.f32.mrf.mxu3  ;;  %v4978_v46 = vadd.f32 %v4929_v13, %v4792_v59 }
 0x6a5   : > { %v5400_v20 = vadd.f32 %v8757_v42, %v5364_v54  ;;  %v4793_v43 = vadd.f32 %v4746_v47, %v8713_v44 }
 0x6a7   : > { %v5432_v1 = vmax.f32 %v5400_v20, 0.0  ;;  %v5310_v62 = vpop.f32.mrf.mxu2 }
 0x6a8   : > { %v5118_v17 = vpop.f32.mrf.mxu1 }
 0x6a9   : > { %5464 = vst [vmem:[%s8764_s7 + $0x80] sm:$0xff] %v5432_v1  ;;  %v5173_v60 = vadd.f32 %v5118_v17, %v4974_v32 }
 0x6ab   : > { %v5365_v11 = vadd.f32 %v5310_v62, %v5173_v60  ;;  %v4932_v51 = vpop.f32.mrf.mxu0 }
 0x6ac   : > { %v4748_v38 = vpop.f32.mrf.mxu3  ;;  %v4979_v54 = vadd.f32 %v4932_v51, %v4793_v43 }
 0x6ad   : > { %v5401_v12 = vadd.f32 %v8757_v42, %v5365_v11  ;;  %v4794_v62 = vadd.f32 %v4748_v38, %v8717_v39 }
 0x6af   : > { %v5433_v35 = vmax.f32 %v5401_v12, 0.0  ;;  %v5313_v61 = vpop.f32.mrf.mxu2 }
 0x6b0   : > { %v5121_v52 = vpop.f32.mrf.mxu1 }
 0x6b1   : > { %5465 = vst [vmem:[%s8764_s7 + $0x88] sm:$0xff] %v5433_v35  ;;  %v5174_v22 = vadd.f32 %v5121_v52, %v4975_v0 }
 0x6b3   : > { %v5366_v3 = vadd.f32 %v5313_v61, %v5174_v22  ;;  %v4934_v37 = vpop.f32.mrf.mxu0 }
 0x6b4   : > { %v4751_v5 = vpop.f32.mrf.mxu3  ;;  %v4980_v36 = vadd.f32 %v4934_v37, %v4794_v62 }
 0x6b5   : > { %v5402_v57 = vadd.f32 %v8757_v42, %v5366_v3  ;;  %v4795_v35 = vadd.f32 %v4751_v5, %v8721_v49 }
 0x6b7   : > { %v5434_v10 = vmax.f32 %v5402_v57, 0.0  ;;  %v5315_v4 = vpop.f32.mrf.mxu2 }
 0x6b8   : > { %v5123_v33 = vpop.f32.mrf.mxu1 }
 0x6b9   : > { %5466 = vst [vmem:[%s8764_s7 + $0x90] sm:$0xff] %v5434_v10  ;;  %v5175_v21 = vadd.f32 %v5123_v33, %v4976_v28 }
 0x6bb   : > { %v5367_v23 = vadd.f32 %v5315_v4, %v5175_v21  ;;  %v4937_v26 = vpop.f32.mrf.mxu0 }
 0x6bc   : > { %v4753_v17 = vpop.f32.mrf.mxu3  ;;  %v4981_v22 = vadd.f32 %v4937_v26, %v4795_v35 }
 0x6bd   : > { %v5403_v41 = vadd.f32 %v8757_v42, %v5367_v23  ;;  %v4796_v57 = vadd.f32 %v4753_v17, %v8725_v19 }
 0x6bf   : > { %v5435_v53 = vmax.f32 %v5403_v41, 0.0  ;;  %v5318_v14 = vpop.f32.mrf.mxu2 }
 0x6c0   : > { %v5126_v31 = vpop.f32.mrf.mxu1 }
 0x6c1   : > { %5467 = vst [vmem:[%s8764_s7 + $0x98] sm:$0xff] %v5435_v53  ;;  %v5176_v40 = vadd.f32 %v5126_v31, %v4977_v34 }
 0x6c3   : > { %v5368_v16 = vadd.f32 %v5318_v14, %v5176_v40  ;;  %v4939_v6 = vpop.f32.mrf.mxu0 }
 0x6c4   : > { %v4756_v13 = vpop.f32.mrf.mxu3  ;;  %v4982_v33 = vadd.f32 %v4939_v6, %v4796_v57 }
 0x6c5   : > { %v5404_v24 = vadd.f32 %v8757_v42, %v5368_v16  ;;  %v4797_v51 = vadd.f32 %v4756_v13, %v8729_v30 }
 0x6c7   : > { %v5436_v8 = vmax.f32 %v5404_v24, 0.0  ;;  %v5320_v56 = vpop.f32.mrf.mxu2 }
 0x6c8   : > { %v5128_v7 = vpop.f32.mrf.mxu1 }
 0x6c9   : > { %5468 = vst [vmem:[%s8764_s7 + $0xa0] sm:$0xff] %v5436_v8  ;;  %v5177_v58 = vadd.f32 %v5128_v7, %v4978_v46 }
 0x6cb   : > { %v5369_v25 = vadd.f32 %v5320_v56, %v5177_v58  ;;  %v4942_v4 = vpop.f32.mrf.mxu0 }
 0x6cc   : > { %v4758_v23 = vpop.f32.mrf.mxu3  ;;  %v4983_v31 = vadd.f32 %v4942_v4, %v4797_v51 }
 0x6cd   : > { %v5405_v15 = vadd.f32 %v8757_v42, %v5369_v25  ;;  %v4798_v59 = vadd.f32 %v4758_v23, %v8733_v9 }
 0x6cf   : > { %v5437_v55 = vmax.f32 %v5405_v15, 0.0  ;;  %v5323_v50 = vpop.f32.mrf.mxu2 }
 0x6d0   : > { %v5131_v20 = vpop.f32.mrf.mxu1 }
 0x6d1   : > { %5469 = vst [vmem:[%s8764_s7 + $0xa8] sm:$0xff] %v5437_v55  ;;  %v5178_v1 = vadd.f32 %v5131_v20, %v4979_v54 }
 0x6d3   : > { %v5370_v32 = vadd.f32 %v5323_v50, %v5178_v1  ;;  %v4944_v14 = vpop.f32.mrf.mxu0 }
 0x6d4   : > { %v4761_v24 = vpop.f32.mrf.mxu3  ;;  %v4984_v56 = vadd.f32 %v4944_v14, %v4798_v59 }
 0x6d5   : > { %v5406_v45 = vadd.f32 %v8757_v42, %v5370_v32  ;;  %v4799_v43 = vadd.f32 %v4761_v24, %v8737_v63 }
 0x6d7   : > { %v5438_v44 = vmax.f32 %v5406_v45, 0.0  ;;  %v5325_v60 = vpop.f32.mrf.mxu2 }
 0x6d8   : > { %v5133_v11 = vpop.f32.mrf.mxu1 }
 0x6d9   : > { %5470 = vst [vmem:[%s8764_s7 + $0xb0] sm:$0xff] %v5438_v44  ;;  %v5179_v12 = vadd.f32 %v5133_v11, %v4980_v36 }
 0x6db   : > { %v5371_v61 = vadd.f32 %v5325_v60, %v5179_v12  ;;  %v4947_v46 = vpop.f32.mrf.mxu0 }
 0x6dc   : > { %v4763_v15 = vpop.f32.mrf.mxu3  ;;  %v4985_v50 = vadd.f32 %v4947_v46, %v4799_v43 }
 0x6dd   : > { %v5407_v0 = vadd.f32 %v8757_v42, %v5371_v61  ;;  %v4800_v1 = vadd.f32 %v4763_v15, %v8741_v48 }
 0x6df   : > { %v5439_v52 = vmax.f32 %v5407_v0, 0.0  ;;  %v5328_v39 = vpop.f32.mrf.mxu2 }
 0x6e0   : > { %v5136_v18 = vpop.f32.mrf.mxu1 }
 0x6e1   : > { %5471 = vst [vmem:[%s8764_s7 + $0xb8] sm:$0xff] %v5439_v52  ;;  %v5180_v3 = vadd.f32 %v5136_v18, %v4981_v22 }
 0x6e3   : > { %v5372_v10 = vadd.f32 %v5328_v39, %v5180_v3  ;;  %v4949_v20 = vpop.f32.mrf.mxu0 }
 0x6e4   : > { %v4986_v17 = vadd.f32 %v4949_v20, %v4800_v1  ;;  %v4766_v44 = vpop.f32.mrf.mxu3 }
 0x6e5   : > { %v5408_v28 = vadd.f32 %v8757_v42, %v5372_v10  ;;  %v4801_v11 = vadd.f32 %v4766_v44, %v8745_v27 }
 0x6e7   : > { %v5440_v47 = vmax.f32 %v5408_v28, 0.0  ;;  %v5330_v49 = vpop.f32.mrf.mxu2 }
 0x6e8   : > { %v5138_v21 = vpop.f32.mrf.mxu1 }
 0x6e9   : > { %5472 = vst [vmem:[%s8764_s7 + $0xc0] sm:$0xff] %v5440_v47  ;;  %v5181_v2 = vadd.f32 %v5138_v21, %v4982_v33 }
 0x6eb   : > { %v5373_v41 = vadd.f32 %v5330_v49, %v5181_v2  ;;  %v4952_v6 = vpop.f32.mrf.mxu0 }
 0x6ec   : > { %v4987_v48 = vadd.f32 %v4952_v6, %v4801_v11  ;;  %v4768_v22 = vpop.f32.mrf.mxu3 }
 0x6ed   : > { %v5409_v53 = vadd.f32 %v8757_v42, %v5373_v41  ;;  %v4802_v13 = vadd.f32 %v4768_v22, %v8749_v29 }
 0x6ef   : > { %v5441_v19 = vmax.f32 %v5409_v53, 0.0  ;;  %v5333_v34 = vpop.f32.mrf.mxu2 }
 0x6f0   : > { %v5141_v40 = vpop.f32.mrf.mxu1 }
 0x6f1   : > { %5473 = vst [vmem:[%s8764_s7 + $0xc8] sm:$0xff] %v5441_v19  ;;  %v5182_v38 = vadd.f32 %v5141_v40, %v4983_v31 }
 0x6f3   : > { %v5374_v16 = vadd.f32 %v5333_v34, %v5182_v38  ;;  %v4954_v27 = vpop.f32.mrf.mxu0 }
 0x6f4   : > { %v4988_v10 = vadd.f32 %v4954_v27, %v4802_v13 }
 0x6f5   : > { %v5410_v37 = vadd.f32 %v8757_v42, %v5374_v16 }
 0x6f7   : > { %v5442_v8 = vmax.f32 %v5410_v37, 0.0  ;;  %v5335_v30 = vpop.f32.mrf.mxu2 }
 0x6f8   : > { %v5143_v7 = vpop.f32.mrf.mxu1 }
 0x6f9   : > { %5474 = vst [vmem:[%s8764_s7 + $0xd0] sm:$0xff] %v5442_v8  ;;  %v5183_v58 = vadd.f32 %v5143_v7, %v4984_v56 }
 0x6fb   : > { %v5375_v25 = vadd.f32 %v5335_v30, %v5183_v58 }
 0x6fd   : > { %v5411_v5 = vadd.f32 %v8757_v42, %v5375_v25 }
 0x6ff   : > { %v5443_v9 = vmax.f32 %v5411_v5, 0.0  ;;  %v5338_v55 = vpop.f32.mrf.mxu2 }
 0x700   : > { %v5146_v54 = vpop.f32.mrf.mxu1 }
 0x701   : > { %5475 = vst [vmem:[%s8764_s7 + $0xd8] sm:$0xff] %v5443_v9  ;;  %v5184_v26 = vadd.f32 %v5146_v54, %v4985_v50 }
 0x703   : > { %v5376_v62 = vadd.f32 %v5338_v55, %v5184_v26 }
 0x705   : > { %v5412_v32 = vadd.f32 %v8757_v42, %v5376_v62 }
 0x707   : > { %v5444_v45 = vmax.f32 %v5412_v32, 0.0  ;;  %v5340_v63 = vpop.f32.mrf.mxu2 }
 0x708   : > { %v5148_v60 = vpop.f32.mrf.mxu1 }
 0x709   : > { %5476 = vst [vmem:[%s8764_s7 + $0xe0] sm:$0xff] %v5444_v45  ;;  %v5185_v36 = vadd.f32 %v5148_v60, %v4986_v17 }
 0x70b   : > { %v5377_v12 = vadd.f32 %v5340_v63, %v5185_v36 }
 0x70d   : > { %v5413_v35 = vadd.f32 %v8757_v42, %v5377_v12 }
 0x70f   : > { %v5445_v61 = vmax.f32 %v5413_v35, 0.0  ;;  %v5343_v0 = vpop.f32.mrf.mxu2 }
 0x710   : > { %v5151_v52 = vpop.f32.mrf.mxu1 }
 0x711   : > { %5477 = vst [vmem:[%s8764_s7 + $0xe8] sm:$0xff] %v5445_v61  ;;  %v5186_v39 = vadd.f32 %v5151_v52, %v4987_v48 }
 0x713   : > { %v5378_v18 = vadd.f32 %v5343_v0, %v5186_v39 }
 0x715   : > { %v5414_v3 = vadd.f32 %v8757_v42, %v5378_v18 }
 0x717   : > { %v5446_v57 = vmax.f32 %v5414_v3, 0.0  ;;  %v5345_v47 = vpop.f32.mrf.mxu2 }
 0x718   : > { %v5153_v4 = vpop.f32.mrf.mxu1 }
 0x719   : > { %5478 = vst [vmem:[%s8764_s7 + $0xf0] sm:$0xff] %v5446_v57  ;;  %v5187_v28 = vadd.f32 %v5153_v4, %v4988_v10 }
 0x71b   : > { %v5379_v49 = vadd.f32 %v5345_v47, %v5187_v28 }
 0x71d   : > { %v5415_v29 = vadd.f32 %v8757_v42, %v5379_v49 }
 0x71f   : > { %v5447_v33 = vmax.f32 %v5415_v29, 0.0 }
 0x721   : > { %5479 = vst [vmem:[%s8764_s7 + $0xf8] sm:$0xff] %v5447_v33 }
 0x722   : > { %6724 = shalt.err (!%p6721_p0)
}
 0x723   : > { %s6789_s25 = smov 128   ;;  %s6790_s14 = smov 8  }
 0x724   : > { %6490 = dma.vmem_to_hbm [thread:$0]  (%p6906_p7), %s5497_s27, 4096, %s5499_s6, %s5481_s21, %s6789_s25, %s6789_s25, %s6790_s14  }
 0x725 PF: > { %s5513_s15 = sand.u32 1, %s6763_s18   ;;  %p6504_p3 = pnand %p5609_p11, %p6870_p6 }
 0x726   : > { %s5514_s7 = scalar_lea.sflag [#allocation4], %s5513_s15 }
 0x727   : > { %p6505_p5 = pneg %p6504_p3 }
 0x729   : > { %6758 = dma.done.wait (%p6505_p5), %s5514_s7, 4096  }
 0x72a   : > { %6760 = vsyncadd (%p6505_p5), %s5514_s7, 4294963200  ;;  %s22_s23 = sadd.s32 1, %s6783_s23   ;;  %s9342_s18 = smov %s6767_s19 }
 0x72b   : > { %p19_p9 = scmp.ge.s32.totalorder %s22_s23, 4   ;;  %s9343_s19 = smov %s6771_s20 }
 0x72c   : > { %s9344_s20 = smov %s6914_s10  ;;  %s9345_s21 = smov %s6779_s22 }
 0x72d   : > { %s9346_s22 = smov %s9348_s24  ;;  %21 = sbr.rel (!%p19_p9) target bundleno = 10 (0xa), region = 110 }
 0x732   :  { %5520 = vsyncpa [#allocation3], 1 }
 0x733   :  { %5522 = vsyncpa [#allocation3 + $0x1], 1 }
 0x734   :  { %5523 = vsyncpa [#allocation6], 1 }
 0x735   :  { %5524 = vsyncpa [#allocation4], 1 }
 0x736   :  { %5526 = vsyncpa [#allocation4 + $0x1], 1 }

</bundles_post_ra>
